<compile_context>
chip_gen: v6e
topology: v6e:2x2x1
jax: 0.10.0
libtpu: 0.0.40
codegen_flags: <defaults>
</compile_context>

<pallas_src>
import functools

import jax
import jax.numpy as jnp
from jax import lax
from jax.experimental import pallas as pl
from jax.experimental.pallas import tpu as pltpu


def _gelu(x):
    return jax.nn.gelu(x, approximate=True)


def _full_spec(shape):
    nd = len(shape)
    return pl.BlockSpec(tuple(shape), lambda i, _nd=nd: (0,) * _nd)


# ----------------------------------------------------------------------------
# Truncated DFT bases (only the kept modes): replaces rfft2 / irfft2 entirely.
# ----------------------------------------------------------------------------
def _make_dft_bases(H, W, m1, m2):
    """Real cos/sin matrices for the kept rfft2 modes.

    Kept modes: kx in [0, m1) U [H-m1, H), ky in [0, m2), flattened row-major
    (m = kxi*m2 + ky). Pixel index p = x*W + y.
      forward (unnormalized rfft2):  Re = u @ fwd_c ; Im = u @ fwd_s
      inverse (unnormalized irfft2): out = Re @ invu_c + Im @ invu_s
    """
    P = H * W
    kx = jnp.concatenate([jnp.arange(m1), jnp.arange(H - m1, H)]).astype(jnp.float32)
    ky = jnp.arange(m2, dtype=jnp.float32)
    xs = jnp.arange(H, dtype=jnp.float32)
    ys = jnp.arange(W, dtype=jnp.float32)
    ph = 2.0 * jnp.pi * (xs[:, None, None, None] * kx[None, None, :, None] / H
                         + ys[None, :, None, None] * ky[None, None, None, :] / W)
    ph = ph.reshape(P, 2 * m1 * m2)                      # (P, M)
    wm = jnp.tile(jnp.where(ky == 0, 1.0, 2.0), 2 * m1)  # Hermitian weight per mode (M,)
    fwd_c = jnp.cos(ph)
    fwd_s = -jnp.sin(ph)
    invu_c = wm[:, None] * jnp.cos(ph).T                 # (M, P)
    invu_s = -wm[:, None] * jnp.sin(ph).T
    return fwd_c, fwd_s, invu_c, invu_s


# ----------------------------------------------------------------------------
# One-time parameter preprocessing (all layout work hoisted out of the forward)
# ----------------------------------------------------------------------------
def preprocess_params(params, cfg):
    m1, m2 = cfg["modes1"], cfg["modes2"]
    H, W = cfg["s_latentspace"]
    P = H * W
    M = 2 * m1 * m2
    width = cfg["width"]
    w_lfunc = width  # width_lfunc defaults to width

    fwd_c, fwd_s, invu_c, invu_s = _make_dft_bases(H, W, m1, m2)
    inv_c = (invu_c / float(P)).astype(jnp.float32)   # spectral conv irfft2: default norm (1/P)
    inv_s = (invu_s / float(P)).astype(jnp.float32)

    # mlp0 (row-oriented)
    p0 = params["mlp0"]
    m0w1, m0b1 = p0["w1"], p0["b1"].reshape(1, -1)
    m0w2, m0b2 = p0["w2"], p0["b2"].reshape(1, -1)

    # LinearDecoder2d: pre-combine complex mode weights with the (unnormalized,
    # norm="forward") inverse basis -> D[ci, co, p]
    wr0 = params["ldec0"]["wr"]
    wi0 = params["ldec0"]["wi"]
    wr_d = wr0.reshape(wr0.shape[0], wr0.shape[1], M)
    wi_d = wi0.reshape(wi0.shape[0], wi0.shape[1], M)
    dec_d = (jnp.einsum("iom,mp->iop", wr_d, invu_c)
             + jnp.einsum("iom,mp->iop", wi_d, invu_s)).astype(jnp.float32)

    # Fourier layers: spectral mixing weights (real/imag), transposed 1x1-conv weight, bias column
    L = len(params["layers"])
    if L > 0:
        wr_list, wi_list, wct_list, bc_list = [], [], [], []
        for lyr in params["layers"]:
            wfull = jnp.concatenate([lyr["sw1"], lyr["sw2"]], axis=2).reshape(width, width, M)
            wr_list.append(jnp.real(wfull).astype(jnp.float32))
            wi_list.append(jnp.imag(wfull).astype(jnp.float32))
            wct_list.append(lyr["wc"].T)
            bc_list.append(lyr["bc"].reshape(width, 1))
        wr_l, wi_l = jnp.stack(wr_list), jnp.stack(wi_list)
        wct_l, bc_l = jnp.stack(wct_list), jnp.stack(bc_list)
    else:
        wr_l = jnp.zeros((1, width, width, M), jnp.float32)
        wi_l = jnp.zeros((1, width, width, M), jnp.float32)
        wct_l = jnp.zeros((1, width, width), jnp.float32)
        bc_l = jnp.zeros((1, width, 1), jnp.float32)

    # LinearFunctionals2d: pre-combine with forward basis and the 2/P (norm="forward") factor
    wrf = params["lfunc0"]["wr"].reshape(width, w_lfunc, M)
    wif = params["lfunc0"]["wi"].reshape(width, w_lfunc, M)
    flin_t = ((2.0 / P) * (jnp.einsum("iom,pm->iop", wrf, fwd_c)
                           - jnp.einsum("iom,pm->iop", wif, fwd_s))).astype(jnp.float32)

    # mlpfunc0 (column-oriented: weights on the left of the (channels, pixels) slab)
    pf = params["mlpfunc0"]
    mfw1t, mfb1 = pf["w1"].T, pf["b1"].reshape(-1, 1)
    mfw2t, mfb2 = pf["w2"].T, pf["b2"].reshape(-1, 1)

    # double trapezoid weights (reference uses dx = 1/x.shape[-1] both times)
    tw = jnp.ones((W,), jnp.float32).at[0].set(0.5).at[-1].set(0.5) * (1.0 / W)
    th = jnp.ones((H,), jnp.float32).at[0].set(0.5).at[-1].set(0.5) * (1.0 / H)
    wt_row = (th[:, None] * tw[None, :]).reshape(1, P)

    # mlp1 (column-oriented; first-layer weight split into the [x_temp | integral] halves)
    p1 = params["mlp1"]
    m1w1at = p1["w1"][:w_lfunc, :].T
    m1w1bt = p1["w1"][w_lfunc:, :].T
    m1b1 = p1["b1"].reshape(-1, 1)
    m1w2t = p1["w2"].T
    m1b2 = p1["b2"].reshape(-1, 1)

    pp = (m0w1, m0b1, m0w2, m0b2,
          dec_d, fwd_c, fwd_s, inv_c, inv_s,
          wr_l, wi_l, wct_l, bc_l,
          flin_t, mfw1t, mfb1, mfw2t, mfb2, wt_row,
          m1w1at, m1w1bt, m1b1, m1w2t, m1b2)
    return pp, L


# ----------------------------------------------------------------------------
# The fused whole-network Pallas kernel
# ----------------------------------------------------------------------------
def _fnn2d_kernel(x_ref, m0w1, m0b1, m0w2, m0b2,
                  dec_d, fwd_c, fwd_s, inv_c, inv_s,
                  wr_l, wi_l, wct_l, bc_l,
                  flin_t, mfw1t, mfb1, mfw2t, mfb2, wt_row,
                  m1w1at, m1w1bt, m1b1, m1w2t, m1b2,
                  o_ref, *, n_fourier_layers):
    f32 = jnp.float32
    B = x_ref.shape[0]
    n_dec_in = dec_d.shape[0]
    width = dec_d.shape[1]

    # ---- head MLP (batched over the B rows) ----
    h0 = _gelu(jnp.dot(x_ref[...], m0w1[...], preferred_element_type=f32) + m0b1[...])
    v = jnp.dot(h0, m0w2[...], preferred_element_type=f32) + m0b2[...]       # (B, n_dec_in)

    xt_cols, gi_cols = [], []
    for b in range(B):
        # ---- LinearDecoder2d: vector -> latent field u (width, H*W) ----
        u = v[b:b + 1, 0:1] * dec_d[0]
        for ci in range(1, n_dec_in):
            u = u + v[b:b + 1, ci:ci + 1] * dec_d[ci]

        # ---- Fourier layers: u = gelu(Conv1x1(u) + SpectralConv2d(u)) ----
        for l in range(n_fourier_layers):
            zr = jnp.dot(u, fwd_c[...], preferred_element_type=f32)          # (width, M)
            zi = jnp.dot(u, fwd_s[...], preferred_element_type=f32)
            o_r = None
            o_i = None
            for ci in range(width):                                          # VPU FMA mixing
                zr_c = zr[ci:ci + 1, :]
                zi_c = zi[ci:ci + 1, :]
                wr = wr_l[l, ci]                                             # (width, M)
                wi = wi_l[l, ci]
                tr = zr_c * wr - zi_c * wi
                ti = zr_c * wi + zi_c * wr
                o_r = tr if o_r is None else o_r + tr
                o_i = ti if o_i is None else o_i + ti
            spec = (jnp.dot(o_r, inv_c[...], preferred_element_type=f32)
                    + jnp.dot(o_i, inv_s[...], preferred_element_type=f32))  # (width, P)
            conv = jnp.dot(wct_l[l], u, preferred_element_type=f32) + bc_l[l]
            u = _gelu(conv + spec)

        # ---- LinearFunctionals2d -> (w_lfunc, 1) column ----
        xt = None
        for ci in range(width):
            t = jnp.sum(flin_t[ci] * u[ci:ci + 1, :], axis=1, keepdims=True)
            xt = t if xt is None else xt + t

        # ---- per-pixel MLP (channels on rows, pixels on lanes) + trapezoid integral ----
        hp = _gelu(jnp.dot(mfw1t[...], u, preferred_element_type=f32) + mfb1[...])
        g = jnp.dot(mfw2t[...], hp, preferred_element_type=f32) + mfb2[...]  # (w_lfunc, P)
        gi = jnp.sum(g * wt_row[...], axis=1, keepdims=True)                 # (w_lfunc, 1)

        xt_cols.append(xt)
        gi_cols.append(gi)

    # ---- final MLP on concat([x_temp, integral]) (column-oriented, all B at once) ----
    xt_all = jnp.concatenate(xt_cols, axis=1)                                # (w_lfunc, B)
    gi_all = jnp.concatenate(gi_cols, axis=1)
    h1 = _gelu(jnp.dot(m1w1at[...], xt_all, preferred_element_type=f32)
               + jnp.dot(m1w1bt[...], gi_all, preferred_element_type=f32)
               + m1b1[...])
    out = jnp.dot(m1w2t[...], h1, preferred_element_type=f32) + m1b2[...]    # (d_out, B)
    o_ref[...] = out.astype(o_ref.dtype)


def fnn2d_forward(x, pp, *, n_fourier_layers):
    """Whole FNN2d forward as one pallas_call; returns (B, d_out)."""
    inputs = (x,) + tuple(pp)
    in_specs = [_full_spec(a.shape) for a in inputs]
    d_out = pp[-1].shape[0]
    B = x.shape[0]
    out = pl.pallas_call(
        functools.partial(_fnn2d_kernel, n_fourier_layers=n_fourier_layers),
        out_shape=jax.ShapeDtypeStruct((d_out, B), jnp.float32),
        grid=(1,),
        in_specs=in_specs,
        out_specs=_full_spec((d_out, B)),
        compiler_params=pltpu.CompilerParams(dimension_semantics=("arbitrary",)),
    )(*inputs)
    return out.T  # (B, d_out) — tiny transpose left to XLA


# ----------------------------------------------------------------------------
# Deterministic parameter initialization (shapes per FNN2d.__init__)
# ----------------------------------------------------------------------------
def init_params(key, cfg):
    d_in, d_out = cfg["d_in"], cfg["d_out"]
    width = cfg["width"]
    w_init, w_fin = cfg["width_initial"], cfg["width_final"]
    w_ldec, w_lfunc = width, width  # width_ldec / width_lfunc default to width
    m1, m2 = cfg["modes1"], cfg["modes2"]
    n_layers = cfg["n_layers"]
    keys = iter(jax.random.split(key, 64))

    def linear(fin, fout):
        lim = 1.0 / (fin ** 0.5)
        w = jax.random.uniform(next(keys), (fin, fout), jnp.float32, -lim, lim)
        b = jax.random.uniform(next(keys), (fout,), jnp.float32, -lim, lim)
        return w, b

    def mlp(fin, fmid, fout):
        w1, b1 = linear(fin, fmid)
        w2, b2 = linear(fmid, fout)
        return {"w1": w1, "b1": b1, "w2": w2, "b2": b2}

    def cplx_parts(shape, scale):
        r = scale * jax.random.uniform(next(keys), shape, jnp.float32)
        i = scale * jax.random.uniform(next(keys), shape, jnp.float32)
        return r, i

    params = {"mlp0": mlp(d_in, w_init, w_ldec)}
    dr, di = cplx_parts((w_ldec, width, 2 * m1, m2), 1.0 / (w_ldec * width))
    params["ldec0"] = {"wr": dr, "wi": di}

    layers = []
    for _ in range(n_layers - 2):
        s1r, s1i = cplx_parts((width, width, m1, m2), 1.0 / (width * width))
        s2r, s2i = cplx_parts((width, width, m1, m2), 1.0 / (width * width))
        wc, bc = linear(width, width)  # 1x1 Conv2d as (Ci, Co) matmul + bias
        layers.append({"sw1": lax.complex(s1r, s1i), "sw2": lax.complex(s2r, s2i),
                       "wc": wc, "bc": bc})
    params["layers"] = layers

    fr, fi = cplx_parts((width, w_lfunc, 2 * m1, m2), 1.0 / (width * w_lfunc))
    params["lfunc0"] = {"wr": fr, "wi": fi}
    params["mlpfunc0"] = mlp(width, w_fin, w_lfunc)
    params["mlp1"] = mlp(2 * w_lfunc, 2 * w_fin, d_out)
    return params


if __name__ == "__main__":
    cfg = dict(
        d_in=4, d_out=3,
        s_latentspace=(16, 16),
        modes1=4, modes2=4,
        width=8, width_initial=32, width_final=32,
        n_layers=4,
    )
    key = jax.random.PRNGKey(0)
    pkey, xkey = jax.random.split(key)
    params = init_params(pkey, cfg)
    pp, n_fourier_layers = preprocess_params(params, cfg)     # one-time layout/DFT precompute
    x = jax.random.normal(xkey, (2, cfg["d_in"]), dtype=jnp.float32)

    fwd = jax.jit(functools.partial(fnn2d_forward, n_fourier_layers=n_fourier_layers))
    out = fwd(x, pp)
    out = jax.block_until_ready(out)
    assert out.shape == (2, cfg["d_out"]), out.shape
    assert bool(jnp.all(jnp.isfinite(out)))
    print("KERNEL_OK")
</pallas_src>

<mosaic_0001>
module attributes {stable_mosaic.version = 11 : i64} {
  func.func @_fnn2d_kernel(%arg0: i32, %arg1: memref<2x4xf32, #tpu.memory_space<vmem>>, %arg2: memref<4x32xf32, #tpu.memory_space<vmem>>, %arg3: memref<1x32xf32, #tpu.memory_space<vmem>>, %arg4: memref<32x8xf32, #tpu.memory_space<vmem>>, %arg5: memref<1x8xf32, #tpu.memory_space<vmem>>, %arg6: memref<8x8x256xf32, #tpu.memory_space<vmem>>, %arg7: memref<256x32xf32, #tpu.memory_space<vmem>>, %arg8: memref<256x32xf32, #tpu.memory_space<vmem>>, %arg9: memref<32x256xf32, #tpu.memory_space<vmem>>, %arg10: memref<32x256xf32, #tpu.memory_space<vmem>>, %arg11: memref<2x8x8x32xf32, #tpu.memory_space<vmem>>, %arg12: memref<2x8x8x32xf32, #tpu.memory_space<vmem>>, %arg13: memref<2x8x8xf32, #tpu.memory_space<vmem>>, %arg14: memref<2x8x1xf32, #tpu.memory_space<vmem>>, %arg15: memref<8x8x256xf32, #tpu.memory_space<vmem>>, %arg16: memref<32x8xf32, #tpu.memory_space<vmem>>, %arg17: memref<32x1xf32, #tpu.memory_space<vmem>>, %arg18: memref<8x32xf32, #tpu.memory_space<vmem>>, %arg19: memref<8x1xf32, #tpu.memory_space<vmem>>, %arg20: memref<1x256xf32, #tpu.memory_space<vmem>>, %arg21: memref<64x8xf32, #tpu.memory_space<vmem>>, %arg22: memref<64x8xf32, #tpu.memory_space<vmem>>, %arg23: memref<64x1xf32, #tpu.memory_space<vmem>>, %arg24: memref<3x64xf32, #tpu.memory_space<vmem>>, %arg25: memref<3x1xf32, #tpu.memory_space<vmem>>, %arg26: memref<3x2xf32, #tpu.memory_space<vmem>>) attributes {dimension_semantics = [#tpu.dimension_semantics<arbitrary>], iteration_bounds = array<i64: 1>, scalar_prefetch = 0 : i64, scratch_operands = 0 : i64, tpu.core_type = #tpu.core_type<tc>, window_params = [{pipeline_mode = #tpu.pipeline_mode<synchronous>, transform_indices = @transform_0, window_bounds = array<i64: 2, 4>}, {pipeline_mode = #tpu.pipeline_mode<synchronous>, transform_indices = @transform_1, window_bounds = array<i64: 4, 32>}, {pipeline_mode = #tpu.pipeline_mode<synchronous>, transform_indices = @transform_2, window_bounds = array<i64: 1, 32>}, {pipeline_mode = #tpu.pipeline_mode<synchronous>, transform_indices = @transform_3, window_bounds = array<i64: 32, 8>}, {pipeline_mode = #tpu.pipeline_mode<synchronous>, transform_indices = @transform_4, window_bounds = array<i64: 1, 8>}, {pipeline_mode = #tpu.pipeline_mode<synchronous>, transform_indices = @transform_5, window_bounds = array<i64: 8, 8, 256>}, {pipeline_mode = #tpu.pipeline_mode<synchronous>, transform_indices = @transform_6, window_bounds = array<i64: 256, 32>}, {pipeline_mode = #tpu.pipeline_mode<synchronous>, transform_indices = @transform_7, window_bounds = array<i64: 256, 32>}, {pipeline_mode = #tpu.pipeline_mode<synchronous>, transform_indices = @transform_8, window_bounds = array<i64: 32, 256>}, {pipeline_mode = #tpu.pipeline_mode<synchronous>, transform_indices = @transform_9, window_bounds = array<i64: 32, 256>}, {pipeline_mode = #tpu.pipeline_mode<synchronous>, transform_indices = @transform_10, window_bounds = array<i64: 2, 8, 8, 32>}, {pipeline_mode = #tpu.pipeline_mode<synchronous>, transform_indices = @transform_11, window_bounds = array<i64: 2, 8, 8, 32>}, {pipeline_mode = #tpu.pipeline_mode<synchronous>, transform_indices = @transform_12, window_bounds = array<i64: 2, 8, 8>}, {pipeline_mode = #tpu.pipeline_mode<synchronous>, transform_indices = @transform_13, window_bounds = array<i64: 2, 8, 1>}, {pipeline_mode = #tpu.pipeline_mode<synchronous>, transform_indices = @transform_14, window_bounds = array<i64: 8, 8, 256>}, {pipeline_mode = #tpu.pipeline_mode<synchronous>, transform_indices = @transform_15, window_bounds = array<i64: 32, 8>}, {pipeline_mode = #tpu.pipeline_mode<synchronous>, transform_indices = @transform_16, window_bounds = array<i64: 32, 1>}, {pipeline_mode = #tpu.pipeline_mode<synchronous>, transform_indices = @transform_17, window_bounds = array<i64: 8, 32>}, {pipeline_mode = #tpu.pipeline_mode<synchronous>, transform_indices = @transform_18, window_bounds = array<i64: 8, 1>}, {pipeline_mode = #tpu.pipeline_mode<synchronous>, transform_indices = @transform_19, window_bounds = array<i64: 1, 256>}, {pipeline_mode = #tpu.pipeline_mode<synchronous>, transform_indices = @transform_20, window_bounds = array<i64: 64, 8>}, {pipeline_mode = #tpu.pipeline_mode<synchronous>, transform_indices = @transform_21, window_bounds = array<i64: 64, 8>}, {pipeline_mode = #tpu.pipeline_mode<synchronous>, transform_indices = @transform_22, window_bounds = array<i64: 64, 1>}, {pipeline_mode = #tpu.pipeline_mode<synchronous>, transform_indices = @transform_23, window_bounds = array<i64: 3, 64>}, {pipeline_mode = #tpu.pipeline_mode<synchronous>, transform_indices = @transform_24, window_bounds = array<i64: 3, 1>}, {pipeline_mode = #tpu.pipeline_mode<synchronous>, transform_indices = @transform_25, window_bounds = array<i64: 3, 2>}]} {
    %c0 = arith.constant 0 : index
    %c0_0 = arith.constant 0 : index
    %0 = vector.load %arg1[%c0, %c0_0] : memref<2x4xf32, #tpu.memory_space<vmem>>, vector<2x4xf32>
    %c0_1 = arith.constant 0 : index
    %c0_2 = arith.constant 0 : index
    %1 = vector.load %arg2[%c0_1, %c0_2] : memref<4x32xf32, #tpu.memory_space<vmem>>, vector<4x32xf32>
    %cst = arith.constant dense<0.000000e+00> : vector<2x32xf32>
    %2 = tpu.matmul %0, %1, %cst {dimension_numbers = #tpu.dot_dimension_numbers<[1], [0], [0], [1], [0, 0, 1, 1], [], []>} : vector<2x4xf32>, vector<4x32xf32>, vector<2x32xf32> -> vector<2x32xf32>
    %c0_3 = arith.constant 0 : index
    %c0_4 = arith.constant 0 : index
    %3 = vector.load %arg3[%c0_3, %c0_4] : memref<1x32xf32, #tpu.memory_space<vmem>>, vector<1x32xf32>
    %4 = vector.broadcast %3 : vector<1x32xf32> to vector<2x32xf32>
    %5 = arith.addf %2, %4 : vector<2x32xf32>
    %6 = arith.mulf %5, %5 : vector<2x32xf32>
    %7 = arith.mulf %5, %6 : vector<2x32xf32>
    %cst_5 = arith.constant 4.471500e-02 : f32
    %8 = vector.broadcast %cst_5 : f32 to vector<2x32xf32>
    %9 = arith.mulf %8, %7 : vector<2x32xf32>
    %10 = arith.addf %5, %9 : vector<2x32xf32>
    %cst_6 = arith.constant 0.797884583 : f32
    %11 = vector.broadcast %cst_6 : f32 to vector<2x32xf32>
    %12 = arith.mulf %11, %10 : vector<2x32xf32>
    %13 = math.tanh %12 : vector<2x32xf32>
    %cst_7 = arith.constant 1.000000e+00 : f32
    %14 = vector.broadcast %cst_7 : f32 to vector<2x32xf32>
    %15 = arith.addf %14, %13 : vector<2x32xf32>
    %cst_8 = arith.constant 5.000000e-01 : f32
    %16 = vector.broadcast %cst_8 : f32 to vector<2x32xf32>
    %17 = arith.mulf %16, %15 : vector<2x32xf32>
    %18 = arith.mulf %5, %17 : vector<2x32xf32>
    %c0_9 = arith.constant 0 : index
    %c0_10 = arith.constant 0 : index
    %19 = vector.load %arg4[%c0_9, %c0_10] : memref<32x8xf32, #tpu.memory_space<vmem>>, vector<32x8xf32>
    %cst_11 = arith.constant dense<0.000000e+00> : vector<2x8xf32>
    %20 = tpu.matmul %18, %19, %cst_11 {dimension_numbers = #tpu.dot_dimension_numbers<[1], [0], [0], [1], [0, 0, 1, 1], [], []>} : vector<2x32xf32>, vector<32x8xf32>, vector<2x8xf32> -> vector<2x8xf32>
    %c0_12 = arith.constant 0 : index
    %c0_13 = arith.constant 0 : index
    %21 = vector.load %arg5[%c0_12, %c0_13] : memref<1x8xf32, #tpu.memory_space<vmem>>, vector<1x8xf32>
    %22 = vector.broadcast %21 : vector<1x8xf32> to vector<2x8xf32>
    %23 = arith.addf %20, %22 : vector<2x8xf32>
    %24 = vector.extract_strided_slice %23 {offsets = [0, 0], sizes = [1, 1], strides = [1, 1]} : vector<2x8xf32> to vector<1x1xf32>
    %c0_14 = arith.constant 0 : index
    %c0_15 = arith.constant 0 : index
    %c0_16 = arith.constant 0 : index
    %25 = vector.load %arg6[%c0_14, %c0_15, %c0_16] : memref<8x8x256xf32, #tpu.memory_space<vmem>>, vector<1x8x256xf32>
    %26 = vector.shape_cast %25 : vector<1x8x256xf32> to vector<8x256xf32>
    %27 = vector.broadcast %24 : vector<1x1xf32> to vector<8x256xf32>
    %28 = arith.mulf %27, %26 : vector<8x256xf32>
    %29 = vector.extract_strided_slice %23 {offsets = [0, 1], sizes = [1, 1], strides = [1, 1]} : vector<2x8xf32> to vector<1x1xf32>
    %c1 = arith.constant 1 : index
    %c0_17 = arith.constant 0 : index
    %c0_18 = arith.constant 0 : index
    %30 = vector.load %arg6[%c1, %c0_17, %c0_18] : memref<8x8x256xf32, #tpu.memory_space<vmem>>, vector<1x8x256xf32>
    %31 = vector.shape_cast %30 : vector<1x8x256xf32> to vector<8x256xf32>
    %32 = vector.broadcast %29 : vector<1x1xf32> to vector<8x256xf32>
    %33 = arith.mulf %32, %31 : vector<8x256xf32>
    %34 = arith.addf %28, %33 : vector<8x256xf32>
    %35 = vector.extract_strided_slice %23 {offsets = [0, 2], sizes = [1, 1], strides = [1, 1]} : vector<2x8xf32> to vector<1x1xf32>
    %c2 = arith.constant 2 : index
    %c0_19 = arith.constant 0 : index
    %c0_20 = arith.constant 0 : index
    %36 = vector.load %arg6[%c2, %c0_19, %c0_20] : memref<8x8x256xf32, #tpu.memory_space<vmem>>, vector<1x8x256xf32>
    %37 = vector.shape_cast %36 : vector<1x8x256xf32> to vector<8x256xf32>
    %38 = vector.broadcast %35 : vector<1x1xf32> to vector<8x256xf32>
    %39 = arith.mulf %38, %37 : vector<8x256xf32>
    %40 = arith.addf %34, %39 : vector<8x256xf32>
    %41 = vector.extract_strided_slice %23 {offsets = [0, 3], sizes = [1, 1], strides = [1, 1]} : vector<2x8xf32> to vector<1x1xf32>
    %c3 = arith.constant 3 : index
    %c0_21 = arith.constant 0 : index
    %c0_22 = arith.constant 0 : index
    %42 = vector.load %arg6[%c3, %c0_21, %c0_22] : memref<8x8x256xf32, #tpu.memory_space<vmem>>, vector<1x8x256xf32>
    %43 = vector.shape_cast %42 : vector<1x8x256xf32> to vector<8x256xf32>
    %44 = vector.broadcast %41 : vector<1x1xf32> to vector<8x256xf32>
    %45 = arith.mulf %44, %43 : vector<8x256xf32>
    %46 = arith.addf %40, %45 : vector<8x256xf32>
    %47 = vector.extract_strided_slice %23 {offsets = [0, 4], sizes = [1, 1], strides = [1, 1]} : vector<2x8xf32> to vector<1x1xf32>
    %c4 = arith.constant 4 : index
    %c0_23 = arith.constant 0 : index
    %c0_24 = arith.constant 0 : index
    %48 = vector.load %arg6[%c4, %c0_23, %c0_24] : memref<8x8x256xf32, #tpu.memory_space<vmem>>, vector<1x8x256xf32>
    %49 = vector.shape_cast %48 : vector<1x8x256xf32> to vector<8x256xf32>
    %50 = vector.broadcast %47 : vector<1x1xf32> to vector<8x256xf32>
    %51 = arith.mulf %50, %49 : vector<8x256xf32>
    %52 = arith.addf %46, %51 : vector<8x256xf32>
    %53 = vector.extract_strided_slice %23 {offsets = [0, 5], sizes = [1, 1], strides = [1, 1]} : vector<2x8xf32> to vector<1x1xf32>
    %c5 = arith.constant 5 : index
    %c0_25 = arith.constant 0 : index
    %c0_26 = arith.constant 0 : index
    %54 = vector.load %arg6[%c5, %c0_25, %c0_26] : memref<8x8x256xf32, #tpu.memory_space<vmem>>, vector<1x8x256xf32>
    %55 = vector.shape_cast %54 : vector<1x8x256xf32> to vector<8x256xf32>
    %56 = vector.broadcast %53 : vector<1x1xf32> to vector<8x256xf32>
    %57 = arith.mulf %56, %55 : vector<8x256xf32>
    %58 = arith.addf %52, %57 : vector<8x256xf32>
    %59 = vector.extract_strided_slice %23 {offsets = [0, 6], sizes = [1, 1], strides = [1, 1]} : vector<2x8xf32> to vector<1x1xf32>
    %c6 = arith.constant 6 : index
    %c0_27 = arith.constant 0 : index
    %c0_28 = arith.constant 0 : index
    %60 = vector.load %arg6[%c6, %c0_27, %c0_28] : memref<8x8x256xf32, #tpu.memory_space<vmem>>, vector<1x8x256xf32>
    %61 = vector.shape_cast %60 : vector<1x8x256xf32> to vector<8x256xf32>
    %62 = vector.broadcast %59 : vector<1x1xf32> to vector<8x256xf32>
    %63 = arith.mulf %62, %61 : vector<8x256xf32>
    %64 = arith.addf %58, %63 : vector<8x256xf32>
    %65 = vector.extract_strided_slice %23 {offsets = [0, 7], sizes = [1, 1], strides = [1, 1]} : vector<2x8xf32> to vector<1x1xf32>
    %c7 = arith.constant 7 : index
    %c0_29 = arith.constant 0 : index
    %c0_30 = arith.constant 0 : index
    %66 = vector.load %arg6[%c7, %c0_29, %c0_30] : memref<8x8x256xf32, #tpu.memory_space<vmem>>, vector<1x8x256xf32>
    %67 = vector.shape_cast %66 : vector<1x8x256xf32> to vector<8x256xf32>
    %68 = vector.broadcast %65 : vector<1x1xf32> to vector<8x256xf32>
    %69 = arith.mulf %68, %67 : vector<8x256xf32>
    %70 = arith.addf %64, %69 : vector<8x256xf32>
    %c0_31 = arith.constant 0 : index
    %c0_32 = arith.constant 0 : index
    %71 = vector.load %arg7[%c0_31, %c0_32] : memref<256x32xf32, #tpu.memory_space<vmem>>, vector<256x32xf32>
    %cst_33 = arith.constant dense<0.000000e+00> : vector<8x32xf32>
    %72 = tpu.matmul %70, %71, %cst_33 {dimension_numbers = #tpu.dot_dimension_numbers<[1], [0], [0], [1], [0, 0, 1, 1], [], []>} : vector<8x256xf32>, vector<256x32xf32>, vector<8x32xf32> -> vector<8x32xf32>
    %c0_34 = arith.constant 0 : index
    %c0_35 = arith.constant 0 : index
    %73 = vector.load %arg8[%c0_34, %c0_35] : memref<256x32xf32, #tpu.memory_space<vmem>>, vector<256x32xf32>
    %cst_36 = arith.constant dense<0.000000e+00> : vector<8x32xf32>
    %74 = tpu.matmul %70, %73, %cst_36 {dimension_numbers = #tpu.dot_dimension_numbers<[1], [0], [0], [1], [0, 0, 1, 1], [], []>} : vector<8x256xf32>, vector<256x32xf32>, vector<8x32xf32> -> vector<8x32xf32>
    %75 = vector.extract_strided_slice %72 {offsets = [0, 0], sizes = [1, 32], strides = [1, 1]} : vector<8x32xf32> to vector<1x32xf32>
    %76 = vector.extract_strided_slice %74 {offsets = [0, 0], sizes = [1, 32], strides = [1, 1]} : vector<8x32xf32> to vector<1x32xf32>
    %c0_37 = arith.constant 0 : index
    %c0_38 = arith.constant 0 : index
    %c0_39 = arith.constant 0 : index
    %c0_40 = arith.constant 0 : index
    %77 = vector.load %arg11[%c0_37, %c0_38, %c0_39, %c0_40] : memref<2x8x8x32xf32, #tpu.memory_space<vmem>>, vector<1x1x8x32xf32>
    %78 = vector.shape_cast %77 : vector<1x1x8x32xf32> to vector<8x32xf32>
    %c0_41 = arith.constant 0 : index
    %c0_42 = arith.constant 0 : index
    %c0_43 = arith.constant 0 : index
    %c0_44 = arith.constant 0 : index
    %79 = vector.load %arg12[%c0_41, %c0_42, %c0_43, %c0_44] : memref<2x8x8x32xf32, #tpu.memory_space<vmem>>, vector<1x1x8x32xf32>
    %80 = vector.shape_cast %79 : vector<1x1x8x32xf32> to vector<8x32xf32>
    %81 = vector.broadcast %75 : vector<1x32xf32> to vector<8x32xf32>
    %82 = arith.mulf %81, %78 : vector<8x32xf32>
    %83 = vector.broadcast %76 : vector<1x32xf32> to vector<8x32xf32>
    %84 = arith.mulf %83, %80 : vector<8x32xf32>
    %85 = arith.subf %82, %84 : vector<8x32xf32>
    %86 = vector.broadcast %75 : vector<1x32xf32> to vector<8x32xf32>
    %87 = arith.mulf %86, %80 : vector<8x32xf32>
    %88 = vector.broadcast %76 : vector<1x32xf32> to vector<8x32xf32>
    %89 = arith.mulf %88, %78 : vector<8x32xf32>
    %90 = arith.addf %87, %89 : vector<8x32xf32>
    %91 = vector.extract_strided_slice %72 {offsets = [1, 0], sizes = [1, 32], strides = [1, 1]} : vector<8x32xf32> to vector<1x32xf32>
    %92 = vector.extract_strided_slice %74 {offsets = [1, 0], sizes = [1, 32], strides = [1, 1]} : vector<8x32xf32> to vector<1x32xf32>
    %c0_45 = arith.constant 0 : index
    %c1_46 = arith.constant 1 : index
    %c0_47 = arith.constant 0 : index
    %c0_48 = arith.constant 0 : index
    %93 = vector.load %arg11[%c0_45, %c1_46, %c0_47, %c0_48] : memref<2x8x8x32xf32, #tpu.memory_space<vmem>>, vector<1x1x8x32xf32>
    %94 = vector.shape_cast %93 : vector<1x1x8x32xf32> to vector<8x32xf32>
    %c0_49 = arith.constant 0 : index
    %c1_50 = arith.constant 1 : index
    %c0_51 = arith.constant 0 : index
    %c0_52 = arith.constant 0 : index
    %95 = vector.load %arg12[%c0_49, %c1_50, %c0_51, %c0_52] : memref<2x8x8x32xf32, #tpu.memory_space<vmem>>, vector<1x1x8x32xf32>
    %96 = vector.shape_cast %95 : vector<1x1x8x32xf32> to vector<8x32xf32>
    %97 = vector.broadcast %91 : vector<1x32xf32> to vector<8x32xf32>
    %98 = arith.mulf %97, %94 : vector<8x32xf32>
    %99 = vector.broadcast %92 : vector<1x32xf32> to vector<8x32xf32>
    %100 = arith.mulf %99, %96 : vector<8x32xf32>
    %101 = arith.subf %98, %100 : vector<8x32xf32>
    %102 = vector.broadcast %91 : vector<1x32xf32> to vector<8x32xf32>
    %103 = arith.mulf %102, %96 : vector<8x32xf32>
    %104 = vector.broadcast %92 : vector<1x32xf32> to vector<8x32xf32>
    %105 = arith.mulf %104, %94 : vector<8x32xf32>
    %106 = arith.addf %103, %105 : vector<8x32xf32>
    %107 = arith.addf %85, %101 : vector<8x32xf32>
    %108 = arith.addf %90, %106 : vector<8x32xf32>
    %109 = vector.extract_strided_slice %72 {offsets = [2, 0], sizes = [1, 32], strides = [1, 1]} : vector<8x32xf32> to vector<1x32xf32>
    %110 = vector.extract_strided_slice %74 {offsets = [2, 0], sizes = [1, 32], strides = [1, 1]} : vector<8x32xf32> to vector<1x32xf32>
    %c0_53 = arith.constant 0 : index
    %c2_54 = arith.constant 2 : index
    %c0_55 = arith.constant 0 : index
    %c0_56 = arith.constant 0 : index
    %111 = vector.load %arg11[%c0_53, %c2_54, %c0_55, %c0_56] : memref<2x8x8x32xf32, #tpu.memory_space<vmem>>, vector<1x1x8x32xf32>
    %112 = vector.shape_cast %111 : vector<1x1x8x32xf32> to vector<8x32xf32>
    %c0_57 = arith.constant 0 : index
    %c2_58 = arith.constant 2 : index
    %c0_59 = arith.constant 0 : index
    %c0_60 = arith.constant 0 : index
    %113 = vector.load %arg12[%c0_57, %c2_58, %c0_59, %c0_60] : memref<2x8x8x32xf32, #tpu.memory_space<vmem>>, vector<1x1x8x32xf32>
    %114 = vector.shape_cast %113 : vector<1x1x8x32xf32> to vector<8x32xf32>
    %115 = vector.broadcast %109 : vector<1x32xf32> to vector<8x32xf32>
    %116 = arith.mulf %115, %112 : vector<8x32xf32>
    %117 = vector.broadcast %110 : vector<1x32xf32> to vector<8x32xf32>
    %118 = arith.mulf %117, %114 : vector<8x32xf32>
    %119 = arith.subf %116, %118 : vector<8x32xf32>
    %120 = vector.broadcast %109 : vector<1x32xf32> to vector<8x32xf32>
    %121 = arith.mulf %120, %114 : vector<8x32xf32>
    %122 = vector.broadcast %110 : vector<1x32xf32> to vector<8x32xf32>
    %123 = arith.mulf %122, %112 : vector<8x32xf32>
    %124 = arith.addf %121, %123 : vector<8x32xf32>
    %125 = arith.addf %107, %119 : vector<8x32xf32>
    %126 = arith.addf %108, %124 : vector<8x32xf32>
    %127 = vector.extract_strided_slice %72 {offsets = [3, 0], sizes = [1, 32], strides = [1, 1]} : vector<8x32xf32> to vector<1x32xf32>
    %128 = vector.extract_strided_slice %74 {offsets = [3, 0], sizes = [1, 32], strides = [1, 1]} : vector<8x32xf32> to vector<1x32xf32>
    %c0_61 = arith.constant 0 : index
    %c3_62 = arith.constant 3 : index
    %c0_63 = arith.constant 0 : index
    %c0_64 = arith.constant 0 : index
    %129 = vector.load %arg11[%c0_61, %c3_62, %c0_63, %c0_64] : memref<2x8x8x32xf32, #tpu.memory_space<vmem>>, vector<1x1x8x32xf32>
    %130 = vector.shape_cast %129 : vector<1x1x8x32xf32> to vector<8x32xf32>
    %c0_65 = arith.constant 0 : index
    %c3_66 = arith.constant 3 : index
    %c0_67 = arith.constant 0 : index
    %c0_68 = arith.constant 0 : index
    %131 = vector.load %arg12[%c0_65, %c3_66, %c0_67, %c0_68] : memref<2x8x8x32xf32, #tpu.memory_space<vmem>>, vector<1x1x8x32xf32>
    %132 = vector.shape_cast %131 : vector<1x1x8x32xf32> to vector<8x32xf32>
    %133 = vector.broadcast %127 : vector<1x32xf32> to vector<8x32xf32>
    %134 = arith.mulf %133, %130 : vector<8x32xf32>
    %135 = vector.broadcast %128 : vector<1x32xf32> to vector<8x32xf32>
    %136 = arith.mulf %135, %132 : vector<8x32xf32>
    %137 = arith.subf %134, %136 : vector<8x32xf32>
    %138 = vector.broadcast %127 : vector<1x32xf32> to vector<8x32xf32>
    %139 = arith.mulf %138, %132 : vector<8x32xf32>
    %140 = vector.broadcast %128 : vector<1x32xf32> to vector<8x32xf32>
    %141 = arith.mulf %140, %130 : vector<8x32xf32>
    %142 = arith.addf %139, %141 : vector<8x32xf32>
    %143 = arith.addf %125, %137 : vector<8x32xf32>
    %144 = arith.addf %126, %142 : vector<8x32xf32>
    %145 = vector.extract_strided_slice %72 {offsets = [4, 0], sizes = [1, 32], strides = [1, 1]} : vector<8x32xf32> to vector<1x32xf32>
    %146 = vector.extract_strided_slice %74 {offsets = [4, 0], sizes = [1, 32], strides = [1, 1]} : vector<8x32xf32> to vector<1x32xf32>
    %c0_69 = arith.constant 0 : index
    %c4_70 = arith.constant 4 : index
    %c0_71 = arith.constant 0 : index
    %c0_72 = arith.constant 0 : index
    %147 = vector.load %arg11[%c0_69, %c4_70, %c0_71, %c0_72] : memref<2x8x8x32xf32, #tpu.memory_space<vmem>>, vector<1x1x8x32xf32>
    %148 = vector.shape_cast %147 : vector<1x1x8x32xf32> to vector<8x32xf32>
    %c0_73 = arith.constant 0 : index
    %c4_74 = arith.constant 4 : index
    %c0_75 = arith.constant 0 : index
    %c0_76 = arith.constant 0 : index
    %149 = vector.load %arg12[%c0_73, %c4_74, %c0_75, %c0_76] : memref<2x8x8x32xf32, #tpu.memory_space<vmem>>, vector<1x1x8x32xf32>
    %150 = vector.shape_cast %149 : vector<1x1x8x32xf32> to vector<8x32xf32>
    %151 = vector.broadcast %145 : vector<1x32xf32> to vector<8x32xf32>
    %152 = arith.mulf %151, %148 : vector<8x32xf32>
    %153 = vector.broadcast %146 : vector<1x32xf32> to vector<8x32xf32>
    %154 = arith.mulf %153, %150 : vector<8x32xf32>
    %155 = arith.subf %152, %154 : vector<8x32xf32>
    %156 = vector.broadcast %145 : vector<1x32xf32> to vector<8x32xf32>
    %157 = arith.mulf %156, %150 : vector<8x32xf32>
    %158 = vector.broadcast %146 : vector<1x32xf32> to vector<8x32xf32>
    %159 = arith.mulf %158, %148 : vector<8x32xf32>
    %160 = arith.addf %157, %159 : vector<8x32xf32>
    %161 = arith.addf %143, %155 : vector<8x32xf32>
    %162 = arith.addf %144, %160 : vector<8x32xf32>
    %163 = vector.extract_strided_slice %72 {offsets = [5, 0], sizes = [1, 32], strides = [1, 1]} : vector<8x32xf32> to vector<1x32xf32>
    %164 = vector.extract_strided_slice %74 {offsets = [5, 0], sizes = [1, 32], strides = [1, 1]} : vector<8x32xf32> to vector<1x32xf32>
    %c0_77 = arith.constant 0 : index
    %c5_78 = arith.constant 5 : index
    %c0_79 = arith.constant 0 : index
    %c0_80 = arith.constant 0 : index
    %165 = vector.load %arg11[%c0_77, %c5_78, %c0_79, %c0_80] : memref<2x8x8x32xf32, #tpu.memory_space<vmem>>, vector<1x1x8x32xf32>
    %166 = vector.shape_cast %165 : vector<1x1x8x32xf32> to vector<8x32xf32>
    %c0_81 = arith.constant 0 : index
    %c5_82 = arith.constant 5 : index
    %c0_83 = arith.constant 0 : index
    %c0_84 = arith.constant 0 : index
    %167 = vector.load %arg12[%c0_81, %c5_82, %c0_83, %c0_84] : memref<2x8x8x32xf32, #tpu.memory_space<vmem>>, vector<1x1x8x32xf32>
    %168 = vector.shape_cast %167 : vector<1x1x8x32xf32> to vector<8x32xf32>
    %169 = vector.broadcast %163 : vector<1x32xf32> to vector<8x32xf32>
    %170 = arith.mulf %169, %166 : vector<8x32xf32>
    %171 = vector.broadcast %164 : vector<1x32xf32> to vector<8x32xf32>
    %172 = arith.mulf %171, %168 : vector<8x32xf32>
    %173 = arith.subf %170, %172 : vector<8x32xf32>
    %174 = vector.broadcast %163 : vector<1x32xf32> to vector<8x32xf32>
    %175 = arith.mulf %174, %168 : vector<8x32xf32>
    %176 = vector.broadcast %164 : vector<1x32xf32> to vector<8x32xf32>
    %177 = arith.mulf %176, %166 : vector<8x32xf32>
    %178 = arith.addf %175, %177 : vector<8x32xf32>
    %179 = arith.addf %161, %173 : vector<8x32xf32>
    %180 = arith.addf %162, %178 : vector<8x32xf32>
    %181 = vector.extract_strided_slice %72 {offsets = [6, 0], sizes = [1, 32], strides = [1, 1]} : vector<8x32xf32> to vector<1x32xf32>
    %182 = vector.extract_strided_slice %74 {offsets = [6, 0], sizes = [1, 32], strides = [1, 1]} : vector<8x32xf32> to vector<1x32xf32>
    %c0_85 = arith.constant 0 : index
    %c6_86 = arith.constant 6 : index
    %c0_87 = arith.constant 0 : index
    %c0_88 = arith.constant 0 : index
    %183 = vector.load %arg11[%c0_85, %c6_86, %c0_87, %c0_88] : memref<2x8x8x32xf32, #tpu.memory_space<vmem>>, vector<1x1x8x32xf32>
    %184 = vector.shape_cast %183 : vector<1x1x8x32xf32> to vector<8x32xf32>
    %c0_89 = arith.constant 0 : index
    %c6_90 = arith.constant 6 : index
    %c0_91 = arith.constant 0 : index
    %c0_92 = arith.constant 0 : index
    %185 = vector.load %arg12[%c0_89, %c6_90, %c0_91, %c0_92] : memref<2x8x8x32xf32, #tpu.memory_space<vmem>>, vector<1x1x8x32xf32>
    %186 = vector.shape_cast %185 : vector<1x1x8x32xf32> to vector<8x32xf32>
    %187 = vector.broadcast %181 : vector<1x32xf32> to vector<8x32xf32>
    %188 = arith.mulf %187, %184 : vector<8x32xf32>
    %189 = vector.broadcast %182 : vector<1x32xf32> to vector<8x32xf32>
    %190 = arith.mulf %189, %186 : vector<8x32xf32>
    %191 = arith.subf %188, %190 : vector<8x32xf32>
    %192 = vector.broadcast %181 : vector<1x32xf32> to vector<8x32xf32>
    %193 = arith.mulf %192, %186 : vector<8x32xf32>
    %194 = vector.broadcast %182 : vector<1x32xf32> to vector<8x32xf32>
    %195 = arith.mulf %194, %184 : vector<8x32xf32>
    %196 = arith.addf %193, %195 : vector<8x32xf32>
    %197 = arith.addf %179, %191 : vector<8x32xf32>
    %198 = arith.addf %180, %196 : vector<8x32xf32>
    %199 = vector.extract_strided_slice %72 {offsets = [7, 0], sizes = [1, 32], strides = [1, 1]} : vector<8x32xf32> to vector<1x32xf32>
    %200 = vector.extract_strided_slice %74 {offsets = [7, 0], sizes = [1, 32], strides = [1, 1]} : vector<8x32xf32> to vector<1x32xf32>
    %c0_93 = arith.constant 0 : index
    %c7_94 = arith.constant 7 : index
    %c0_95 = arith.constant 0 : index
    %c0_96 = arith.constant 0 : index
    %201 = vector.load %arg11[%c0_93, %c7_94, %c0_95, %c0_96] : memref<2x8x8x32xf32, #tpu.memory_space<vmem>>, vector<1x1x8x32xf32>
    %202 = vector.shape_cast %201 : vector<1x1x8x32xf32> to vector<8x32xf32>
    %c0_97 = arith.constant 0 : index
    %c7_98 = arith.constant 7 : index
    %c0_99 = arith.constant 0 : index
    %c0_100 = arith.constant 0 : index
    %203 = vector.load %arg12[%c0_97, %c7_98, %c0_99, %c0_100] : memref<2x8x8x32xf32, #tpu.memory_space<vmem>>, vector<1x1x8x32xf32>
    %204 = vector.shape_cast %203 : vector<1x1x8x32xf32> to vector<8x32xf32>
    %205 = vector.broadcast %199 : vector<1x32xf32> to vector<8x32xf32>
    %206 = arith.mulf %205, %202 : vector<8x32xf32>
    %207 = vector.broadcast %200 : vector<1x32xf32> to vector<8x32xf32>
    %208 = arith.mulf %207, %204 : vector<8x32xf32>
    %209 = arith.subf %206, %208 : vector<8x32xf32>
    %210 = vector.broadcast %199 : vector<1x32xf32> to vector<8x32xf32>
    %211 = arith.mulf %210, %204 : vector<8x32xf32>
    %212 = vector.broadcast %200 : vector<1x32xf32> to vector<8x32xf32>
    %213 = arith.mulf %212, %202 : vector<8x32xf32>
    %214 = arith.addf %211, %213 : vector<8x32xf32>
    %215 = arith.addf %197, %209 : vector<8x32xf32>
    %216 = arith.addf %198, %214 : vector<8x32xf32>
    %c0_101 = arith.constant 0 : index
    %c0_102 = arith.constant 0 : index
    %217 = vector.load %arg9[%c0_101, %c0_102] : memref<32x256xf32, #tpu.memory_space<vmem>>, vector<32x256xf32>
    %cst_103 = arith.constant dense<0.000000e+00> : vector<8x256xf32>
    %218 = tpu.matmul %215, %217, %cst_103 {dimension_numbers = #tpu.dot_dimension_numbers<[1], [0], [0], [1], [0, 0, 1, 1], [], []>} : vector<8x32xf32>, vector<32x256xf32>, vector<8x256xf32> -> vector<8x256xf32>
    %c0_104 = arith.constant 0 : index
    %c0_105 = arith.constant 0 : index
    %219 = vector.load %arg10[%c0_104, %c0_105] : memref<32x256xf32, #tpu.memory_space<vmem>>, vector<32x256xf32>
    %cst_106 = arith.constant dense<0.000000e+00> : vector<8x256xf32>
    %220 = tpu.matmul %216, %219, %cst_106 {dimension_numbers = #tpu.dot_dimension_numbers<[1], [0], [0], [1], [0, 0, 1, 1], [], []>} : vector<8x32xf32>, vector<32x256xf32>, vector<8x256xf32> -> vector<8x256xf32>
    %221 = arith.addf %218, %220 : vector<8x256xf32>
    %c0_107 = arith.constant 0 : index
    %c0_108 = arith.constant 0 : index
    %c0_109 = arith.constant 0 : index
    %222 = vector.load %arg13[%c0_107, %c0_108, %c0_109] : memref<2x8x8xf32, #tpu.memory_space<vmem>>, vector<1x8x8xf32>
    %223 = vector.shape_cast %222 : vector<1x8x8xf32> to vector<8x8xf32>
    %cst_110 = arith.constant dense<0.000000e+00> : vector<8x256xf32>
    %224 = tpu.matmul %223, %70, %cst_110 {dimension_numbers = #tpu.dot_dimension_numbers<[1], [0], [0], [1], [0, 0, 1, 1], [], []>} : vector<8x8xf32>, vector<8x256xf32>, vector<8x256xf32> -> vector<8x256xf32>
    %c0_111 = arith.constant 0 : index
    %c0_112 = arith.constant 0 : index
    %c0_113 = arith.constant 0 : index
    %225 = vector.load %arg14[%c0_111, %c0_112, %c0_113] : memref<2x8x1xf32, #tpu.memory_space<vmem>>, vector<1x8x1xf32>
    %226 = vector.shape_cast %225 : vector<1x8x1xf32> to vector<8x1xf32>
    %227 = vector.broadcast %226 : vector<8x1xf32> to vector<8x256xf32>
    %228 = arith.addf %224, %227 : vector<8x256xf32>
    %229 = arith.addf %228, %221 : vector<8x256xf32>
    %230 = arith.mulf %229, %229 : vector<8x256xf32>
    %231 = arith.mulf %229, %230 : vector<8x256xf32>
    %cst_114 = arith.constant 4.471500e-02 : f32
    %232 = vector.broadcast %cst_114 : f32 to vector<8x256xf32>
    %233 = arith.mulf %232, %231 : vector<8x256xf32>
    %234 = arith.addf %229, %233 : vector<8x256xf32>
    %cst_115 = arith.constant 0.797884583 : f32
    %235 = vector.broadcast %cst_115 : f32 to vector<8x256xf32>
    %236 = arith.mulf %235, %234 : vector<8x256xf32>
    %237 = math.tanh %236 : vector<8x256xf32>
    %cst_116 = arith.constant 1.000000e+00 : f32
    %238 = vector.broadcast %cst_116 : f32 to vector<8x256xf32>
    %239 = arith.addf %238, %237 : vector<8x256xf32>
    %cst_117 = arith.constant 5.000000e-01 : f32
    %240 = vector.broadcast %cst_117 : f32 to vector<8x256xf32>
    %241 = arith.mulf %240, %239 : vector<8x256xf32>
    %242 = arith.mulf %229, %241 : vector<8x256xf32>
    %c0_118 = arith.constant 0 : index
    %c0_119 = arith.constant 0 : index
    %243 = vector.load %arg7[%c0_118, %c0_119] : memref<256x32xf32, #tpu.memory_space<vmem>>, vector<256x32xf32>
    %cst_120 = arith.constant dense<0.000000e+00> : vector<8x32xf32>
    %244 = tpu.matmul %242, %243, %cst_120 {dimension_numbers = #tpu.dot_dimension_numbers<[1], [0], [0], [1], [0, 0, 1, 1], [], []>} : vector<8x256xf32>, vector<256x32xf32>, vector<8x32xf32> -> vector<8x32xf32>
    %c0_121 = arith.constant 0 : index
    %c0_122 = arith.constant 0 : index
    %245 = vector.load %arg8[%c0_121, %c0_122] : memref<256x32xf32, #tpu.memory_space<vmem>>, vector<256x32xf32>
    %cst_123 = arith.constant dense<0.000000e+00> : vector<8x32xf32>
    %246 = tpu.matmul %242, %245, %cst_123 {dimension_numbers = #tpu.dot_dimension_numbers<[1], [0], [0], [1], [0, 0, 1, 1], [], []>} : vector<8x256xf32>, vector<256x32xf32>, vector<8x32xf32> -> vector<8x32xf32>
    %247 = vector.extract_strided_slice %244 {offsets = [0, 0], sizes = [1, 32], strides = [1, 1]} : vector<8x32xf32> to vector<1x32xf32>
    %248 = vector.extract_strided_slice %246 {offsets = [0, 0], sizes = [1, 32], strides = [1, 1]} : vector<8x32xf32> to vector<1x32xf32>
    %c1_124 = arith.constant 1 : index
    %c0_125 = arith.constant 0 : index
    %c0_126 = arith.constant 0 : index
    %c0_127 = arith.constant 0 : index
    %249 = vector.load %arg11[%c1_124, %c0_125, %c0_126, %c0_127] : memref<2x8x8x32xf32, #tpu.memory_space<vmem>>, vector<1x1x8x32xf32>
    %250 = vector.shape_cast %249 : vector<1x1x8x32xf32> to vector<8x32xf32>
    %c1_128 = arith.constant 1 : index
    %c0_129 = arith.constant 0 : index
    %c0_130 = arith.constant 0 : index
    %c0_131 = arith.constant 0 : index
    %251 = vector.load %arg12[%c1_128, %c0_129, %c0_130, %c0_131] : memref<2x8x8x32xf32, #tpu.memory_space<vmem>>, vector<1x1x8x32xf32>
    %252 = vector.shape_cast %251 : vector<1x1x8x32xf32> to vector<8x32xf32>
    %253 = vector.broadcast %247 : vector<1x32xf32> to vector<8x32xf32>
    %254 = arith.mulf %253, %250 : vector<8x32xf32>
    %255 = vector.broadcast %248 : vector<1x32xf32> to vector<8x32xf32>
    %256 = arith.mulf %255, %252 : vector<8x32xf32>
    %257 = arith.subf %254, %256 : vector<8x32xf32>
    %258 = vector.broadcast %247 : vector<1x32xf32> to vector<8x32xf32>
    %259 = arith.mulf %258, %252 : vector<8x32xf32>
    %260 = vector.broadcast %248 : vector<1x32xf32> to vector<8x32xf32>
    %261 = arith.mulf %260, %250 : vector<8x32xf32>
    %262 = arith.addf %259, %261 : vector<8x32xf32>
    %263 = vector.extract_strided_slice %244 {offsets = [1, 0], sizes = [1, 32], strides = [1, 1]} : vector<8x32xf32> to vector<1x32xf32>
    %264 = vector.extract_strided_slice %246 {offsets = [1, 0], sizes = [1, 32], strides = [1, 1]} : vector<8x32xf32> to vector<1x32xf32>
    %c1_132 = arith.constant 1 : index
    %c1_133 = arith.constant 1 : index
    %c0_134 = arith.constant 0 : index
    %c0_135 = arith.constant 0 : index
    %265 = vector.load %arg11[%c1_132, %c1_133, %c0_134, %c0_135] : memref<2x8x8x32xf32, #tpu.memory_space<vmem>>, vector<1x1x8x32xf32>
    %266 = vector.shape_cast %265 : vector<1x1x8x32xf32> to vector<8x32xf32>
    %c1_136 = arith.constant 1 : index
    %c1_137 = arith.constant 1 : index
    %c0_138 = arith.constant 0 : index
    %c0_139 = arith.constant 0 : index
    %267 = vector.load %arg12[%c1_136, %c1_137, %c0_138, %c0_139] : memref<2x8x8x32xf32, #tpu.memory_space<vmem>>, vector<1x1x8x32xf32>
    %268 = vector.shape_cast %267 : vector<1x1x8x32xf32> to vector<8x32xf32>
    %269 = vector.broadcast %263 : vector<1x32xf32> to vector<8x32xf32>
    %270 = arith.mulf %269, %266 : vector<8x32xf32>
    %271 = vector.broadcast %264 : vector<1x32xf32> to vector<8x32xf32>
    %272 = arith.mulf %271, %268 : vector<8x32xf32>
    %273 = arith.subf %270, %272 : vector<8x32xf32>
    %274 = vector.broadcast %263 : vector<1x32xf32> to vector<8x32xf32>
    %275 = arith.mulf %274, %268 : vector<8x32xf32>
    %276 = vector.broadcast %264 : vector<1x32xf32> to vector<8x32xf32>
    %277 = arith.mulf %276, %266 : vector<8x32xf32>
    %278 = arith.addf %275, %277 : vector<8x32xf32>
    %279 = arith.addf %257, %273 : vector<8x32xf32>
    %280 = arith.addf %262, %278 : vector<8x32xf32>
    %281 = vector.extract_strided_slice %244 {offsets = [2, 0], sizes = [1, 32], strides = [1, 1]} : vector<8x32xf32> to vector<1x32xf32>
    %282 = vector.extract_strided_slice %246 {offsets = [2, 0], sizes = [1, 32], strides = [1, 1]} : vector<8x32xf32> to vector<1x32xf32>
    %c1_140 = arith.constant 1 : index
    %c2_141 = arith.constant 2 : index
    %c0_142 = arith.constant 0 : index
    %c0_143 = arith.constant 0 : index
    %283 = vector.load %arg11[%c1_140, %c2_141, %c0_142, %c0_143] : memref<2x8x8x32xf32, #tpu.memory_space<vmem>>, vector<1x1x8x32xf32>
    %284 = vector.shape_cast %283 : vector<1x1x8x32xf32> to vector<8x32xf32>
    %c1_144 = arith.constant 1 : index
    %c2_145 = arith.constant 2 : index
    %c0_146 = arith.constant 0 : index
    %c0_147 = arith.constant 0 : index
    %285 = vector.load %arg12[%c1_144, %c2_145, %c0_146, %c0_147] : memref<2x8x8x32xf32, #tpu.memory_space<vmem>>, vector<1x1x8x32xf32>
    %286 = vector.shape_cast %285 : vector<1x1x8x32xf32> to vector<8x32xf32>
    %287 = vector.broadcast %281 : vector<1x32xf32> to vector<8x32xf32>
    %288 = arith.mulf %287, %284 : vector<8x32xf32>
    %289 = vector.broadcast %282 : vector<1x32xf32> to vector<8x32xf32>
    %290 = arith.mulf %289, %286 : vector<8x32xf32>
    %291 = arith.subf %288, %290 : vector<8x32xf32>
    %292 = vector.broadcast %281 : vector<1x32xf32> to vector<8x32xf32>
    %293 = arith.mulf %292, %286 : vector<8x32xf32>
    %294 = vector.broadcast %282 : vector<1x32xf32> to vector<8x32xf32>
    %295 = arith.mulf %294, %284 : vector<8x32xf32>
    %296 = arith.addf %293, %295 : vector<8x32xf32>
    %297 = arith.addf %279, %291 : vector<8x32xf32>
    %298 = arith.addf %280, %296 : vector<8x32xf32>
    %299 = vector.extract_strided_slice %244 {offsets = [3, 0], sizes = [1, 32], strides = [1, 1]} : vector<8x32xf32> to vector<1x32xf32>
    %300 = vector.extract_strided_slice %246 {offsets = [3, 0], sizes = [1, 32], strides = [1, 1]} : vector<8x32xf32> to vector<1x32xf32>
    %c1_148 = arith.constant 1 : index
    %c3_149 = arith.constant 3 : index
    %c0_150 = arith.constant 0 : index
    %c0_151 = arith.constant 0 : index
    %301 = vector.load %arg11[%c1_148, %c3_149, %c0_150, %c0_151] : memref<2x8x8x32xf32, #tpu.memory_space<vmem>>, vector<1x1x8x32xf32>
    %302 = vector.shape_cast %301 : vector<1x1x8x32xf32> to vector<8x32xf32>
    %c1_152 = arith.constant 1 : index
    %c3_153 = arith.constant 3 : index
    %c0_154 = arith.constant 0 : index
    %c0_155 = arith.constant 0 : index
    %303 = vector.load %arg12[%c1_152, %c3_153, %c0_154, %c0_155] : memref<2x8x8x32xf32, #tpu.memory_space<vmem>>, vector<1x1x8x32xf32>
    %304 = vector.shape_cast %303 : vector<1x1x8x32xf32> to vector<8x32xf32>
    %305 = vector.broadcast %299 : vector<1x32xf32> to vector<8x32xf32>
    %306 = arith.mulf %305, %302 : vector<8x32xf32>
    %307 = vector.broadcast %300 : vector<1x32xf32> to vector<8x32xf32>
    %308 = arith.mulf %307, %304 : vector<8x32xf32>
    %309 = arith.subf %306, %308 : vector<8x32xf32>
    %310 = vector.broadcast %299 : vector<1x32xf32> to vector<8x32xf32>
    %311 = arith.mulf %310, %304 : vector<8x32xf32>
    %312 = vector.broadcast %300 : vector<1x32xf32> to vector<8x32xf32>
    %313 = arith.mulf %312, %302 : vector<8x32xf32>
    %314 = arith.addf %311, %313 : vector<8x32xf32>
    %315 = arith.addf %297, %309 : vector<8x32xf32>
    %316 = arith.addf %298, %314 : vector<8x32xf32>
    %317 = vector.extract_strided_slice %244 {offsets = [4, 0], sizes = [1, 32], strides = [1, 1]} : vector<8x32xf32> to vector<1x32xf32>
    %318 = vector.extract_strided_slice %246 {offsets = [4, 0], sizes = [1, 32], strides = [1, 1]} : vector<8x32xf32> to vector<1x32xf32>
    %c1_156 = arith.constant 1 : index
    %c4_157 = arith.constant 4 : index
    %c0_158 = arith.constant 0 : index
    %c0_159 = arith.constant 0 : index
    %319 = vector.load %arg11[%c1_156, %c4_157, %c0_158, %c0_159] : memref<2x8x8x32xf32, #tpu.memory_space<vmem>>, vector<1x1x8x32xf32>
    %320 = vector.shape_cast %319 : vector<1x1x8x32xf32> to vector<8x32xf32>
    %c1_160 = arith.constant 1 : index
    %c4_161 = arith.constant 4 : index
    %c0_162 = arith.constant 0 : index
    %c0_163 = arith.constant 0 : index
    %321 = vector.load %arg12[%c1_160, %c4_161, %c0_162, %c0_163] : memref<2x8x8x32xf32, #tpu.memory_space<vmem>>, vector<1x1x8x32xf32>
    %322 = vector.shape_cast %321 : vector<1x1x8x32xf32> to vector<8x32xf32>
    %323 = vector.broadcast %317 : vector<1x32xf32> to vector<8x32xf32>
    %324 = arith.mulf %323, %320 : vector<8x32xf32>
    %325 = vector.broadcast %318 : vector<1x32xf32> to vector<8x32xf32>
    %326 = arith.mulf %325, %322 : vector<8x32xf32>
    %327 = arith.subf %324, %326 : vector<8x32xf32>
    %328 = vector.broadcast %317 : vector<1x32xf32> to vector<8x32xf32>
    %329 = arith.mulf %328, %322 : vector<8x32xf32>
    %330 = vector.broadcast %318 : vector<1x32xf32> to vector<8x32xf32>
    %331 = arith.mulf %330, %320 : vector<8x32xf32>
    %332 = arith.addf %329, %331 : vector<8x32xf32>
    %333 = arith.addf %315, %327 : vector<8x32xf32>
    %334 = arith.addf %316, %332 : vector<8x32xf32>
    %335 = vector.extract_strided_slice %244 {offsets = [5, 0], sizes = [1, 32], strides = [1, 1]} : vector<8x32xf32> to vector<1x32xf32>
    %336 = vector.extract_strided_slice %246 {offsets = [5, 0], sizes = [1, 32], strides = [1, 1]} : vector<8x32xf32> to vector<1x32xf32>
    %c1_164 = arith.constant 1 : index
    %c5_165 = arith.constant 5 : index
    %c0_166 = arith.constant 0 : index
    %c0_167 = arith.constant 0 : index
    %337 = vector.load %arg11[%c1_164, %c5_165, %c0_166, %c0_167] : memref<2x8x8x32xf32, #tpu.memory_space<vmem>>, vector<1x1x8x32xf32>
    %338 = vector.shape_cast %337 : vector<1x1x8x32xf32> to vector<8x32xf32>
    %c1_168 = arith.constant 1 : index
    %c5_169 = arith.constant 5 : index
    %c0_170 = arith.constant 0 : index
    %c0_171 = arith.constant 0 : index
    %339 = vector.load %arg12[%c1_168, %c5_169, %c0_170, %c0_171] : memref<2x8x8x32xf32, #tpu.memory_space<vmem>>, vector<1x1x8x32xf32>
    %340 = vector.shape_cast %339 : vector<1x1x8x32xf32> to vector<8x32xf32>
    %341 = vector.broadcast %335 : vector<1x32xf32> to vector<8x32xf32>
    %342 = arith.mulf %341, %338 : vector<8x32xf32>
    %343 = vector.broadcast %336 : vector<1x32xf32> to vector<8x32xf32>
    %344 = arith.mulf %343, %340 : vector<8x32xf32>
    %345 = arith.subf %342, %344 : vector<8x32xf32>
    %346 = vector.broadcast %335 : vector<1x32xf32> to vector<8x32xf32>
    %347 = arith.mulf %346, %340 : vector<8x32xf32>
    %348 = vector.broadcast %336 : vector<1x32xf32> to vector<8x32xf32>
    %349 = arith.mulf %348, %338 : vector<8x32xf32>
    %350 = arith.addf %347, %349 : vector<8x32xf32>
    %351 = arith.addf %333, %345 : vector<8x32xf32>
    %352 = arith.addf %334, %350 : vector<8x32xf32>
    %353 = vector.extract_strided_slice %244 {offsets = [6, 0], sizes = [1, 32], strides = [1, 1]} : vector<8x32xf32> to vector<1x32xf32>
    %354 = vector.extract_strided_slice %246 {offsets = [6, 0], sizes = [1, 32], strides = [1, 1]} : vector<8x32xf32> to vector<1x32xf32>
    %c1_172 = arith.constant 1 : index
    %c6_173 = arith.constant 6 : index
    %c0_174 = arith.constant 0 : index
    %c0_175 = arith.constant 0 : index
    %355 = vector.load %arg11[%c1_172, %c6_173, %c0_174, %c0_175] : memref<2x8x8x32xf32, #tpu.memory_space<vmem>>, vector<1x1x8x32xf32>
    %356 = vector.shape_cast %355 : vector<1x1x8x32xf32> to vector<8x32xf32>
    %c1_176 = arith.constant 1 : index
    %c6_177 = arith.constant 6 : index
    %c0_178 = arith.constant 0 : index
    %c0_179 = arith.constant 0 : index
    %357 = vector.load %arg12[%c1_176, %c6_177, %c0_178, %c0_179] : memref<2x8x8x32xf32, #tpu.memory_space<vmem>>, vector<1x1x8x32xf32>
    %358 = vector.shape_cast %357 : vector<1x1x8x32xf32> to vector<8x32xf32>
    %359 = vector.broadcast %353 : vector<1x32xf32> to vector<8x32xf32>
    %360 = arith.mulf %359, %356 : vector<8x32xf32>
    %361 = vector.broadcast %354 : vector<1x32xf32> to vector<8x32xf32>
    %362 = arith.mulf %361, %358 : vector<8x32xf32>
    %363 = arith.subf %360, %362 : vector<8x32xf32>
    %364 = vector.broadcast %353 : vector<1x32xf32> to vector<8x32xf32>
    %365 = arith.mulf %364, %358 : vector<8x32xf32>
    %366 = vector.broadcast %354 : vector<1x32xf32> to vector<8x32xf32>
    %367 = arith.mulf %366, %356 : vector<8x32xf32>
    %368 = arith.addf %365, %367 : vector<8x32xf32>
    %369 = arith.addf %351, %363 : vector<8x32xf32>
    %370 = arith.addf %352, %368 : vector<8x32xf32>
    %371 = vector.extract_strided_slice %244 {offsets = [7, 0], sizes = [1, 32], strides = [1, 1]} : vector<8x32xf32> to vector<1x32xf32>
    %372 = vector.extract_strided_slice %246 {offsets = [7, 0], sizes = [1, 32], strides = [1, 1]} : vector<8x32xf32> to vector<1x32xf32>
    %c1_180 = arith.constant 1 : index
    %c7_181 = arith.constant 7 : index
    %c0_182 = arith.constant 0 : index
    %c0_183 = arith.constant 0 : index
    %373 = vector.load %arg11[%c1_180, %c7_181, %c0_182, %c0_183] : memref<2x8x8x32xf32, #tpu.memory_space<vmem>>, vector<1x1x8x32xf32>
    %374 = vector.shape_cast %373 : vector<1x1x8x32xf32> to vector<8x32xf32>
    %c1_184 = arith.constant 1 : index
    %c7_185 = arith.constant 7 : index
    %c0_186 = arith.constant 0 : index
    %c0_187 = arith.constant 0 : index
    %375 = vector.load %arg12[%c1_184, %c7_185, %c0_186, %c0_187] : memref<2x8x8x32xf32, #tpu.memory_space<vmem>>, vector<1x1x8x32xf32>
    %376 = vector.shape_cast %375 : vector<1x1x8x32xf32> to vector<8x32xf32>
    %377 = vector.broadcast %371 : vector<1x32xf32> to vector<8x32xf32>
    %378 = arith.mulf %377, %374 : vector<8x32xf32>
    %379 = vector.broadcast %372 : vector<1x32xf32> to vector<8x32xf32>
    %380 = arith.mulf %379, %376 : vector<8x32xf32>
    %381 = arith.subf %378, %380 : vector<8x32xf32>
    %382 = vector.broadcast %371 : vector<1x32xf32> to vector<8x32xf32>
    %383 = arith.mulf %382, %376 : vector<8x32xf32>
    %384 = vector.broadcast %372 : vector<1x32xf32> to vector<8x32xf32>
    %385 = arith.mulf %384, %374 : vector<8x32xf32>
    %386 = arith.addf %383, %385 : vector<8x32xf32>
    %387 = arith.addf %369, %381 : vector<8x32xf32>
    %388 = arith.addf %370, %386 : vector<8x32xf32>
    %c0_188 = arith.constant 0 : index
    %c0_189 = arith.constant 0 : index
    %389 = vector.load %arg9[%c0_188, %c0_189] : memref<32x256xf32, #tpu.memory_space<vmem>>, vector<32x256xf32>
    %cst_190 = arith.constant dense<0.000000e+00> : vector<8x256xf32>
    %390 = tpu.matmul %387, %389, %cst_190 {dimension_numbers = #tpu.dot_dimension_numbers<[1], [0], [0], [1], [0, 0, 1, 1], [], []>} : vector<8x32xf32>, vector<32x256xf32>, vector<8x256xf32> -> vector<8x256xf32>
    %c0_191 = arith.constant 0 : index
    %c0_192 = arith.constant 0 : index
    %391 = vector.load %arg10[%c0_191, %c0_192] : memref<32x256xf32, #tpu.memory_space<vmem>>, vector<32x256xf32>
    %cst_193 = arith.constant dense<0.000000e+00> : vector<8x256xf32>
    %392 = tpu.matmul %388, %391, %cst_193 {dimension_numbers = #tpu.dot_dimension_numbers<[1], [0], [0], [1], [0, 0, 1, 1], [], []>} : vector<8x32xf32>, vector<32x256xf32>, vector<8x256xf32> -> vector<8x256xf32>
    %393 = arith.addf %390, %392 : vector<8x256xf32>
    %c1_194 = arith.constant 1 : index
    %c0_195 = arith.constant 0 : index
    %c0_196 = arith.constant 0 : index
    %394 = vector.load %arg13[%c1_194, %c0_195, %c0_196] : memref<2x8x8xf32, #tpu.memory_space<vmem>>, vector<1x8x8xf32>
    %395 = vector.shape_cast %394 : vector<1x8x8xf32> to vector<8x8xf32>
    %cst_197 = arith.constant dense<0.000000e+00> : vector<8x256xf32>
    %396 = tpu.matmul %395, %242, %cst_197 {dimension_numbers = #tpu.dot_dimension_numbers<[1], [0], [0], [1], [0, 0, 1, 1], [], []>} : vector<8x8xf32>, vector<8x256xf32>, vector<8x256xf32> -> vector<8x256xf32>
    %c1_198 = arith.constant 1 : index
    %c0_199 = arith.constant 0 : index
    %c0_200 = arith.constant 0 : index
    %397 = vector.load %arg14[%c1_198, %c0_199, %c0_200] : memref<2x8x1xf32, #tpu.memory_space<vmem>>, vector<1x8x1xf32>
    %398 = vector.shape_cast %397 : vector<1x8x1xf32> to vector<8x1xf32>
    %399 = vector.broadcast %398 : vector<8x1xf32> to vector<8x256xf32>
    %400 = arith.addf %396, %399 : vector<8x256xf32>
    %401 = arith.addf %400, %393 : vector<8x256xf32>
    %402 = arith.mulf %401, %401 : vector<8x256xf32>
    %403 = arith.mulf %401, %402 : vector<8x256xf32>
    %cst_201 = arith.constant 4.471500e-02 : f32
    %404 = vector.broadcast %cst_201 : f32 to vector<8x256xf32>
    %405 = arith.mulf %404, %403 : vector<8x256xf32>
    %406 = arith.addf %401, %405 : vector<8x256xf32>
    %cst_202 = arith.constant 0.797884583 : f32
    %407 = vector.broadcast %cst_202 : f32 to vector<8x256xf32>
    %408 = arith.mulf %407, %406 : vector<8x256xf32>
    %409 = math.tanh %408 : vector<8x256xf32>
    %cst_203 = arith.constant 1.000000e+00 : f32
    %410 = vector.broadcast %cst_203 : f32 to vector<8x256xf32>
    %411 = arith.addf %410, %409 : vector<8x256xf32>
    %cst_204 = arith.constant 5.000000e-01 : f32
    %412 = vector.broadcast %cst_204 : f32 to vector<8x256xf32>
    %413 = arith.mulf %412, %411 : vector<8x256xf32>
    %414 = arith.mulf %401, %413 : vector<8x256xf32>
    %c0_205 = arith.constant 0 : index
    %c0_206 = arith.constant 0 : index
    %c0_207 = arith.constant 0 : index
    %415 = vector.load %arg15[%c0_205, %c0_206, %c0_207] : memref<8x8x256xf32, #tpu.memory_space<vmem>>, vector<1x8x256xf32>
    %416 = vector.shape_cast %415 : vector<1x8x256xf32> to vector<8x256xf32>
    %417 = vector.extract_strided_slice %414 {offsets = [0, 0], sizes = [1, 256], strides = [1, 1]} : vector<8x256xf32> to vector<1x256xf32>
    %418 = vector.broadcast %417 : vector<1x256xf32> to vector<8x256xf32>
    %419 = arith.mulf %416, %418 : vector<8x256xf32>
    %cst_208 = arith.constant dense<0.000000e+00> : vector<8xf32>
    %420 = vector.multi_reduction <add>, %419, %cst_208 [1] : vector<8x256xf32> to vector<8xf32>
    %421 = vector.shape_cast %420 : vector<8xf32> to vector<8x1xf32>
    %c1_209 = arith.constant 1 : index
    %c0_210 = arith.constant 0 : index
    %c0_211 = arith.constant 0 : index
    %422 = vector.load %arg15[%c1_209, %c0_210, %c0_211] : memref<8x8x256xf32, #tpu.memory_space<vmem>>, vector<1x8x256xf32>
    %423 = vector.shape_cast %422 : vector<1x8x256xf32> to vector<8x256xf32>
    %424 = vector.extract_strided_slice %414 {offsets = [1, 0], sizes = [1, 256], strides = [1, 1]} : vector<8x256xf32> to vector<1x256xf32>
    %425 = vector.broadcast %424 : vector<1x256xf32> to vector<8x256xf32>
    %426 = arith.mulf %423, %425 : vector<8x256xf32>
    %cst_212 = arith.constant dense<0.000000e+00> : vector<8xf32>
    %427 = vector.multi_reduction <add>, %426, %cst_212 [1] : vector<8x256xf32> to vector<8xf32>
    %428 = vector.shape_cast %427 : vector<8xf32> to vector<8x1xf32>
    %429 = arith.addf %421, %428 : vector<8x1xf32>
    %c2_213 = arith.constant 2 : index
    %c0_214 = arith.constant 0 : index
    %c0_215 = arith.constant 0 : index
    %430 = vector.load %arg15[%c2_213, %c0_214, %c0_215] : memref<8x8x256xf32, #tpu.memory_space<vmem>>, vector<1x8x256xf32>
    %431 = vector.shape_cast %430 : vector<1x8x256xf32> to vector<8x256xf32>
    %432 = vector.extract_strided_slice %414 {offsets = [2, 0], sizes = [1, 256], strides = [1, 1]} : vector<8x256xf32> to vector<1x256xf32>
    %433 = vector.broadcast %432 : vector<1x256xf32> to vector<8x256xf32>
    %434 = arith.mulf %431, %433 : vector<8x256xf32>
    %cst_216 = arith.constant dense<0.000000e+00> : vector<8xf32>
    %435 = vector.multi_reduction <add>, %434, %cst_216 [1] : vector<8x256xf32> to vector<8xf32>
    %436 = vector.shape_cast %435 : vector<8xf32> to vector<8x1xf32>
    %437 = arith.addf %429, %436 : vector<8x1xf32>
    %c3_217 = arith.constant 3 : index
    %c0_218 = arith.constant 0 : index
    %c0_219 = arith.constant 0 : index
    %438 = vector.load %arg15[%c3_217, %c0_218, %c0_219] : memref<8x8x256xf32, #tpu.memory_space<vmem>>, vector<1x8x256xf32>
    %439 = vector.shape_cast %438 : vector<1x8x256xf32> to vector<8x256xf32>
    %440 = vector.extract_strided_slice %414 {offsets = [3, 0], sizes = [1, 256], strides = [1, 1]} : vector<8x256xf32> to vector<1x256xf32>
    %441 = vector.broadcast %440 : vector<1x256xf32> to vector<8x256xf32>
    %442 = arith.mulf %439, %441 : vector<8x256xf32>
    %cst_220 = arith.constant dense<0.000000e+00> : vector<8xf32>
    %443 = vector.multi_reduction <add>, %442, %cst_220 [1] : vector<8x256xf32> to vector<8xf32>
    %444 = vector.shape_cast %443 : vector<8xf32> to vector<8x1xf32>
    %445 = arith.addf %437, %444 : vector<8x1xf32>
    %c4_221 = arith.constant 4 : index
    %c0_222 = arith.constant 0 : index
    %c0_223 = arith.constant 0 : index
    %446 = vector.load %arg15[%c4_221, %c0_222, %c0_223] : memref<8x8x256xf32, #tpu.memory_space<vmem>>, vector<1x8x256xf32>
    %447 = vector.shape_cast %446 : vector<1x8x256xf32> to vector<8x256xf32>
    %448 = vector.extract_strided_slice %414 {offsets = [4, 0], sizes = [1, 256], strides = [1, 1]} : vector<8x256xf32> to vector<1x256xf32>
    %449 = vector.broadcast %448 : vector<1x256xf32> to vector<8x256xf32>
    %450 = arith.mulf %447, %449 : vector<8x256xf32>
    %cst_224 = arith.constant dense<0.000000e+00> : vector<8xf32>
    %451 = vector.multi_reduction <add>, %450, %cst_224 [1] : vector<8x256xf32> to vector<8xf32>
    %452 = vector.shape_cast %451 : vector<8xf32> to vector<8x1xf32>
    %453 = arith.addf %445, %452 : vector<8x1xf32>
    %c5_225 = arith.constant 5 : index
    %c0_226 = arith.constant 0 : index
    %c0_227 = arith.constant 0 : index
    %454 = vector.load %arg15[%c5_225, %c0_226, %c0_227] : memref<8x8x256xf32, #tpu.memory_space<vmem>>, vector<1x8x256xf32>
    %455 = vector.shape_cast %454 : vector<1x8x256xf32> to vector<8x256xf32>
    %456 = vector.extract_strided_slice %414 {offsets = [5, 0], sizes = [1, 256], strides = [1, 1]} : vector<8x256xf32> to vector<1x256xf32>
    %457 = vector.broadcast %456 : vector<1x256xf32> to vector<8x256xf32>
    %458 = arith.mulf %455, %457 : vector<8x256xf32>
    %cst_228 = arith.constant dense<0.000000e+00> : vector<8xf32>
    %459 = vector.multi_reduction <add>, %458, %cst_228 [1] : vector<8x256xf32> to vector<8xf32>
    %460 = vector.shape_cast %459 : vector<8xf32> to vector<8x1xf32>
    %461 = arith.addf %453, %460 : vector<8x1xf32>
    %c6_229 = arith.constant 6 : index
    %c0_230 = arith.constant 0 : index
    %c0_231 = arith.constant 0 : index
    %462 = vector.load %arg15[%c6_229, %c0_230, %c0_231] : memref<8x8x256xf32, #tpu.memory_space<vmem>>, vector<1x8x256xf32>
    %463 = vector.shape_cast %462 : vector<1x8x256xf32> to vector<8x256xf32>
    %464 = vector.extract_strided_slice %414 {offsets = [6, 0], sizes = [1, 256], strides = [1, 1]} : vector<8x256xf32> to vector<1x256xf32>
    %465 = vector.broadcast %464 : vector<1x256xf32> to vector<8x256xf32>
    %466 = arith.mulf %463, %465 : vector<8x256xf32>
    %cst_232 = arith.constant dense<0.000000e+00> : vector<8xf32>
    %467 = vector.multi_reduction <add>, %466, %cst_232 [1] : vector<8x256xf32> to vector<8xf32>
    %468 = vector.shape_cast %467 : vector<8xf32> to vector<8x1xf32>
    %469 = arith.addf %461, %468 : vector<8x1xf32>
    %c7_233 = arith.constant 7 : index
    %c0_234 = arith.constant 0 : index
    %c0_235 = arith.constant 0 : index
    %470 = vector.load %arg15[%c7_233, %c0_234, %c0_235] : memref<8x8x256xf32, #tpu.memory_space<vmem>>, vector<1x8x256xf32>
    %471 = vector.shape_cast %470 : vector<1x8x256xf32> to vector<8x256xf32>
    %472 = vector.extract_strided_slice %414 {offsets = [7, 0], sizes = [1, 256], strides = [1, 1]} : vector<8x256xf32> to vector<1x256xf32>
    %473 = vector.broadcast %472 : vector<1x256xf32> to vector<8x256xf32>
    %474 = arith.mulf %471, %473 : vector<8x256xf32>
    %cst_236 = arith.constant dense<0.000000e+00> : vector<8xf32>
    %475 = vector.multi_reduction <add>, %474, %cst_236 [1] : vector<8x256xf32> to vector<8xf32>
    %476 = vector.shape_cast %475 : vector<8xf32> to vector<8x1xf32>
    %477 = arith.addf %469, %476 : vector<8x1xf32>
    %c0_237 = arith.constant 0 : index
    %c0_238 = arith.constant 0 : index
    %478 = vector.load %arg16[%c0_237, %c0_238] : memref<32x8xf32, #tpu.memory_space<vmem>>, vector<32x8xf32>
    %cst_239 = arith.constant dense<0.000000e+00> : vector<32x256xf32>
    %479 = tpu.matmul %478, %414, %cst_239 {dimension_numbers = #tpu.dot_dimension_numbers<[1], [0], [0], [1], [0, 0, 1, 1], [], []>} : vector<32x8xf32>, vector<8x256xf32>, vector<32x256xf32> -> vector<32x256xf32>
    %c0_240 = arith.constant 0 : index
    %c0_241 = arith.constant 0 : index
    %480 = vector.load %arg17[%c0_240, %c0_241] : memref<32x1xf32, #tpu.memory_space<vmem>>, vector<32x1xf32>
    %481 = vector.broadcast %480 : vector<32x1xf32> to vector<32x256xf32>
    %482 = arith.addf %479, %481 : vector<32x256xf32>
    %483 = arith.mulf %482, %482 : vector<32x256xf32>
    %484 = arith.mulf %482, %483 : vector<32x256xf32>
    %cst_242 = arith.constant 4.471500e-02 : f32
    %485 = vector.broadcast %cst_242 : f32 to vector<32x256xf32>
    %486 = arith.mulf %485, %484 : vector<32x256xf32>
    %487 = arith.addf %482, %486 : vector<32x256xf32>
    %cst_243 = arith.constant 0.797884583 : f32
    %488 = vector.broadcast %cst_243 : f32 to vector<32x256xf32>
    %489 = arith.mulf %488, %487 : vector<32x256xf32>
    %490 = math.tanh %489 : vector<32x256xf32>
    %cst_244 = arith.constant 1.000000e+00 : f32
    %491 = vector.broadcast %cst_244 : f32 to vector<32x256xf32>
    %492 = arith.addf %491, %490 : vector<32x256xf32>
    %cst_245 = arith.constant 5.000000e-01 : f32
    %493 = vector.broadcast %cst_245 : f32 to vector<32x256xf32>
    %494 = arith.mulf %493, %492 : vector<32x256xf32>
    %495 = arith.mulf %482, %494 : vector<32x256xf32>
    %c0_246 = arith.constant 0 : index
    %c0_247 = arith.constant 0 : index
    %496 = vector.load %arg18[%c0_246, %c0_247] : memref<8x32xf32, #tpu.memory_space<vmem>>, vector<8x32xf32>
    %cst_248 = arith.constant dense<0.000000e+00> : vector<8x256xf32>
    %497 = tpu.matmul %496, %495, %cst_248 {dimension_numbers = #tpu.dot_dimension_numbers<[1], [0], [0], [1], [0, 0, 1, 1], [], []>} : vector<8x32xf32>, vector<32x256xf32>, vector<8x256xf32> -> vector<8x256xf32>
    %c0_249 = arith.constant 0 : index
    %c0_250 = arith.constant 0 : index
    %498 = vector.load %arg19[%c0_249, %c0_250] : memref<8x1xf32, #tpu.memory_space<vmem>>, vector<8x1xf32>
    %499 = vector.broadcast %498 : vector<8x1xf32> to vector<8x256xf32>
    %500 = arith.addf %497, %499 : vector<8x256xf32>
    %c0_251 = arith.constant 0 : index
    %c0_252 = arith.constant 0 : index
    %501 = vector.load %arg20[%c0_251, %c0_252] : memref<1x256xf32, #tpu.memory_space<vmem>>, vector<1x256xf32>
    %502 = vector.broadcast %501 : vector<1x256xf32> to vector<8x256xf32>
    %503 = arith.mulf %500, %502 : vector<8x256xf32>
    %cst_253 = arith.constant dense<0.000000e+00> : vector<8xf32>
    %504 = vector.multi_reduction <add>, %503, %cst_253 [1] : vector<8x256xf32> to vector<8xf32>
    %505 = vector.shape_cast %504 : vector<8xf32> to vector<8x1xf32>
    %506 = vector.extract_strided_slice %23 {offsets = [1, 0], sizes = [1, 1], strides = [1, 1]} : vector<2x8xf32> to vector<1x1xf32>
    %c0_254 = arith.constant 0 : index
    %c0_255 = arith.constant 0 : index
    %c0_256 = arith.constant 0 : index
    %507 = vector.load %arg6[%c0_254, %c0_255, %c0_256] : memref<8x8x256xf32, #tpu.memory_space<vmem>>, vector<1x8x256xf32>
    %508 = vector.shape_cast %507 : vector<1x8x256xf32> to vector<8x256xf32>
    %509 = vector.broadcast %506 : vector<1x1xf32> to vector<8x256xf32>
    %510 = arith.mulf %509, %508 : vector<8x256xf32>
    %511 = vector.extract_strided_slice %23 {offsets = [1, 1], sizes = [1, 1], strides = [1, 1]} : vector<2x8xf32> to vector<1x1xf32>
    %c1_257 = arith.constant 1 : index
    %c0_258 = arith.constant 0 : index
    %c0_259 = arith.constant 0 : index
    %512 = vector.load %arg6[%c1_257, %c0_258, %c0_259] : memref<8x8x256xf32, #tpu.memory_space<vmem>>, vector<1x8x256xf32>
    %513 = vector.shape_cast %512 : vector<1x8x256xf32> to vector<8x256xf32>
    %514 = vector.broadcast %511 : vector<1x1xf32> to vector<8x256xf32>
    %515 = arith.mulf %514, %513 : vector<8x256xf32>
    %516 = arith.addf %510, %515 : vector<8x256xf32>
    %517 = vector.extract_strided_slice %23 {offsets = [1, 2], sizes = [1, 1], strides = [1, 1]} : vector<2x8xf32> to vector<1x1xf32>
    %c2_260 = arith.constant 2 : index
    %c0_261 = arith.constant 0 : index
    %c0_262 = arith.constant 0 : index
    %518 = vector.load %arg6[%c2_260, %c0_261, %c0_262] : memref<8x8x256xf32, #tpu.memory_space<vmem>>, vector<1x8x256xf32>
    %519 = vector.shape_cast %518 : vector<1x8x256xf32> to vector<8x256xf32>
    %520 = vector.broadcast %517 : vector<1x1xf32> to vector<8x256xf32>
    %521 = arith.mulf %520, %519 : vector<8x256xf32>
    %522 = arith.addf %516, %521 : vector<8x256xf32>
    %523 = vector.extract_strided_slice %23 {offsets = [1, 3], sizes = [1, 1], strides = [1, 1]} : vector<2x8xf32> to vector<1x1xf32>
    %c3_263 = arith.constant 3 : index
    %c0_264 = arith.constant 0 : index
    %c0_265 = arith.constant 0 : index
    %524 = vector.load %arg6[%c3_263, %c0_264, %c0_265] : memref<8x8x256xf32, #tpu.memory_space<vmem>>, vector<1x8x256xf32>
    %525 = vector.shape_cast %524 : vector<1x8x256xf32> to vector<8x256xf32>
    %526 = vector.broadcast %523 : vector<1x1xf32> to vector<8x256xf32>
    %527 = arith.mulf %526, %525 : vector<8x256xf32>
    %528 = arith.addf %522, %527 : vector<8x256xf32>
    %529 = vector.extract_strided_slice %23 {offsets = [1, 4], sizes = [1, 1], strides = [1, 1]} : vector<2x8xf32> to vector<1x1xf32>
    %c4_266 = arith.constant 4 : index
    %c0_267 = arith.constant 0 : index
    %c0_268 = arith.constant 0 : index
    %530 = vector.load %arg6[%c4_266, %c0_267, %c0_268] : memref<8x8x256xf32, #tpu.memory_space<vmem>>, vector<1x8x256xf32>
    %531 = vector.shape_cast %530 : vector<1x8x256xf32> to vector<8x256xf32>
    %532 = vector.broadcast %529 : vector<1x1xf32> to vector<8x256xf32>
    %533 = arith.mulf %532, %531 : vector<8x256xf32>
    %534 = arith.addf %528, %533 : vector<8x256xf32>
    %535 = vector.extract_strided_slice %23 {offsets = [1, 5], sizes = [1, 1], strides = [1, 1]} : vector<2x8xf32> to vector<1x1xf32>
    %c5_269 = arith.constant 5 : index
    %c0_270 = arith.constant 0 : index
    %c0_271 = arith.constant 0 : index
    %536 = vector.load %arg6[%c5_269, %c0_270, %c0_271] : memref<8x8x256xf32, #tpu.memory_space<vmem>>, vector<1x8x256xf32>
    %537 = vector.shape_cast %536 : vector<1x8x256xf32> to vector<8x256xf32>
    %538 = vector.broadcast %535 : vector<1x1xf32> to vector<8x256xf32>
    %539 = arith.mulf %538, %537 : vector<8x256xf32>
    %540 = arith.addf %534, %539 : vector<8x256xf32>
    %541 = vector.extract_strided_slice %23 {offsets = [1, 6], sizes = [1, 1], strides = [1, 1]} : vector<2x8xf32> to vector<1x1xf32>
    %c6_272 = arith.constant 6 : index
    %c0_273 = arith.constant 0 : index
    %c0_274 = arith.constant 0 : index
    %542 = vector.load %arg6[%c6_272, %c0_273, %c0_274] : memref<8x8x256xf32, #tpu.memory_space<vmem>>, vector<1x8x256xf32>
    %543 = vector.shape_cast %542 : vector<1x8x256xf32> to vector<8x256xf32>
    %544 = vector.broadcast %541 : vector<1x1xf32> to vector<8x256xf32>
    %545 = arith.mulf %544, %543 : vector<8x256xf32>
    %546 = arith.addf %540, %545 : vector<8x256xf32>
    %547 = vector.extract_strided_slice %23 {offsets = [1, 7], sizes = [1, 1], strides = [1, 1]} : vector<2x8xf32> to vector<1x1xf32>
    %c7_275 = arith.constant 7 : index
    %c0_276 = arith.constant 0 : index
    %c0_277 = arith.constant 0 : index
    %548 = vector.load %arg6[%c7_275, %c0_276, %c0_277] : memref<8x8x256xf32, #tpu.memory_space<vmem>>, vector<1x8x256xf32>
    %549 = vector.shape_cast %548 : vector<1x8x256xf32> to vector<8x256xf32>
    %550 = vector.broadcast %547 : vector<1x1xf32> to vector<8x256xf32>
    %551 = arith.mulf %550, %549 : vector<8x256xf32>
    %552 = arith.addf %546, %551 : vector<8x256xf32>
    %c0_278 = arith.constant 0 : index
    %c0_279 = arith.constant 0 : index
    %553 = vector.load %arg7[%c0_278, %c0_279] : memref<256x32xf32, #tpu.memory_space<vmem>>, vector<256x32xf32>
    %cst_280 = arith.constant dense<0.000000e+00> : vector<8x32xf32>
    %554 = tpu.matmul %552, %553, %cst_280 {dimension_numbers = #tpu.dot_dimension_numbers<[1], [0], [0], [1], [0, 0, 1, 1], [], []>} : vector<8x256xf32>, vector<256x32xf32>, vector<8x32xf32> -> vector<8x32xf32>
    %c0_281 = arith.constant 0 : index
    %c0_282 = arith.constant 0 : index
    %555 = vector.load %arg8[%c0_281, %c0_282] : memref<256x32xf32, #tpu.memory_space<vmem>>, vector<256x32xf32>
    %cst_283 = arith.constant dense<0.000000e+00> : vector<8x32xf32>
    %556 = tpu.matmul %552, %555, %cst_283 {dimension_numbers = #tpu.dot_dimension_numbers<[1], [0], [0], [1], [0, 0, 1, 1], [], []>} : vector<8x256xf32>, vector<256x32xf32>, vector<8x32xf32> -> vector<8x32xf32>
    %557 = vector.extract_strided_slice %554 {offsets = [0, 0], sizes = [1, 32], strides = [1, 1]} : vector<8x32xf32> to vector<1x32xf32>
    %558 = vector.extract_strided_slice %556 {offsets = [0, 0], sizes = [1, 32], strides = [1, 1]} : vector<8x32xf32> to vector<1x32xf32>
    %c0_284 = arith.constant 0 : index
    %c0_285 = arith.constant 0 : index
    %c0_286 = arith.constant 0 : index
    %c0_287 = arith.constant 0 : index
    %559 = vector.load %arg11[%c0_284, %c0_285, %c0_286, %c0_287] : memref<2x8x8x32xf32, #tpu.memory_space<vmem>>, vector<1x1x8x32xf32>
    %560 = vector.shape_cast %559 : vector<1x1x8x32xf32> to vector<8x32xf32>
    %c0_288 = arith.constant 0 : index
    %c0_289 = arith.constant 0 : index
    %c0_290 = arith.constant 0 : index
    %c0_291 = arith.constant 0 : index
    %561 = vector.load %arg12[%c0_288, %c0_289, %c0_290, %c0_291] : memref<2x8x8x32xf32, #tpu.memory_space<vmem>>, vector<1x1x8x32xf32>
    %562 = vector.shape_cast %561 : vector<1x1x8x32xf32> to vector<8x32xf32>
    %563 = vector.broadcast %557 : vector<1x32xf32> to vector<8x32xf32>
    %564 = arith.mulf %563, %560 : vector<8x32xf32>
    %565 = vector.broadcast %558 : vector<1x32xf32> to vector<8x32xf32>
    %566 = arith.mulf %565, %562 : vector<8x32xf32>
    %567 = arith.subf %564, %566 : vector<8x32xf32>
    %568 = vector.broadcast %557 : vector<1x32xf32> to vector<8x32xf32>
    %569 = arith.mulf %568, %562 : vector<8x32xf32>
    %570 = vector.broadcast %558 : vector<1x32xf32> to vector<8x32xf32>
    %571 = arith.mulf %570, %560 : vector<8x32xf32>
    %572 = arith.addf %569, %571 : vector<8x32xf32>
    %573 = vector.extract_strided_slice %554 {offsets = [1, 0], sizes = [1, 32], strides = [1, 1]} : vector<8x32xf32> to vector<1x32xf32>
    %574 = vector.extract_strided_slice %556 {offsets = [1, 0], sizes = [1, 32], strides = [1, 1]} : vector<8x32xf32> to vector<1x32xf32>
    %c0_292 = arith.constant 0 : index
    %c1_293 = arith.constant 1 : index
    %c0_294 = arith.constant 0 : index
    %c0_295 = arith.constant 0 : index
    %575 = vector.load %arg11[%c0_292, %c1_293, %c0_294, %c0_295] : memref<2x8x8x32xf32, #tpu.memory_space<vmem>>, vector<1x1x8x32xf32>
    %576 = vector.shape_cast %575 : vector<1x1x8x32xf32> to vector<8x32xf32>
    %c0_296 = arith.constant 0 : index
    %c1_297 = arith.constant 1 : index
    %c0_298 = arith.constant 0 : index
    %c0_299 = arith.constant 0 : index
    %577 = vector.load %arg12[%c0_296, %c1_297, %c0_298, %c0_299] : memref<2x8x8x32xf32, #tpu.memory_space<vmem>>, vector<1x1x8x32xf32>
    %578 = vector.shape_cast %577 : vector<1x1x8x32xf32> to vector<8x32xf32>
    %579 = vector.broadcast %573 : vector<1x32xf32> to vector<8x32xf32>
    %580 = arith.mulf %579, %576 : vector<8x32xf32>
    %581 = vector.broadcast %574 : vector<1x32xf32> to vector<8x32xf32>
    %582 = arith.mulf %581, %578 : vector<8x32xf32>
    %583 = arith.subf %580, %582 : vector<8x32xf32>
    %584 = vector.broadcast %573 : vector<1x32xf32> to vector<8x32xf32>
    %585 = arith.mulf %584, %578 : vector<8x32xf32>
    %586 = vector.broadcast %574 : vector<1x32xf32> to vector<8x32xf32>
    %587 = arith.mulf %586, %576 : vector<8x32xf32>
    %588 = arith.addf %585, %587 : vector<8x32xf32>
    %589 = arith.addf %567, %583 : vector<8x32xf32>
    %590 = arith.addf %572, %588 : vector<8x32xf32>
    %591 = vector.extract_strided_slice %554 {offsets = [2, 0], sizes = [1, 32], strides = [1, 1]} : vector<8x32xf32> to vector<1x32xf32>
    %592 = vector.extract_strided_slice %556 {offsets = [2, 0], sizes = [1, 32], strides = [1, 1]} : vector<8x32xf32> to vector<1x32xf32>
    %c0_300 = arith.constant 0 : index
    %c2_301 = arith.constant 2 : index
    %c0_302 = arith.constant 0 : index
    %c0_303 = arith.constant 0 : index
    %593 = vector.load %arg11[%c0_300, %c2_301, %c0_302, %c0_303] : memref<2x8x8x32xf32, #tpu.memory_space<vmem>>, vector<1x1x8x32xf32>
    %594 = vector.shape_cast %593 : vector<1x1x8x32xf32> to vector<8x32xf32>
    %c0_304 = arith.constant 0 : index
    %c2_305 = arith.constant 2 : index
    %c0_306 = arith.constant 0 : index
    %c0_307 = arith.constant 0 : index
    %595 = vector.load %arg12[%c0_304, %c2_305, %c0_306, %c0_307] : memref<2x8x8x32xf32, #tpu.memory_space<vmem>>, vector<1x1x8x32xf32>
    %596 = vector.shape_cast %595 : vector<1x1x8x32xf32> to vector<8x32xf32>
    %597 = vector.broadcast %591 : vector<1x32xf32> to vector<8x32xf32>
    %598 = arith.mulf %597, %594 : vector<8x32xf32>
    %599 = vector.broadcast %592 : vector<1x32xf32> to vector<8x32xf32>
    %600 = arith.mulf %599, %596 : vector<8x32xf32>
    %601 = arith.subf %598, %600 : vector<8x32xf32>
    %602 = vector.broadcast %591 : vector<1x32xf32> to vector<8x32xf32>
    %603 = arith.mulf %602, %596 : vector<8x32xf32>
    %604 = vector.broadcast %592 : vector<1x32xf32> to vector<8x32xf32>
    %605 = arith.mulf %604, %594 : vector<8x32xf32>
    %606 = arith.addf %603, %605 : vector<8x32xf32>
    %607 = arith.addf %589, %601 : vector<8x32xf32>
    %608 = arith.addf %590, %606 : vector<8x32xf32>
    %609 = vector.extract_strided_slice %554 {offsets = [3, 0], sizes = [1, 32], strides = [1, 1]} : vector<8x32xf32> to vector<1x32xf32>
    %610 = vector.extract_strided_slice %556 {offsets = [3, 0], sizes = [1, 32], strides = [1, 1]} : vector<8x32xf32> to vector<1x32xf32>
    %c0_308 = arith.constant 0 : index
    %c3_309 = arith.constant 3 : index
    %c0_310 = arith.constant 0 : index
    %c0_311 = arith.constant 0 : index
    %611 = vector.load %arg11[%c0_308, %c3_309, %c0_310, %c0_311] : memref<2x8x8x32xf32, #tpu.memory_space<vmem>>, vector<1x1x8x32xf32>
    %612 = vector.shape_cast %611 : vector<1x1x8x32xf32> to vector<8x32xf32>
    %c0_312 = arith.constant 0 : index
    %c3_313 = arith.constant 3 : index
    %c0_314 = arith.constant 0 : index
    %c0_315 = arith.constant 0 : index
    %613 = vector.load %arg12[%c0_312, %c3_313, %c0_314, %c0_315] : memref<2x8x8x32xf32, #tpu.memory_space<vmem>>, vector<1x1x8x32xf32>
    %614 = vector.shape_cast %613 : vector<1x1x8x32xf32> to vector<8x32xf32>
    %615 = vector.broadcast %609 : vector<1x32xf32> to vector<8x32xf32>
    %616 = arith.mulf %615, %612 : vector<8x32xf32>
    %617 = vector.broadcast %610 : vector<1x32xf32> to vector<8x32xf32>
    %618 = arith.mulf %617, %614 : vector<8x32xf32>
    %619 = arith.subf %616, %618 : vector<8x32xf32>
    %620 = vector.broadcast %609 : vector<1x32xf32> to vector<8x32xf32>
    %621 = arith.mulf %620, %614 : vector<8x32xf32>
    %622 = vector.broadcast %610 : vector<1x32xf32> to vector<8x32xf32>
    %623 = arith.mulf %622, %612 : vector<8x32xf32>
    %624 = arith.addf %621, %623 : vector<8x32xf32>
    %625 = arith.addf %607, %619 : vector<8x32xf32>
    %626 = arith.addf %608, %624 : vector<8x32xf32>
    %627 = vector.extract_strided_slice %554 {offsets = [4, 0], sizes = [1, 32], strides = [1, 1]} : vector<8x32xf32> to vector<1x32xf32>
    %628 = vector.extract_strided_slice %556 {offsets = [4, 0], sizes = [1, 32], strides = [1, 1]} : vector<8x32xf32> to vector<1x32xf32>
    %c0_316 = arith.constant 0 : index
    %c4_317 = arith.constant 4 : index
    %c0_318 = arith.constant 0 : index
    %c0_319 = arith.constant 0 : index
    %629 = vector.load %arg11[%c0_316, %c4_317, %c0_318, %c0_319] : memref<2x8x8x32xf32, #tpu.memory_space<vmem>>, vector<1x1x8x32xf32>
    %630 = vector.shape_cast %629 : vector<1x1x8x32xf32> to vector<8x32xf32>
    %c0_320 = arith.constant 0 : index
    %c4_321 = arith.constant 4 : index
    %c0_322 = arith.constant 0 : index
    %c0_323 = arith.constant 0 : index
    %631 = vector.load %arg12[%c0_320, %c4_321, %c0_322, %c0_323] : memref<2x8x8x32xf32, #tpu.memory_space<vmem>>, vector<1x1x8x32xf32>
    %632 = vector.shape_cast %631 : vector<1x1x8x32xf32> to vector<8x32xf32>
    %633 = vector.broadcast %627 : vector<1x32xf32> to vector<8x32xf32>
    %634 = arith.mulf %633, %630 : vector<8x32xf32>
    %635 = vector.broadcast %628 : vector<1x32xf32> to vector<8x32xf32>
    %636 = arith.mulf %635, %632 : vector<8x32xf32>
    %637 = arith.subf %634, %636 : vector<8x32xf32>
    %638 = vector.broadcast %627 : vector<1x32xf32> to vector<8x32xf32>
    %639 = arith.mulf %638, %632 : vector<8x32xf32>
    %640 = vector.broadcast %628 : vector<1x32xf32> to vector<8x32xf32>
    %641 = arith.mulf %640, %630 : vector<8x32xf32>
    %642 = arith.addf %639, %641 : vector<8x32xf32>
    %643 = arith.addf %625, %637 : vector<8x32xf32>
    %644 = arith.addf %626, %642 : vector<8x32xf32>
    %645 = vector.extract_strided_slice %554 {offsets = [5, 0], sizes = [1, 32], strides = [1, 1]} : vector<8x32xf32> to vector<1x32xf32>
    %646 = vector.extract_strided_slice %556 {offsets = [5, 0], sizes = [1, 32], strides = [1, 1]} : vector<8x32xf32> to vector<1x32xf32>
    %c0_324 = arith.constant 0 : index
    %c5_325 = arith.constant 5 : index
    %c0_326 = arith.constant 0 : index
    %c0_327 = arith.constant 0 : index
    %647 = vector.load %arg11[%c0_324, %c5_325, %c0_326, %c0_327] : memref<2x8x8x32xf32, #tpu.memory_space<vmem>>, vector<1x1x8x32xf32>
    %648 = vector.shape_cast %647 : vector<1x1x8x32xf32> to vector<8x32xf32>
    %c0_328 = arith.constant 0 : index
    %c5_329 = arith.constant 5 : index
    %c0_330 = arith.constant 0 : index
    %c0_331 = arith.constant 0 : index
    %649 = vector.load %arg12[%c0_328, %c5_329, %c0_330, %c0_331] : memref<2x8x8x32xf32, #tpu.memory_space<vmem>>, vector<1x1x8x32xf32>
    %650 = vector.shape_cast %649 : vector<1x1x8x32xf32> to vector<8x32xf32>
    %651 = vector.broadcast %645 : vector<1x32xf32> to vector<8x32xf32>
    %652 = arith.mulf %651, %648 : vector<8x32xf32>
    %653 = vector.broadcast %646 : vector<1x32xf32> to vector<8x32xf32>
    %654 = arith.mulf %653, %650 : vector<8x32xf32>
    %655 = arith.subf %652, %654 : vector<8x32xf32>
    %656 = vector.broadcast %645 : vector<1x32xf32> to vector<8x32xf32>
    %657 = arith.mulf %656, %650 : vector<8x32xf32>
    %658 = vector.broadcast %646 : vector<1x32xf32> to vector<8x32xf32>
    %659 = arith.mulf %658, %648 : vector<8x32xf32>
    %660 = arith.addf %657, %659 : vector<8x32xf32>
    %661 = arith.addf %643, %655 : vector<8x32xf32>
    %662 = arith.addf %644, %660 : vector<8x32xf32>
    %663 = vector.extract_strided_slice %554 {offsets = [6, 0], sizes = [1, 32], strides = [1, 1]} : vector<8x32xf32> to vector<1x32xf32>
    %664 = vector.extract_strided_slice %556 {offsets = [6, 0], sizes = [1, 32], strides = [1, 1]} : vector<8x32xf32> to vector<1x32xf32>
    %c0_332 = arith.constant 0 : index
    %c6_333 = arith.constant 6 : index
    %c0_334 = arith.constant 0 : index
    %c0_335 = arith.constant 0 : index
    %665 = vector.load %arg11[%c0_332, %c6_333, %c0_334, %c0_335] : memref<2x8x8x32xf32, #tpu.memory_space<vmem>>, vector<1x1x8x32xf32>
    %666 = vector.shape_cast %665 : vector<1x1x8x32xf32> to vector<8x32xf32>
    %c0_336 = arith.constant 0 : index
    %c6_337 = arith.constant 6 : index
    %c0_338 = arith.constant 0 : index
    %c0_339 = arith.constant 0 : index
    %667 = vector.load %arg12[%c0_336, %c6_337, %c0_338, %c0_339] : memref<2x8x8x32xf32, #tpu.memory_space<vmem>>, vector<1x1x8x32xf32>
    %668 = vector.shape_cast %667 : vector<1x1x8x32xf32> to vector<8x32xf32>
    %669 = vector.broadcast %663 : vector<1x32xf32> to vector<8x32xf32>
    %670 = arith.mulf %669, %666 : vector<8x32xf32>
    %671 = vector.broadcast %664 : vector<1x32xf32> to vector<8x32xf32>
    %672 = arith.mulf %671, %668 : vector<8x32xf32>
    %673 = arith.subf %670, %672 : vector<8x32xf32>
    %674 = vector.broadcast %663 : vector<1x32xf32> to vector<8x32xf32>
    %675 = arith.mulf %674, %668 : vector<8x32xf32>
    %676 = vector.broadcast %664 : vector<1x32xf32> to vector<8x32xf32>
    %677 = arith.mulf %676, %666 : vector<8x32xf32>
    %678 = arith.addf %675, %677 : vector<8x32xf32>
    %679 = arith.addf %661, %673 : vector<8x32xf32>
    %680 = arith.addf %662, %678 : vector<8x32xf32>
    %681 = vector.extract_strided_slice %554 {offsets = [7, 0], sizes = [1, 32], strides = [1, 1]} : vector<8x32xf32> to vector<1x32xf32>
    %682 = vector.extract_strided_slice %556 {offsets = [7, 0], sizes = [1, 32], strides = [1, 1]} : vector<8x32xf32> to vector<1x32xf32>
    %c0_340 = arith.constant 0 : index
    %c7_341 = arith.constant 7 : index
    %c0_342 = arith.constant 0 : index
    %c0_343 = arith.constant 0 : index
    %683 = vector.load %arg11[%c0_340, %c7_341, %c0_342, %c0_343] : memref<2x8x8x32xf32, #tpu.memory_space<vmem>>, vector<1x1x8x32xf32>
    %684 = vector.shape_cast %683 : vector<1x1x8x32xf32> to vector<8x32xf32>
    %c0_344 = arith.constant 0 : index
    %c7_345 = arith.constant 7 : index
    %c0_346 = arith.constant 0 : index
    %c0_347 = arith.constant 0 : index
    %685 = vector.load %arg12[%c0_344, %c7_345, %c0_346, %c0_347] : memref<2x8x8x32xf32, #tpu.memory_space<vmem>>, vector<1x1x8x32xf32>
    %686 = vector.shape_cast %685 : vector<1x1x8x32xf32> to vector<8x32xf32>
    %687 = vector.broadcast %681 : vector<1x32xf32> to vector<8x32xf32>
    %688 = arith.mulf %687, %684 : vector<8x32xf32>
    %689 = vector.broadcast %682 : vector<1x32xf32> to vector<8x32xf32>
    %690 = arith.mulf %689, %686 : vector<8x32xf32>
    %691 = arith.subf %688, %690 : vector<8x32xf32>
    %692 = vector.broadcast %681 : vector<1x32xf32> to vector<8x32xf32>
    %693 = arith.mulf %692, %686 : vector<8x32xf32>
    %694 = vector.broadcast %682 : vector<1x32xf32> to vector<8x32xf32>
    %695 = arith.mulf %694, %684 : vector<8x32xf32>
    %696 = arith.addf %693, %695 : vector<8x32xf32>
    %697 = arith.addf %679, %691 : vector<8x32xf32>
    %698 = arith.addf %680, %696 : vector<8x32xf32>
    %c0_348 = arith.constant 0 : index
    %c0_349 = arith.constant 0 : index
    %699 = vector.load %arg9[%c0_348, %c0_349] : memref<32x256xf32, #tpu.memory_space<vmem>>, vector<32x256xf32>
    %cst_350 = arith.constant dense<0.000000e+00> : vector<8x256xf32>
    %700 = tpu.matmul %697, %699, %cst_350 {dimension_numbers = #tpu.dot_dimension_numbers<[1], [0], [0], [1], [0, 0, 1, 1], [], []>} : vector<8x32xf32>, vector<32x256xf32>, vector<8x256xf32> -> vector<8x256xf32>
    %c0_351 = arith.constant 0 : index
    %c0_352 = arith.constant 0 : index
    %701 = vector.load %arg10[%c0_351, %c0_352] : memref<32x256xf32, #tpu.memory_space<vmem>>, vector<32x256xf32>
    %cst_353 = arith.constant dense<0.000000e+00> : vector<8x256xf32>
    %702 = tpu.matmul %698, %701, %cst_353 {dimension_numbers = #tpu.dot_dimension_numbers<[1], [0], [0], [1], [0, 0, 1, 1], [], []>} : vector<8x32xf32>, vector<32x256xf32>, vector<8x256xf32> -> vector<8x256xf32>
    %703 = arith.addf %700, %702 : vector<8x256xf32>
    %c0_354 = arith.constant 0 : index
    %c0_355 = arith.constant 0 : index
    %c0_356 = arith.constant 0 : index
    %704 = vector.load %arg13[%c0_354, %c0_355, %c0_356] : memref<2x8x8xf32, #tpu.memory_space<vmem>>, vector<1x8x8xf32>
    %705 = vector.shape_cast %704 : vector<1x8x8xf32> to vector<8x8xf32>
    %cst_357 = arith.constant dense<0.000000e+00> : vector<8x256xf32>
    %706 = tpu.matmul %705, %552, %cst_357 {dimension_numbers = #tpu.dot_dimension_numbers<[1], [0], [0], [1], [0, 0, 1, 1], [], []>} : vector<8x8xf32>, vector<8x256xf32>, vector<8x256xf32> -> vector<8x256xf32>
    %c0_358 = arith.constant 0 : index
    %c0_359 = arith.constant 0 : index
    %c0_360 = arith.constant 0 : index
    %707 = vector.load %arg14[%c0_358, %c0_359, %c0_360] : memref<2x8x1xf32, #tpu.memory_space<vmem>>, vector<1x8x1xf32>
    %708 = vector.shape_cast %707 : vector<1x8x1xf32> to vector<8x1xf32>
    %709 = vector.broadcast %708 : vector<8x1xf32> to vector<8x256xf32>
    %710 = arith.addf %706, %709 : vector<8x256xf32>
    %711 = arith.addf %710, %703 : vector<8x256xf32>
    %712 = arith.mulf %711, %711 : vector<8x256xf32>
    %713 = arith.mulf %711, %712 : vector<8x256xf32>
    %cst_361 = arith.constant 4.471500e-02 : f32
    %714 = vector.broadcast %cst_361 : f32 to vector<8x256xf32>
    %715 = arith.mulf %714, %713 : vector<8x256xf32>
    %716 = arith.addf %711, %715 : vector<8x256xf32>
    %cst_362 = arith.constant 0.797884583 : f32
    %717 = vector.broadcast %cst_362 : f32 to vector<8x256xf32>
    %718 = arith.mulf %717, %716 : vector<8x256xf32>
    %719 = math.tanh %718 : vector<8x256xf32>
    %cst_363 = arith.constant 1.000000e+00 : f32
    %720 = vector.broadcast %cst_363 : f32 to vector<8x256xf32>
    %721 = arith.addf %720, %719 : vector<8x256xf32>
    %cst_364 = arith.constant 5.000000e-01 : f32
    %722 = vector.broadcast %cst_364 : f32 to vector<8x256xf32>
    %723 = arith.mulf %722, %721 : vector<8x256xf32>
    %724 = arith.mulf %711, %723 : vector<8x256xf32>
    %c0_365 = arith.constant 0 : index
    %c0_366 = arith.constant 0 : index
    %725 = vector.load %arg7[%c0_365, %c0_366] : memref<256x32xf32, #tpu.memory_space<vmem>>, vector<256x32xf32>
    %cst_367 = arith.constant dense<0.000000e+00> : vector<8x32xf32>
    %726 = tpu.matmul %724, %725, %cst_367 {dimension_numbers = #tpu.dot_dimension_numbers<[1], [0], [0], [1], [0, 0, 1, 1], [], []>} : vector<8x256xf32>, vector<256x32xf32>, vector<8x32xf32> -> vector<8x32xf32>
    %c0_368 = arith.constant 0 : index
    %c0_369 = arith.constant 0 : index
    %727 = vector.load %arg8[%c0_368, %c0_369] : memref<256x32xf32, #tpu.memory_space<vmem>>, vector<256x32xf32>
    %cst_370 = arith.constant dense<0.000000e+00> : vector<8x32xf32>
    %728 = tpu.matmul %724, %727, %cst_370 {dimension_numbers = #tpu.dot_dimension_numbers<[1], [0], [0], [1], [0, 0, 1, 1], [], []>} : vector<8x256xf32>, vector<256x32xf32>, vector<8x32xf32> -> vector<8x32xf32>
    %729 = vector.extract_strided_slice %726 {offsets = [0, 0], sizes = [1, 32], strides = [1, 1]} : vector<8x32xf32> to vector<1x32xf32>
    %730 = vector.extract_strided_slice %728 {offsets = [0, 0], sizes = [1, 32], strides = [1, 1]} : vector<8x32xf32> to vector<1x32xf32>
    %c1_371 = arith.constant 1 : index
    %c0_372 = arith.constant 0 : index
    %c0_373 = arith.constant 0 : index
    %c0_374 = arith.constant 0 : index
    %731 = vector.load %arg11[%c1_371, %c0_372, %c0_373, %c0_374] : memref<2x8x8x32xf32, #tpu.memory_space<vmem>>, vector<1x1x8x32xf32>
    %732 = vector.shape_cast %731 : vector<1x1x8x32xf32> to vector<8x32xf32>
    %c1_375 = arith.constant 1 : index
    %c0_376 = arith.constant 0 : index
    %c0_377 = arith.constant 0 : index
    %c0_378 = arith.constant 0 : index
    %733 = vector.load %arg12[%c1_375, %c0_376, %c0_377, %c0_378] : memref<2x8x8x32xf32, #tpu.memory_space<vmem>>, vector<1x1x8x32xf32>
    %734 = vector.shape_cast %733 : vector<1x1x8x32xf32> to vector<8x32xf32>
    %735 = vector.broadcast %729 : vector<1x32xf32> to vector<8x32xf32>
    %736 = arith.mulf %735, %732 : vector<8x32xf32>
    %737 = vector.broadcast %730 : vector<1x32xf32> to vector<8x32xf32>
    %738 = arith.mulf %737, %734 : vector<8x32xf32>
    %739 = arith.subf %736, %738 : vector<8x32xf32>
    %740 = vector.broadcast %729 : vector<1x32xf32> to vector<8x32xf32>
    %741 = arith.mulf %740, %734 : vector<8x32xf32>
    %742 = vector.broadcast %730 : vector<1x32xf32> to vector<8x32xf32>
    %743 = arith.mulf %742, %732 : vector<8x32xf32>
    %744 = arith.addf %741, %743 : vector<8x32xf32>
    %745 = vector.extract_strided_slice %726 {offsets = [1, 0], sizes = [1, 32], strides = [1, 1]} : vector<8x32xf32> to vector<1x32xf32>
    %746 = vector.extract_strided_slice %728 {offsets = [1, 0], sizes = [1, 32], strides = [1, 1]} : vector<8x32xf32> to vector<1x32xf32>
    %c1_379 = arith.constant 1 : index
    %c1_380 = arith.constant 1 : index
    %c0_381 = arith.constant 0 : index
    %c0_382 = arith.constant 0 : index
    %747 = vector.load %arg11[%c1_379, %c1_380, %c0_381, %c0_382] : memref<2x8x8x32xf32, #tpu.memory_space<vmem>>, vector<1x1x8x32xf32>
    %748 = vector.shape_cast %747 : vector<1x1x8x32xf32> to vector<8x32xf32>
    %c1_383 = arith.constant 1 : index
    %c1_384 = arith.constant 1 : index
    %c0_385 = arith.constant 0 : index
    %c0_386 = arith.constant 0 : index
    %749 = vector.load %arg12[%c1_383, %c1_384, %c0_385, %c0_386] : memref<2x8x8x32xf32, #tpu.memory_space<vmem>>, vector<1x1x8x32xf32>
    %750 = vector.shape_cast %749 : vector<1x1x8x32xf32> to vector<8x32xf32>
    %751 = vector.broadcast %745 : vector<1x32xf32> to vector<8x32xf32>
    %752 = arith.mulf %751, %748 : vector<8x32xf32>
    %753 = vector.broadcast %746 : vector<1x32xf32> to vector<8x32xf32>
    %754 = arith.mulf %753, %750 : vector<8x32xf32>
    %755 = arith.subf %752, %754 : vector<8x32xf32>
    %756 = vector.broadcast %745 : vector<1x32xf32> to vector<8x32xf32>
    %757 = arith.mulf %756, %750 : vector<8x32xf32>
    %758 = vector.broadcast %746 : vector<1x32xf32> to vector<8x32xf32>
    %759 = arith.mulf %758, %748 : vector<8x32xf32>
    %760 = arith.addf %757, %759 : vector<8x32xf32>
    %761 = arith.addf %739, %755 : vector<8x32xf32>
    %762 = arith.addf %744, %760 : vector<8x32xf32>
    %763 = vector.extract_strided_slice %726 {offsets = [2, 0], sizes = [1, 32], strides = [1, 1]} : vector<8x32xf32> to vector<1x32xf32>
    %764 = vector.extract_strided_slice %728 {offsets = [2, 0], sizes = [1, 32], strides = [1, 1]} : vector<8x32xf32> to vector<1x32xf32>
    %c1_387 = arith.constant 1 : index
    %c2_388 = arith.constant 2 : index
    %c0_389 = arith.constant 0 : index
    %c0_390 = arith.constant 0 : index
    %765 = vector.load %arg11[%c1_387, %c2_388, %c0_389, %c0_390] : memref<2x8x8x32xf32, #tpu.memory_space<vmem>>, vector<1x1x8x32xf32>
    %766 = vector.shape_cast %765 : vector<1x1x8x32xf32> to vector<8x32xf32>
    %c1_391 = arith.constant 1 : index
    %c2_392 = arith.constant 2 : index
    %c0_393 = arith.constant 0 : index
    %c0_394 = arith.constant 0 : index
    %767 = vector.load %arg12[%c1_391, %c2_392, %c0_393, %c0_394] : memref<2x8x8x32xf32, #tpu.memory_space<vmem>>, vector<1x1x8x32xf32>
    %768 = vector.shape_cast %767 : vector<1x1x8x32xf32> to vector<8x32xf32>
    %769 = vector.broadcast %763 : vector<1x32xf32> to vector<8x32xf32>
    %770 = arith.mulf %769, %766 : vector<8x32xf32>
    %771 = vector.broadcast %764 : vector<1x32xf32> to vector<8x32xf32>
    %772 = arith.mulf %771, %768 : vector<8x32xf32>
    %773 = arith.subf %770, %772 : vector<8x32xf32>
    %774 = vector.broadcast %763 : vector<1x32xf32> to vector<8x32xf32>
    %775 = arith.mulf %774, %768 : vector<8x32xf32>
    %776 = vector.broadcast %764 : vector<1x32xf32> to vector<8x32xf32>
    %777 = arith.mulf %776, %766 : vector<8x32xf32>
    %778 = arith.addf %775, %777 : vector<8x32xf32>
    %779 = arith.addf %761, %773 : vector<8x32xf32>
    %780 = arith.addf %762, %778 : vector<8x32xf32>
    %781 = vector.extract_strided_slice %726 {offsets = [3, 0], sizes = [1, 32], strides = [1, 1]} : vector<8x32xf32> to vector<1x32xf32>
    %782 = vector.extract_strided_slice %728 {offsets = [3, 0], sizes = [1, 32], strides = [1, 1]} : vector<8x32xf32> to vector<1x32xf32>
    %c1_395 = arith.constant 1 : index
    %c3_396 = arith.constant 3 : index
    %c0_397 = arith.constant 0 : index
    %c0_398 = arith.constant 0 : index
    %783 = vector.load %arg11[%c1_395, %c3_396, %c0_397, %c0_398] : memref<2x8x8x32xf32, #tpu.memory_space<vmem>>, vector<1x1x8x32xf32>
    %784 = vector.shape_cast %783 : vector<1x1x8x32xf32> to vector<8x32xf32>
    %c1_399 = arith.constant 1 : index
    %c3_400 = arith.constant 3 : index
    %c0_401 = arith.constant 0 : index
    %c0_402 = arith.constant 0 : index
    %785 = vector.load %arg12[%c1_399, %c3_400, %c0_401, %c0_402] : memref<2x8x8x32xf32, #tpu.memory_space<vmem>>, vector<1x1x8x32xf32>
    %786 = vector.shape_cast %785 : vector<1x1x8x32xf32> to vector<8x32xf32>
    %787 = vector.broadcast %781 : vector<1x32xf32> to vector<8x32xf32>
    %788 = arith.mulf %787, %784 : vector<8x32xf32>
    %789 = vector.broadcast %782 : vector<1x32xf32> to vector<8x32xf32>
    %790 = arith.mulf %789, %786 : vector<8x32xf32>
    %791 = arith.subf %788, %790 : vector<8x32xf32>
    %792 = vector.broadcast %781 : vector<1x32xf32> to vector<8x32xf32>
    %793 = arith.mulf %792, %786 : vector<8x32xf32>
    %794 = vector.broadcast %782 : vector<1x32xf32> to vector<8x32xf32>
    %795 = arith.mulf %794, %784 : vector<8x32xf32>
    %796 = arith.addf %793, %795 : vector<8x32xf32>
    %797 = arith.addf %779, %791 : vector<8x32xf32>
    %798 = arith.addf %780, %796 : vector<8x32xf32>
    %799 = vector.extract_strided_slice %726 {offsets = [4, 0], sizes = [1, 32], strides = [1, 1]} : vector<8x32xf32> to vector<1x32xf32>
    %800 = vector.extract_strided_slice %728 {offsets = [4, 0], sizes = [1, 32], strides = [1, 1]} : vector<8x32xf32> to vector<1x32xf32>
    %c1_403 = arith.constant 1 : index
    %c4_404 = arith.constant 4 : index
    %c0_405 = arith.constant 0 : index
    %c0_406 = arith.constant 0 : index
    %801 = vector.load %arg11[%c1_403, %c4_404, %c0_405, %c0_406] : memref<2x8x8x32xf32, #tpu.memory_space<vmem>>, vector<1x1x8x32xf32>
    %802 = vector.shape_cast %801 : vector<1x1x8x32xf32> to vector<8x32xf32>
    %c1_407 = arith.constant 1 : index
    %c4_408 = arith.constant 4 : index
    %c0_409 = arith.constant 0 : index
    %c0_410 = arith.constant 0 : index
    %803 = vector.load %arg12[%c1_407, %c4_408, %c0_409, %c0_410] : memref<2x8x8x32xf32, #tpu.memory_space<vmem>>, vector<1x1x8x32xf32>
    %804 = vector.shape_cast %803 : vector<1x1x8x32xf32> to vector<8x32xf32>
    %805 = vector.broadcast %799 : vector<1x32xf32> to vector<8x32xf32>
    %806 = arith.mulf %805, %802 : vector<8x32xf32>
    %807 = vector.broadcast %800 : vector<1x32xf32> to vector<8x32xf32>
    %808 = arith.mulf %807, %804 : vector<8x32xf32>
    %809 = arith.subf %806, %808 : vector<8x32xf32>
    %810 = vector.broadcast %799 : vector<1x32xf32> to vector<8x32xf32>
    %811 = arith.mulf %810, %804 : vector<8x32xf32>
    %812 = vector.broadcast %800 : vector<1x32xf32> to vector<8x32xf32>
    %813 = arith.mulf %812, %802 : vector<8x32xf32>
    %814 = arith.addf %811, %813 : vector<8x32xf32>
    %815 = arith.addf %797, %809 : vector<8x32xf32>
    %816 = arith.addf %798, %814 : vector<8x32xf32>
    %817 = vector.extract_strided_slice %726 {offsets = [5, 0], sizes = [1, 32], strides = [1, 1]} : vector<8x32xf32> to vector<1x32xf32>
    %818 = vector.extract_strided_slice %728 {offsets = [5, 0], sizes = [1, 32], strides = [1, 1]} : vector<8x32xf32> to vector<1x32xf32>
    %c1_411 = arith.constant 1 : index
    %c5_412 = arith.constant 5 : index
    %c0_413 = arith.constant 0 : index
    %c0_414 = arith.constant 0 : index
    %819 = vector.load %arg11[%c1_411, %c5_412, %c0_413, %c0_414] : memref<2x8x8x32xf32, #tpu.memory_space<vmem>>, vector<1x1x8x32xf32>
    %820 = vector.shape_cast %819 : vector<1x1x8x32xf32> to vector<8x32xf32>
    %c1_415 = arith.constant 1 : index
    %c5_416 = arith.constant 5 : index
    %c0_417 = arith.constant 0 : index
    %c0_418 = arith.constant 0 : index
    %821 = vector.load %arg12[%c1_415, %c5_416, %c0_417, %c0_418] : memref<2x8x8x32xf32, #tpu.memory_space<vmem>>, vector<1x1x8x32xf32>
    %822 = vector.shape_cast %821 : vector<1x1x8x32xf32> to vector<8x32xf32>
    %823 = vector.broadcast %817 : vector<1x32xf32> to vector<8x32xf32>
    %824 = arith.mulf %823, %820 : vector<8x32xf32>
    %825 = vector.broadcast %818 : vector<1x32xf32> to vector<8x32xf32>
    %826 = arith.mulf %825, %822 : vector<8x32xf32>
    %827 = arith.subf %824, %826 : vector<8x32xf32>
    %828 = vector.broadcast %817 : vector<1x32xf32> to vector<8x32xf32>
    %829 = arith.mulf %828, %822 : vector<8x32xf32>
    %830 = vector.broadcast %818 : vector<1x32xf32> to vector<8x32xf32>
    %831 = arith.mulf %830, %820 : vector<8x32xf32>
    %832 = arith.addf %829, %831 : vector<8x32xf32>
    %833 = arith.addf %815, %827 : vector<8x32xf32>
    %834 = arith.addf %816, %832 : vector<8x32xf32>
    %835 = vector.extract_strided_slice %726 {offsets = [6, 0], sizes = [1, 32], strides = [1, 1]} : vector<8x32xf32> to vector<1x32xf32>
    %836 = vector.extract_strided_slice %728 {offsets = [6, 0], sizes = [1, 32], strides = [1, 1]} : vector<8x32xf32> to vector<1x32xf32>
    %c1_419 = arith.constant 1 : index
    %c6_420 = arith.constant 6 : index
    %c0_421 = arith.constant 0 : index
    %c0_422 = arith.constant 0 : index
    %837 = vector.load %arg11[%c1_419, %c6_420, %c0_421, %c0_422] : memref<2x8x8x32xf32, #tpu.memory_space<vmem>>, vector<1x1x8x32xf32>
    %838 = vector.shape_cast %837 : vector<1x1x8x32xf32> to vector<8x32xf32>
    %c1_423 = arith.constant 1 : index
    %c6_424 = arith.constant 6 : index
    %c0_425 = arith.constant 0 : index
    %c0_426 = arith.constant 0 : index
    %839 = vector.load %arg12[%c1_423, %c6_424, %c0_425, %c0_426] : memref<2x8x8x32xf32, #tpu.memory_space<vmem>>, vector<1x1x8x32xf32>
    %840 = vector.shape_cast %839 : vector<1x1x8x32xf32> to vector<8x32xf32>
    %841 = vector.broadcast %835 : vector<1x32xf32> to vector<8x32xf32>
    %842 = arith.mulf %841, %838 : vector<8x32xf32>
    %843 = vector.broadcast %836 : vector<1x32xf32> to vector<8x32xf32>
    %844 = arith.mulf %843, %840 : vector<8x32xf32>
    %845 = arith.subf %842, %844 : vector<8x32xf32>
    %846 = vector.broadcast %835 : vector<1x32xf32> to vector<8x32xf32>
    %847 = arith.mulf %846, %840 : vector<8x32xf32>
    %848 = vector.broadcast %836 : vector<1x32xf32> to vector<8x32xf32>
    %849 = arith.mulf %848, %838 : vector<8x32xf32>
    %850 = arith.addf %847, %849 : vector<8x32xf32>
    %851 = arith.addf %833, %845 : vector<8x32xf32>
    %852 = arith.addf %834, %850 : vector<8x32xf32>
    %853 = vector.extract_strided_slice %726 {offsets = [7, 0], sizes = [1, 32], strides = [1, 1]} : vector<8x32xf32> to vector<1x32xf32>
    %854 = vector.extract_strided_slice %728 {offsets = [7, 0], sizes = [1, 32], strides = [1, 1]} : vector<8x32xf32> to vector<1x32xf32>
    %c1_427 = arith.constant 1 : index
    %c7_428 = arith.constant 7 : index
    %c0_429 = arith.constant 0 : index
    %c0_430 = arith.constant 0 : index
    %855 = vector.load %arg11[%c1_427, %c7_428, %c0_429, %c0_430] : memref<2x8x8x32xf32, #tpu.memory_space<vmem>>, vector<1x1x8x32xf32>
    %856 = vector.shape_cast %855 : vector<1x1x8x32xf32> to vector<8x32xf32>
    %c1_431 = arith.constant 1 : index
    %c7_432 = arith.constant 7 : index
    %c0_433 = arith.constant 0 : index
    %c0_434 = arith.constant 0 : index
    %857 = vector.load %arg12[%c1_431, %c7_432, %c0_433, %c0_434] : memref<2x8x8x32xf32, #tpu.memory_space<vmem>>, vector<1x1x8x32xf32>
    %858 = vector.shape_cast %857 : vector<1x1x8x32xf32> to vector<8x32xf32>
    %859 = vector.broadcast %853 : vector<1x32xf32> to vector<8x32xf32>
    %860 = arith.mulf %859, %856 : vector<8x32xf32>
    %861 = vector.broadcast %854 : vector<1x32xf32> to vector<8x32xf32>
    %862 = arith.mulf %861, %858 : vector<8x32xf32>
    %863 = arith.subf %860, %862 : vector<8x32xf32>
    %864 = vector.broadcast %853 : vector<1x32xf32> to vector<8x32xf32>
    %865 = arith.mulf %864, %858 : vector<8x32xf32>
    %866 = vector.broadcast %854 : vector<1x32xf32> to vector<8x32xf32>
    %867 = arith.mulf %866, %856 : vector<8x32xf32>
    %868 = arith.addf %865, %867 : vector<8x32xf32>
    %869 = arith.addf %851, %863 : vector<8x32xf32>
    %870 = arith.addf %852, %868 : vector<8x32xf32>
    %c0_435 = arith.constant 0 : index
    %c0_436 = arith.constant 0 : index
    %871 = vector.load %arg9[%c0_435, %c0_436] : memref<32x256xf32, #tpu.memory_space<vmem>>, vector<32x256xf32>
    %cst_437 = arith.constant dense<0.000000e+00> : vector<8x256xf32>
    %872 = tpu.matmul %869, %871, %cst_437 {dimension_numbers = #tpu.dot_dimension_numbers<[1], [0], [0], [1], [0, 0, 1, 1], [], []>} : vector<8x32xf32>, vector<32x256xf32>, vector<8x256xf32> -> vector<8x256xf32>
    %c0_438 = arith.constant 0 : index
    %c0_439 = arith.constant 0 : index
    %873 = vector.load %arg10[%c0_438, %c0_439] : memref<32x256xf32, #tpu.memory_space<vmem>>, vector<32x256xf32>
    %cst_440 = arith.constant dense<0.000000e+00> : vector<8x256xf32>
    %874 = tpu.matmul %870, %873, %cst_440 {dimension_numbers = #tpu.dot_dimension_numbers<[1], [0], [0], [1], [0, 0, 1, 1], [], []>} : vector<8x32xf32>, vector<32x256xf32>, vector<8x256xf32> -> vector<8x256xf32>
    %875 = arith.addf %872, %874 : vector<8x256xf32>
    %c1_441 = arith.constant 1 : index
    %c0_442 = arith.constant 0 : index
    %c0_443 = arith.constant 0 : index
    %876 = vector.load %arg13[%c1_441, %c0_442, %c0_443] : memref<2x8x8xf32, #tpu.memory_space<vmem>>, vector<1x8x8xf32>
    %877 = vector.shape_cast %876 : vector<1x8x8xf32> to vector<8x8xf32>
    %cst_444 = arith.constant dense<0.000000e+00> : vector<8x256xf32>
    %878 = tpu.matmul %877, %724, %cst_444 {dimension_numbers = #tpu.dot_dimension_numbers<[1], [0], [0], [1], [0, 0, 1, 1], [], []>} : vector<8x8xf32>, vector<8x256xf32>, vector<8x256xf32> -> vector<8x256xf32>
    %c1_445 = arith.constant 1 : index
    %c0_446 = arith.constant 0 : index
    %c0_447 = arith.constant 0 : index
    %879 = vector.load %arg14[%c1_445, %c0_446, %c0_447] : memref<2x8x1xf32, #tpu.memory_space<vmem>>, vector<1x8x1xf32>
    %880 = vector.shape_cast %879 : vector<1x8x1xf32> to vector<8x1xf32>
    %881 = vector.broadcast %880 : vector<8x1xf32> to vector<8x256xf32>
    %882 = arith.addf %878, %881 : vector<8x256xf32>
    %883 = arith.addf %882, %875 : vector<8x256xf32>
    %884 = arith.mulf %883, %883 : vector<8x256xf32>
    %885 = arith.mulf %883, %884 : vector<8x256xf32>
    %cst_448 = arith.constant 4.471500e-02 : f32
    %886 = vector.broadcast %cst_448 : f32 to vector<8x256xf32>
    %887 = arith.mulf %886, %885 : vector<8x256xf32>
    %888 = arith.addf %883, %887 : vector<8x256xf32>
    %cst_449 = arith.constant 0.797884583 : f32
    %889 = vector.broadcast %cst_449 : f32 to vector<8x256xf32>
    %890 = arith.mulf %889, %888 : vector<8x256xf32>
    %891 = math.tanh %890 : vector<8x256xf32>
    %cst_450 = arith.constant 1.000000e+00 : f32
    %892 = vector.broadcast %cst_450 : f32 to vector<8x256xf32>
    %893 = arith.addf %892, %891 : vector<8x256xf32>
    %cst_451 = arith.constant 5.000000e-01 : f32
    %894 = vector.broadcast %cst_451 : f32 to vector<8x256xf32>
    %895 = arith.mulf %894, %893 : vector<8x256xf32>
    %896 = arith.mulf %883, %895 : vector<8x256xf32>
    %c0_452 = arith.constant 0 : index
    %c0_453 = arith.constant 0 : index
    %c0_454 = arith.constant 0 : index
    %897 = vector.load %arg15[%c0_452, %c0_453, %c0_454] : memref<8x8x256xf32, #tpu.memory_space<vmem>>, vector<1x8x256xf32>
    %898 = vector.shape_cast %897 : vector<1x8x256xf32> to vector<8x256xf32>
    %899 = vector.extract_strided_slice %896 {offsets = [0, 0], sizes = [1, 256], strides = [1, 1]} : vector<8x256xf32> to vector<1x256xf32>
    %900 = vector.broadcast %899 : vector<1x256xf32> to vector<8x256xf32>
    %901 = arith.mulf %898, %900 : vector<8x256xf32>
    %cst_455 = arith.constant dense<0.000000e+00> : vector<8xf32>
    %902 = vector.multi_reduction <add>, %901, %cst_455 [1] : vector<8x256xf32> to vector<8xf32>
    %903 = vector.shape_cast %902 : vector<8xf32> to vector<8x1xf32>
    %c1_456 = arith.constant 1 : index
    %c0_457 = arith.constant 0 : index
    %c0_458 = arith.constant 0 : index
    %904 = vector.load %arg15[%c1_456, %c0_457, %c0_458] : memref<8x8x256xf32, #tpu.memory_space<vmem>>, vector<1x8x256xf32>
    %905 = vector.shape_cast %904 : vector<1x8x256xf32> to vector<8x256xf32>
    %906 = vector.extract_strided_slice %896 {offsets = [1, 0], sizes = [1, 256], strides = [1, 1]} : vector<8x256xf32> to vector<1x256xf32>
    %907 = vector.broadcast %906 : vector<1x256xf32> to vector<8x256xf32>
    %908 = arith.mulf %905, %907 : vector<8x256xf32>
    %cst_459 = arith.constant dense<0.000000e+00> : vector<8xf32>
    %909 = vector.multi_reduction <add>, %908, %cst_459 [1] : vector<8x256xf32> to vector<8xf32>
    %910 = vector.shape_cast %909 : vector<8xf32> to vector<8x1xf32>
    %911 = arith.addf %903, %910 : vector<8x1xf32>
    %c2_460 = arith.constant 2 : index
    %c0_461 = arith.constant 0 : index
    %c0_462 = arith.constant 0 : index
    %912 = vector.load %arg15[%c2_460, %c0_461, %c0_462] : memref<8x8x256xf32, #tpu.memory_space<vmem>>, vector<1x8x256xf32>
    %913 = vector.shape_cast %912 : vector<1x8x256xf32> to vector<8x256xf32>
    %914 = vector.extract_strided_slice %896 {offsets = [2, 0], sizes = [1, 256], strides = [1, 1]} : vector<8x256xf32> to vector<1x256xf32>
    %915 = vector.broadcast %914 : vector<1x256xf32> to vector<8x256xf32>
    %916 = arith.mulf %913, %915 : vector<8x256xf32>
    %cst_463 = arith.constant dense<0.000000e+00> : vector<8xf32>
    %917 = vector.multi_reduction <add>, %916, %cst_463 [1] : vector<8x256xf32> to vector<8xf32>
    %918 = vector.shape_cast %917 : vector<8xf32> to vector<8x1xf32>
    %919 = arith.addf %911, %918 : vector<8x1xf32>
    %c3_464 = arith.constant 3 : index
    %c0_465 = arith.constant 0 : index
    %c0_466 = arith.constant 0 : index
    %920 = vector.load %arg15[%c3_464, %c0_465, %c0_466] : memref<8x8x256xf32, #tpu.memory_space<vmem>>, vector<1x8x256xf32>
    %921 = vector.shape_cast %920 : vector<1x8x256xf32> to vector<8x256xf32>
    %922 = vector.extract_strided_slice %896 {offsets = [3, 0], sizes = [1, 256], strides = [1, 1]} : vector<8x256xf32> to vector<1x256xf32>
    %923 = vector.broadcast %922 : vector<1x256xf32> to vector<8x256xf32>
    %924 = arith.mulf %921, %923 : vector<8x256xf32>
    %cst_467 = arith.constant dense<0.000000e+00> : vector<8xf32>
    %925 = vector.multi_reduction <add>, %924, %cst_467 [1] : vector<8x256xf32> to vector<8xf32>
    %926 = vector.shape_cast %925 : vector<8xf32> to vector<8x1xf32>
    %927 = arith.addf %919, %926 : vector<8x1xf32>
    %c4_468 = arith.constant 4 : index
    %c0_469 = arith.constant 0 : index
    %c0_470 = arith.constant 0 : index
    %928 = vector.load %arg15[%c4_468, %c0_469, %c0_470] : memref<8x8x256xf32, #tpu.memory_space<vmem>>, vector<1x8x256xf32>
    %929 = vector.shape_cast %928 : vector<1x8x256xf32> to vector<8x256xf32>
    %930 = vector.extract_strided_slice %896 {offsets = [4, 0], sizes = [1, 256], strides = [1, 1]} : vector<8x256xf32> to vector<1x256xf32>
    %931 = vector.broadcast %930 : vector<1x256xf32> to vector<8x256xf32>
    %932 = arith.mulf %929, %931 : vector<8x256xf32>
    %cst_471 = arith.constant dense<0.000000e+00> : vector<8xf32>
    %933 = vector.multi_reduction <add>, %932, %cst_471 [1] : vector<8x256xf32> to vector<8xf32>
    %934 = vector.shape_cast %933 : vector<8xf32> to vector<8x1xf32>
    %935 = arith.addf %927, %934 : vector<8x1xf32>
    %c5_472 = arith.constant 5 : index
    %c0_473 = arith.constant 0 : index
    %c0_474 = arith.constant 0 : index
    %936 = vector.load %arg15[%c5_472, %c0_473, %c0_474] : memref<8x8x256xf32, #tpu.memory_space<vmem>>, vector<1x8x256xf32>
    %937 = vector.shape_cast %936 : vector<1x8x256xf32> to vector<8x256xf32>
    %938 = vector.extract_strided_slice %896 {offsets = [5, 0], sizes = [1, 256], strides = [1, 1]} : vector<8x256xf32> to vector<1x256xf32>
    %939 = vector.broadcast %938 : vector<1x256xf32> to vector<8x256xf32>
    %940 = arith.mulf %937, %939 : vector<8x256xf32>
    %cst_475 = arith.constant dense<0.000000e+00> : vector<8xf32>
    %941 = vector.multi_reduction <add>, %940, %cst_475 [1] : vector<8x256xf32> to vector<8xf32>
    %942 = vector.shape_cast %941 : vector<8xf32> to vector<8x1xf32>
    %943 = arith.addf %935, %942 : vector<8x1xf32>
    %c6_476 = arith.constant 6 : index
    %c0_477 = arith.constant 0 : index
    %c0_478 = arith.constant 0 : index
    %944 = vector.load %arg15[%c6_476, %c0_477, %c0_478] : memref<8x8x256xf32, #tpu.memory_space<vmem>>, vector<1x8x256xf32>
    %945 = vector.shape_cast %944 : vector<1x8x256xf32> to vector<8x256xf32>
    %946 = vector.extract_strided_slice %896 {offsets = [6, 0], sizes = [1, 256], strides = [1, 1]} : vector<8x256xf32> to vector<1x256xf32>
    %947 = vector.broadcast %946 : vector<1x256xf32> to vector<8x256xf32>
    %948 = arith.mulf %945, %947 : vector<8x256xf32>
    %cst_479 = arith.constant dense<0.000000e+00> : vector<8xf32>
    %949 = vector.multi_reduction <add>, %948, %cst_479 [1] : vector<8x256xf32> to vector<8xf32>
    %950 = vector.shape_cast %949 : vector<8xf32> to vector<8x1xf32>
    %951 = arith.addf %943, %950 : vector<8x1xf32>
    %c7_480 = arith.constant 7 : index
    %c0_481 = arith.constant 0 : index
    %c0_482 = arith.constant 0 : index
    %952 = vector.load %arg15[%c7_480, %c0_481, %c0_482] : memref<8x8x256xf32, #tpu.memory_space<vmem>>, vector<1x8x256xf32>
    %953 = vector.shape_cast %952 : vector<1x8x256xf32> to vector<8x256xf32>
    %954 = vector.extract_strided_slice %896 {offsets = [7, 0], sizes = [1, 256], strides = [1, 1]} : vector<8x256xf32> to vector<1x256xf32>
    %955 = vector.broadcast %954 : vector<1x256xf32> to vector<8x256xf32>
    %956 = arith.mulf %953, %955 : vector<8x256xf32>
    %cst_483 = arith.constant dense<0.000000e+00> : vector<8xf32>
    %957 = vector.multi_reduction <add>, %956, %cst_483 [1] : vector<8x256xf32> to vector<8xf32>
    %958 = vector.shape_cast %957 : vector<8xf32> to vector<8x1xf32>
    %959 = arith.addf %951, %958 : vector<8x1xf32>
    %c0_484 = arith.constant 0 : index
    %c0_485 = arith.constant 0 : index
    %960 = vector.load %arg16[%c0_484, %c0_485] : memref<32x8xf32, #tpu.memory_space<vmem>>, vector<32x8xf32>
    %cst_486 = arith.constant dense<0.000000e+00> : vector<32x256xf32>
    %961 = tpu.matmul %960, %896, %cst_486 {dimension_numbers = #tpu.dot_dimension_numbers<[1], [0], [0], [1], [0, 0, 1, 1], [], []>} : vector<32x8xf32>, vector<8x256xf32>, vector<32x256xf32> -> vector<32x256xf32>
    %c0_487 = arith.constant 0 : index
    %c0_488 = arith.constant 0 : index
    %962 = vector.load %arg17[%c0_487, %c0_488] : memref<32x1xf32, #tpu.memory_space<vmem>>, vector<32x1xf32>
    %963 = vector.broadcast %962 : vector<32x1xf32> to vector<32x256xf32>
    %964 = arith.addf %961, %963 : vector<32x256xf32>
    %965 = arith.mulf %964, %964 : vector<32x256xf32>
    %966 = arith.mulf %964, %965 : vector<32x256xf32>
    %cst_489 = arith.constant 4.471500e-02 : f32
    %967 = vector.broadcast %cst_489 : f32 to vector<32x256xf32>
    %968 = arith.mulf %967, %966 : vector<32x256xf32>
    %969 = arith.addf %964, %968 : vector<32x256xf32>
    %cst_490 = arith.constant 0.797884583 : f32
    %970 = vector.broadcast %cst_490 : f32 to vector<32x256xf32>
    %971 = arith.mulf %970, %969 : vector<32x256xf32>
    %972 = math.tanh %971 : vector<32x256xf32>
    %cst_491 = arith.constant 1.000000e+00 : f32
    %973 = vector.broadcast %cst_491 : f32 to vector<32x256xf32>
    %974 = arith.addf %973, %972 : vector<32x256xf32>
    %cst_492 = arith.constant 5.000000e-01 : f32
    %975 = vector.broadcast %cst_492 : f32 to vector<32x256xf32>
    %976 = arith.mulf %975, %974 : vector<32x256xf32>
    %977 = arith.mulf %964, %976 : vector<32x256xf32>
    %c0_493 = arith.constant 0 : index
    %c0_494 = arith.constant 0 : index
    %978 = vector.load %arg18[%c0_493, %c0_494] : memref<8x32xf32, #tpu.memory_space<vmem>>, vector<8x32xf32>
    %cst_495 = arith.constant dense<0.000000e+00> : vector<8x256xf32>
    %979 = tpu.matmul %978, %977, %cst_495 {dimension_numbers = #tpu.dot_dimension_numbers<[1], [0], [0], [1], [0, 0, 1, 1], [], []>} : vector<8x32xf32>, vector<32x256xf32>, vector<8x256xf32> -> vector<8x256xf32>
    %c0_496 = arith.constant 0 : index
    %c0_497 = arith.constant 0 : index
    %980 = vector.load %arg19[%c0_496, %c0_497] : memref<8x1xf32, #tpu.memory_space<vmem>>, vector<8x1xf32>
    %981 = vector.broadcast %980 : vector<8x1xf32> to vector<8x256xf32>
    %982 = arith.addf %979, %981 : vector<8x256xf32>
    %c0_498 = arith.constant 0 : index
    %c0_499 = arith.constant 0 : index
    %983 = vector.load %arg20[%c0_498, %c0_499] : memref<1x256xf32, #tpu.memory_space<vmem>>, vector<1x256xf32>
    %984 = vector.broadcast %983 : vector<1x256xf32> to vector<8x256xf32>
    %985 = arith.mulf %982, %984 : vector<8x256xf32>
    %cst_500 = arith.constant dense<0.000000e+00> : vector<8xf32>
    %986 = vector.multi_reduction <add>, %985, %cst_500 [1] : vector<8x256xf32> to vector<8xf32>
    %987 = vector.shape_cast %986 : vector<8xf32> to vector<8x1xf32>
    %988 = tpu.concatenate %477, %959 in 1 : vector<8x1xf32>, vector<8x1xf32> -> vector<8x2xf32>
    %989 = tpu.concatenate %505, %987 in 1 : vector<8x1xf32>, vector<8x1xf32> -> vector<8x2xf32>
    %c0_501 = arith.constant 0 : index
    %c0_502 = arith.constant 0 : index
    %990 = vector.load %arg21[%c0_501, %c0_502] : memref<64x8xf32, #tpu.memory_space<vmem>>, vector<64x8xf32>
    %cst_503 = arith.constant dense<0.000000e+00> : vector<64x2xf32>
    %991 = tpu.matmul %990, %988, %cst_503 {dimension_numbers = #tpu.dot_dimension_numbers<[1], [0], [0], [1], [0, 0, 1, 1], [], []>} : vector<64x8xf32>, vector<8x2xf32>, vector<64x2xf32> -> vector<64x2xf32>
    %c0_504 = arith.constant 0 : index
    %c0_505 = arith.constant 0 : index
    %992 = vector.load %arg22[%c0_504, %c0_505] : memref<64x8xf32, #tpu.memory_space<vmem>>, vector<64x8xf32>
    %cst_506 = arith.constant dense<0.000000e+00> : vector<64x2xf32>
    %993 = tpu.matmul %992, %989, %cst_506 {dimension_numbers = #tpu.dot_dimension_numbers<[1], [0], [0], [1], [0, 0, 1, 1], [], []>} : vector<64x8xf32>, vector<8x2xf32>, vector<64x2xf32> -> vector<64x2xf32>
    %994 = arith.addf %991, %993 : vector<64x2xf32>
    %c0_507 = arith.constant 0 : index
    %c0_508 = arith.constant 0 : index
    %995 = vector.load %arg23[%c0_507, %c0_508] : memref<64x1xf32, #tpu.memory_space<vmem>>, vector<64x1xf32>
    %996 = vector.broadcast %995 : vector<64x1xf32> to vector<64x2xf32>
    %997 = arith.addf %994, %996 : vector<64x2xf32>
    %998 = arith.mulf %997, %997 : vector<64x2xf32>
    %999 = arith.mulf %997, %998 : vector<64x2xf32>
    %cst_509 = arith.constant 4.471500e-02 : f32
    %1000 = vector.broadcast %cst_509 : f32 to vector<64x2xf32>
    %1001 = arith.mulf %1000, %999 : vector<64x2xf32>
    %1002 = arith.addf %997, %1001 : vector<64x2xf32>
    %cst_510 = arith.constant 0.797884583 : f32
    %1003 = vector.broadcast %cst_510 : f32 to vector<64x2xf32>
    %1004 = arith.mulf %1003, %1002 : vector<64x2xf32>
    %1005 = math.tanh %1004 : vector<64x2xf32>
    %cst_511 = arith.constant 1.000000e+00 : f32
    %1006 = vector.broadcast %cst_511 : f32 to vector<64x2xf32>
    %1007 = arith.addf %1006, %1005 : vector<64x2xf32>
    %cst_512 = arith.constant 5.000000e-01 : f32
    %1008 = vector.broadcast %cst_512 : f32 to vector<64x2xf32>
    %1009 = arith.mulf %1008, %1007 : vector<64x2xf32>
    %1010 = arith.mulf %997, %1009 : vector<64x2xf32>
    %c0_513 = arith.constant 0 : index
    %c0_514 = arith.constant 0 : index
    %1011 = vector.load %arg24[%c0_513, %c0_514] : memref<3x64xf32, #tpu.memory_space<vmem>>, vector<3x64xf32>
    %cst_515 = arith.constant dense<0.000000e+00> : vector<3x2xf32>
    %1012 = tpu.matmul %1011, %1010, %cst_515 {dimension_numbers = #tpu.dot_dimension_numbers<[1], [0], [0], [1], [0, 0, 1, 1], [], []>} : vector<3x64xf32>, vector<64x2xf32>, vector<3x2xf32> -> vector<3x2xf32>
    %c0_516 = arith.constant 0 : index
    %c0_517 = arith.constant 0 : index
    %1013 = vector.load %arg25[%c0_516, %c0_517] : memref<3x1xf32, #tpu.memory_space<vmem>>, vector<3x1xf32>
    %1014 = vector.broadcast %1013 : vector<3x1xf32> to vector<3x2xf32>
    %1015 = arith.addf %1012, %1014 : vector<3x2xf32>
    %c0_518 = arith.constant 0 : index
    %c0_519 = arith.constant 0 : index
    %1016 = vector.load %arg26[%c0_518, %c0_519] : memref<3x2xf32, #tpu.memory_space<vmem>>, vector<3x2xf32>
    tpu.vector_store %arg26[%c0_518, %c0_519], %1015 {strides = array<i32>} : memref<3x2xf32, #tpu.memory_space<vmem>>, vector<3x2xf32>,
    return
  }
  func.func @transform_0(%arg0: i32) -> (i32, i32) {
    %c0_i32 = arith.constant 0 : i32
    %c0_i32_0 = arith.constant 0 : i32
    %c0_i32_1 = arith.constant 0 : i32
    return %c0_i32, %c0_i32_0 : i32, i32
  }
  func.func @transform_1(%arg0: i32) -> (i32, i32) {
    %c0_i32 = arith.constant 0 : i32
    %c0_i32_0 = arith.constant 0 : i32
    %c0_i32_1 = arith.constant 0 : i32
    return %c0_i32, %c0_i32_0 : i32, i32
  }
  func.func @transform_2(%arg0: i32) -> (i32, i32) {
    %c0_i32 = arith.constant 0 : i32
    %c0_i32_0 = arith.constant 0 : i32
    %c0_i32_1 = arith.constant 0 : i32
    return %c0_i32, %c0_i32_0 : i32, i32
  }
  func.func @transform_3(%arg0: i32) -> (i32, i32) {
    %c0_i32 = arith.constant 0 : i32
    %c0_i32_0 = arith.constant 0 : i32
    %c0_i32_1 = arith.constant 0 : i32
    return %c0_i32, %c0_i32_0 : i32, i32
  }
  func.func @transform_4(%arg0: i32) -> (i32, i32) {
    %c0_i32 = arith.constant 0 : i32
    %c0_i32_0 = arith.constant 0 : i32
    %c0_i32_1 = arith.constant 0 : i32
    return %c0_i32, %c0_i32_0 : i32, i32
  }
  func.func @transform_5(%arg0: i32) -> (i32, i32, i32) {
    %c0_i32 = arith.constant 0 : i32
    %c0_i32_0 = arith.constant 0 : i32
    %c0_i32_1 = arith.constant 0 : i32
    %c0_i32_2 = arith.constant 0 : i32
    return %c0_i32, %c0_i32_0, %c0_i32_1 : i32, i32, i32
  }
  func.func @transform_6(%arg0: i32) -> (i32, i32) {
    %c0_i32 = arith.constant 0 : i32
    %c0_i32_0 = arith.constant 0 : i32
    %c0_i32_1 = arith.constant 0 : i32
    return %c0_i32, %c0_i32_0 : i32, i32
  }
  func.func @transform_7(%arg0: i32) -> (i32, i32) {
    %c0_i32 = arith.constant 0 : i32
    %c0_i32_0 = arith.constant 0 : i32
    %c0_i32_1 = arith.constant 0 : i32
    return %c0_i32, %c0_i32_0 : i32, i32
  }
  func.func @transform_8(%arg0: i32) -> (i32, i32) {
    %c0_i32 = arith.constant 0 : i32
    %c0_i32_0 = arith.constant 0 : i32
    %c0_i32_1 = arith.constant 0 : i32
    return %c0_i32, %c0_i32_0 : i32, i32
  }
  func.func @transform_9(%arg0: i32) -> (i32, i32) {
    %c0_i32 = arith.constant 0 : i32
    %c0_i32_0 = arith.constant 0 : i32
    %c0_i32_1 = arith.constant 0 : i32
    return %c0_i32, %c0_i32_0 : i32, i32
  }
  func.func @transform_10(%arg0: i32) -> (i32, i32, i32, i32) {
    %c0_i32 = arith.constant 0 : i32
    %c0_i32_0 = arith.constant 0 : i32
    %c0_i32_1 = arith.constant 0 : i32
    %c0_i32_2 = arith.constant 0 : i32
    %c0_i32_3 = arith.constant 0 : i32
    return %c0_i32, %c0_i32_0, %c0_i32_1, %c0_i32_2 : i32, i32, i32, i32
  }
  func.func @transform_11(%arg0: i32) -> (i32, i32, i32, i32) {
    %c0_i32 = arith.constant 0 : i32
    %c0_i32_0 = arith.constant 0 : i32
    %c0_i32_1 = arith.constant 0 : i32
    %c0_i32_2 = arith.constant 0 : i32
    %c0_i32_3 = arith.constant 0 : i32
    return %c0_i32, %c0_i32_0, %c0_i32_1, %c0_i32_2 : i32, i32, i32, i32
  }
  func.func @transform_12(%arg0: i32) -> (i32, i32, i32) {
    %c0_i32 = arith.constant 0 : i32
    %c0_i32_0 = arith.constant 0 : i32
    %c0_i32_1 = arith.constant 0 : i32
    %c0_i32_2 = arith.constant 0 : i32
    return %c0_i32, %c0_i32_0, %c0_i32_1 : i32, i32, i32
  }
  func.func @transform_13(%arg0: i32) -> (i32, i32, i32) {
    %c0_i32 = arith.constant 0 : i32
    %c0_i32_0 = arith.constant 0 : i32
    %c0_i32_1 = arith.constant 0 : i32
    %c0_i32_2 = arith.constant 0 : i32
    return %c0_i32, %c0_i32_0, %c0_i32_1 : i32, i32, i32
  }
  func.func @transform_14(%arg0: i32) -> (i32, i32, i32) {
    %c0_i32 = arith.constant 0 : i32
    %c0_i32_0 = arith.constant 0 : i32
    %c0_i32_1 = arith.constant 0 : i32
    %c0_i32_2 = arith.constant 0 : i32
    return %c0_i32, %c0_i32_0, %c0_i32_1 : i32, i32, i32
  }
  func.func @transform_15(%arg0: i32) -> (i32, i32) {
    %c0_i32 = arith.constant 0 : i32
    %c0_i32_0 = arith.constant 0 : i32
    %c0_i32_1 = arith.constant 0 : i32
    return %c0_i32, %c0_i32_0 : i32, i32
  }
  func.func @transform_16(%arg0: i32) -> (i32, i32) {
    %c0_i32 = arith.constant 0 : i32
    %c0_i32_0 = arith.constant 0 : i32
    %c0_i32_1 = arith.constant 0 : i32
    return %c0_i32, %c0_i32_0 : i32, i32
  }
  func.func @transform_17(%arg0: i32) -> (i32, i32) {
    %c0_i32 = arith.constant 0 : i32
    %c0_i32_0 = arith.constant 0 : i32
    %c0_i32_1 = arith.constant 0 : i32
    return %c0_i32, %c0_i32_0 : i32, i32
  }
  func.func @transform_18(%arg0: i32) -> (i32, i32) {
    %c0_i32 = arith.constant 0 : i32
    %c0_i32_0 = arith.constant 0 : i32
    %c0_i32_1 = arith.constant 0 : i32
    return %c0_i32, %c0_i32_0 : i32, i32
  }
  func.func @transform_19(%arg0: i32) -> (i32, i32) {
    %c0_i32 = arith.constant 0 : i32
    %c0_i32_0 = arith.constant 0 : i32
    %c0_i32_1 = arith.constant 0 : i32
    return %c0_i32, %c0_i32_0 : i32, i32
  }
  func.func @transform_20(%arg0: i32) -> (i32, i32) {
    %c0_i32 = arith.constant 0 : i32
    %c0_i32_0 = arith.constant 0 : i32
    %c0_i32_1 = arith.constant 0 : i32
    return %c0_i32, %c0_i32_0 : i32, i32
  }
  func.func @transform_21(%arg0: i32) -> (i32, i32) {
    %c0_i32 = arith.constant 0 : i32
    %c0_i32_0 = arith.constant 0 : i32
    %c0_i32_1 = arith.constant 0 : i32
    return %c0_i32, %c0_i32_0 : i32, i32
  }
  func.func @transform_22(%arg0: i32) -> (i32, i32) {
    %c0_i32 = arith.constant 0 : i32
    %c0_i32_0 = arith.constant 0 : i32
    %c0_i32_1 = arith.constant 0 : i32
    return %c0_i32, %c0_i32_0 : i32, i32
  }
  func.func @transform_23(%arg0: i32) -> (i32, i32) {
    %c0_i32 = arith.constant 0 : i32
    %c0_i32_0 = arith.constant 0 : i32
    %c0_i32_1 = arith.constant 0 : i32
    return %c0_i32, %c0_i32_0 : i32, i32
  }
  func.func @transform_24(%arg0: i32) -> (i32, i32) {
    %c0_i32 = arith.constant 0 : i32
    %c0_i32_0 = arith.constant 0 : i32
    %c0_i32_1 = arith.constant 0 : i32
    return %c0_i32, %c0_i32_0 : i32, i32
  }
  func.func @transform_25(%arg0: i32) -> (i32, i32) {
    %c0_i32 = arith.constant 0 : i32
    %c0_i32_0 = arith.constant 0 : i32
    %c0_i32_1 = arith.constant 0 : i32
    return %c0_i32, %c0_i32_0 : i32, i32
  }
}

</mosaic_0001>

<bundles_post_ra>
// kernel: fnn2d_forward.1
= control target key start
LH: loop header
LB: loop body
LE: loop exit
PB: predicated region body
PF: predicated region fallthrough
CT: control target
= control target key end

     0   :  { %vm93_vm0 = vcmask 1043456   ;;  %vm89_vm1 = vcmask 31744   ;;  %v6954_v0 = vmov 0.0   ;;  %vm4607_vm2 = vmmov 0   ;;  %s4609_s26 = smov 125   ;;  %s4612_s27 = smov 126   ;;  %s6918_s1 = inlined_call_operand.vmem [shape: f32[4,32], index: 1, kind: input, shape index: {}]   ;;  %s6919_s0 = inlined_call_operand.vmem [shape: f32[2,4], index: 0, kind: input, shape index: {}]   ;;  %s6920_s3 = inlined_call_operand.vmem [shape: f32[32,8], index: 3, kind: input, shape index: {}]   ;;  %s6921_s2 = inlined_call_operand.vmem [shape: f32[1,32], index: 2, kind: input, shape index: {}]   ;;  %s6922_s4 = inlined_call_operand.vmem [shape: f32[1,8], index: 4, kind: input, shape index: {}]   ;;  %s6923_s13 = inlined_call_operand.vmem [shape: f32[2,8,1], index: 13, kind: input, shape index: {}]   ;;  %s6924_s16 = inlined_call_operand.vmem [shape: f32[32,1], index: 16, kind: input, shape index: {}]   ;;  %s6925_s6 = inlined_call_operand.vmem [shape: f32[256,32], index: 6, kind: input, shape index: {}]   ;;  %s6926_s7 = inlined_call_operand.vmem [shape: f32[256,32], index: 7, kind: input, shape index: {}]   ;;  %s6927_s9 = inlined_call_operand.vmem [shape: f32[32,256], index: 9, kind: input, shape index: {}]   ;;  %s6928_s5 = inlined_call_operand.vmem [shape: f32[8,8,256], index: 5, kind: input, shape index: {}]   ;;  %s6929_s8 = inlined_call_operand.vmem [shape: f32[32,256], index: 8, kind: input, shape index: {}]   ;;  %s6930_s18 = inlined_call_operand.vmem [shape: f32[8,1], index: 18, kind: input, shape index: {}]   ;;  %s6931_s10 = inlined_call_operand.vmem [shape: f32[2,8,8,32], index: 10, kind: input, shape index: {}]   ;;  %s6932_s11 = inlined_call_operand.vmem [shape: f32[2,8,8,32], index: 11, kind: input, shape index: {}]   ;;  %s6933_s12 = inlined_call_operand.vmem [shape: f32[2,8,8], index: 12, kind: input, shape index: {}]   ;;  %s6934_s14 = inlined_call_operand.vmem [shape: f32[8,8,256], index: 14, kind: input, shape index: {}]   ;;  %s6935_s15 = inlined_call_operand.vmem [shape: f32[32,8], index: 15, kind: input, shape index: {}]   ;;  %s6936_s17 = inlined_call_operand.vmem [shape: f32[8,32], index: 17, kind: input, shape index: {}]   ;;  %s6937_s19 = inlined_call_operand.vmem [shape: f32[1,256], index: 19, kind: input, shape index: {}]   ;;  %s6938_s22 = inlined_call_operand.vmem [shape: f32[64,1], index: 22, kind: input, shape index: {}]   ;;  %s6939_s21 = inlined_call_operand.vmem [shape: f32[64,8], index: 21, kind: input, shape index: {}]   ;;  %s6940_s20 = inlined_call_operand.vmem [shape: f32[64,8], index: 20, kind: input, shape index: {}]   ;;  %s6941_s24 = inlined_call_operand.vmem [shape: f32[3,1], index: 24, kind: input, shape index: {}]   ;;  %s6942_s23 = inlined_call_operand.vmem [shape: f32[3,64], index: 23, kind: input, shape index: {}]   ;;  %s6943_s25 = inlined_call_operand.vmem [shape: f32[3,2], index: 25, kind: output, shape index: {}]  }
   0x1   :  { %7143 = sst [smem:[#allocation93_spill]] %s6918_s1  ;;  %4298 = vmatprep.subr.mxu0 %v6954_v0  ;;  %4300 = vmatprep.mubr.msk.f32.mxu0 %vm4607_vm2, %v6954_v0  ;;  %vm187_vm3 = vcmask 261120   ;;  %v4608_v20 = vmov 0   ;;  %s6951_s28 = smov 123   ;;  %vm884_vm4 = vcmask 64512   ;;  %vm3388_vm5 = vcmask 7168  }
   0x2   :  { %7144 = sst [smem:[#allocation94_spill]] %s6919_s0  ;;  %4303 = vmatprep.subr.mxu1 %v6954_v0  ;;  %4311 = vmatprep.mubr.msk.f32.mxu1 %vm4607_vm2, %v6954_v0  ;;  %s4610_s0 = smov 127   ;;  %vm3800_vm6 = vcmask 523264   ;;  %vm3874_vm7 = vcmask 10240  }
   0x3   :  { %7145 = sst [smem:[#allocation95_spill]] %s6920_s3  ;;  %4403 = vset.pattern.permute.xlu1 %v4608_v20  ;;  %4404 = vset.pattern.permute.xlu0 %v4608_v20  ;;  %s6952_s29 = smov 121  }
   0x4   :  { %7146 = sst [smem:[#allocation96_spill]] %s6921_s2 }
   0x5   :  { %7147 = sst [smem:[#allocation97_spill]] %s6922_s4  ;;  %s6950_s4 = smov 122  }
   0x6   :  { %7148 = sst [smem:[#allocation98_spill]] %s6923_s13 }
   0x7   :  { %7149 = sst [smem:[#allocation99_spill]] %s6924_s16 }
   0x8   :  { %7150 = sst [smem:[#allocation100_spill]] %s6925_s6  ;;  %s7171_s6 = smov 124  }
   0x9   :  { %7151 = sst [smem:[#allocation101_spill]] %s6926_s7 }
   0xa   :  { %7152 = sst [smem:[#allocation102_spill]] %s6927_s9 }
   0xb   :  { %s7153_s16 = sld [smem:[#allocation93_spill]] }
   0xc   :  { %s7154_s2 = sld [smem:[#allocation94_spill]] }
   0xd   :  { %s7155_s7 = sld [smem:[#allocation95_spill]] }
   0xe   :  { %s7158_s1 = sld [smem:[#allocation98_spill]] }
   0xf   :  { %s7159_s30 = sld [smem:[#allocation99_spill]] }
  0x11   :  { %v81_v1 = vld [vmem:[%s7153_s16] sm:$0xf]  ;;  %s7156_s16 = sld [smem:[#allocation96_spill]] }
  0x12   :  { %v80_v2 = vld [vmem:[%s7154_s2] sm:$0x3]  ;;  %4299 = vmatpush3.msk.msra.mxu0 %vm93_vm0, %v81_v1  ;;  %s7157_s2 = sld [smem:[#allocation97_spill]] }
  0x13   :  { %4301 = vmatmul.mubr.msk.f32.vlgmr.msra.gmra.mxu0 %vm89_vm1, %v80_v2  ;;  %v179_v3 = vld [vmem:[%s7155_s7 + $0x18] sm:$0xff]  ;;  %v178_v4 = vld [vmem:[%s7155_s7 + $0x10] sm:$0xff]  ;;  %v177_v5 = vld [vmem:[%s7155_s7 + $0x8] sm:$0xff] }
  0x14   :  { %4304 = vmatpush3.msra.mxu1 %v179_v3  ;;  %v176_v6 = vld [vmem:[%s7155_s7] sm:$0xff]  ;;  %s6953_s7 = smov 124   ;;  %v3935_v27 = vld [vmem:[%s7158_s1 + $0x8] sm:$0xff] }
  0x15   :  { %4305 = vmatprep.subr.mxu1 %v6954_v0  ;;  %v878_v25 = vld [vmem:[%s7158_s1] sm:$0xff]  ;;  %v1669_v26 = vld [vmem:[%s7159_s30 + $0x18] sm:$0xff]  ;;  %v1668_v28 = vld [vmem:[%s7159_s30 + $0x10] sm:$0xff] }
  0x16   :  { %4306 = vmatpush3.msra.mxu1 %v178_v4  ;;  %v1667_v29 = vld [vmem:[%s7159_s30 + $0x8] sm:$0xff]  ;;  %v1666_v30 = vld [vmem:[%s7159_s30] sm:$0xff]  ;;  %s7161_s30 = sld [smem:[#allocation101_spill]] }
  0x17   :  { %4307 = vmatprep.subr.mxu1 %v6954_v0  ;;  %v3880_v7 = vld [vmem:[%s7156_s16] ss:$0 sm:$0xff]  ;;  %s7160_s16 = sld [smem:[#allocation100_spill]] }
  0x18   :  { %4308 = vmatpush3.msra.mxu1 %v177_v5  ;;  %v3883_v21 = vld [vmem:[%s7157_s2] ss:$0 sm:$0xff] }
  0x19   :  { %4309 = vmatprep.subr.mxu1 %v6954_v0 }
  0x1a   :  { %4310 = vmatpush3.msra.mxu1 %v176_v6 }
  0x1c   :  { %v4827_v35 = vld [vmem:[%s7161_s30 + $0xf8] sm:$0xff]  ;;  %v4844_v38 = vld [vmem:[%s7161_s30 + $0xf0] sm:$0xff]  ;;  %v4872_v42 = vld [vmem:[%s7161_s30 + $0xe8] sm:$0xff] }
  0x1d   :  { %v4810_v32 = vld [vmem:[%s7160_s16 + $0xf8] sm:$0xff]  ;;  %v4821_v34 = vld [vmem:[%s7160_s16 + $0xf0] sm:$0xff]  ;;  %4026 = vmatprep.subr.mxu1 %v4827_v35  ;;  %7163 = vst [vmem:[#allocation3_spill] sm:$0xff] %v4844_v38  ;;  %v4849_v39 = vld [vmem:[%s7160_s16 + $0xe8] sm:$0xff] }
  0x1e   :  { %3991 = vmatprep.subr.mxu0 %v4810_v32  ;;  %v4816_v33 = vld [vmem:[%s7160_s16 + $0x78] sm:$0xff]  ;;  %v4837_v37 = vld [vmem:[%s7160_s16 + $0x70] sm:$0xff]  ;;  %7164 = vst [vmem:[#allocation4_spill] sm:$0xff] %v4849_v39  ;;  %v4865_v41 = vld [vmem:[%s7160_s16 + $0x68] sm:$0xff] }
  0x1f   :  { %3992 = vmatpush3.msra.mxu0 %v4816_v33  ;;  %v4832_v36 = vld [vmem:[%s7161_s30 + $0x78] sm:$0xff]  ;;  %v4858_v40 = vld [vmem:[%s7161_s30 + $0x70] sm:$0xff]  ;;  %7166 = vst [vmem:[#allocation6_spill] sm:$0xff] %v4865_v41  ;;  %7167 = vst [vmem:[#allocation7_spill] sm:$0xff] %v4872_v42 }
  0x20   :  { %7162 = vst [vmem:[#allocation2_spill] sm:$0xff] %v4832_v36  ;;  %3993 = vmatprep.subr.mxu0 %v4821_v34  ;;  %7165 = vst [vmem:[#allocation5_spill] sm:$0xff] %v4858_v40  ;;  %v4877_v43 = vld [vmem:[%s7160_s16 + $0xe0] sm:$0xff]  ;;  %v4884_v44 = vld [vmem:[%s7161_s30 + $0x68] sm:$0xff] }
  0x21   :  { %3994 = vmatpush3.msra.mxu0 %v4837_v37  ;;  %7168 = vst [vmem:[#allocation8_spill] sm:$0xff] %v4877_v43  ;;  %7169 = vst [vmem:[#allocation9_spill] sm:$0xff] %v4884_v44  ;;  %v4889_v45 = vld [vmem:[%s7160_s16 + $0x60] sm:$0xff]  ;;  %v4903_v47 = vld [vmem:[%s7160_s16 + $0xd8] sm:$0xff] }
  0x22   :  { %3995 = vmatprep.subr.mxu0 %v4849_v39  ;;  %7170 = vst [vmem:[#allocation10_spill] sm:$0xff] %v4889_v45  ;;  %v4898_v46 = vld [vmem:[%s7161_s30 + $0xe0] sm:$0xff]  ;;  %7174 = vst [vmem:[#allocation12_spill] sm:$0xff] %v4903_v47  ;;  %v4917_v49 = vld [vmem:[%s7160_s16 + $0x58] sm:$0xff] }
  0x23   :  { %3996 = vmatpush3.msra.mxu0 %v4865_v41  ;;  %7173 = vst [vmem:[#allocation11_spill] sm:$0xff] %v4898_v46  ;;  %v4912_v48 = vld [vmem:[%s7161_s30 + $0x60] sm:$0xff]  ;;  %7176 = vst [vmem:[#allocation14_spill] sm:$0xff] %v4917_v49  ;;  %v4924_v50 = vld [vmem:[%s7161_s30 + $0xd8] sm:$0xff] }
  0x24   :  { %3997 = vmatprep.subr.mxu0 %v4877_v43  ;;  %7175 = vst [vmem:[#allocation13_spill] sm:$0xff] %v4912_v48  ;;  %7177 = vst [vmem:[#allocation15_spill] sm:$0xff] %v4924_v50  ;;  %v4929_v51 = vld [vmem:[%s7160_s16 + $0xd0] sm:$0xff]  ;;  %v4938_v52 = vld [vmem:[%s7161_s30 + $0x58] sm:$0xff] }
  0x25   :  { %3998 = vmatpush3.msra.mxu0 %v4889_v45  ;;  %7178 = vst [vmem:[#allocation16_spill] sm:$0xff] %v4929_v51  ;;  %7181 = vst [vmem:[#allocation17_spill] sm:$0xff] %v4938_v52  ;;  %v4943_v53 = vld [vmem:[%s7160_s16 + $0x50] sm:$0xff]  ;;  %v4955_v55 = vld [vmem:[%s7160_s16 + $0xc8] sm:$0xff] }
  0x26   :  { %3999 = vmatprep.subr.mxu0 %v4903_v47  ;;  %7182 = vst [vmem:[#allocation18_spill] sm:$0xff] %v4943_v53  ;;  %v4950_v54 = vld [vmem:[%s7161_s30 + $0xd0] sm:$0xff]  ;;  %7184 = vst [vmem:[#allocation20_spill] sm:$0xff] %v4955_v55  ;;  %v4967_v57 = vld [vmem:[%s7160_s16 + $0x48] sm:$0xff] }
  0x27   :  { %4000 = vmatpush3.msra.mxu0 %v4917_v49  ;;  %7183 = vst [vmem:[#allocation19_spill] sm:$0xff] %v4950_v54  ;;  %v4962_v56 = vld [vmem:[%s7161_s30 + $0x50] sm:$0xff]  ;;  %7186 = vst [vmem:[#allocation22_spill] sm:$0xff] %v4967_v57  ;;  %v4974_v58 = vld [vmem:[%s7161_s30 + $0xc8] sm:$0xff] }
  0x28   :  { %4001 = vmatprep.subr.mxu0 %v4929_v51  ;;  %7185 = vst [vmem:[#allocation21_spill] sm:$0xff] %v4962_v56  ;;  %7187 = vst [vmem:[#allocation23_spill] sm:$0xff] %v4974_v58  ;;  %v4979_v59 = vld [vmem:[%s7160_s16 + $0xc0] sm:$0xff]  ;;  %v4986_v60 = vld [vmem:[%s7161_s30 + $0x48] sm:$0xff] }
  0x29   :  { %4002 = vmatpush3.msra.mxu0 %v4943_v53  ;;  %7188 = vst [vmem:[#allocation24_spill] sm:$0xff] %v4979_v59  ;;  %7189 = vst [vmem:[#allocation25_spill] sm:$0xff] %v4986_v60  ;;  %v4991_v61 = vld [vmem:[%s7160_s16 + $0x40] sm:$0xff]  ;;  %v5003_v63 = vld [vmem:[%s7160_s16 + $0xb8] sm:$0xff] }
  0x2a   :  { %4003 = vmatprep.subr.mxu0 %v4955_v55  ;;  %7190 = vst [vmem:[#allocation26_spill] sm:$0xff] %v4991_v61  ;;  %v4998_v62 = vld [vmem:[%s7161_s30 + $0xc0] sm:$0xff]  ;;  %7192 = vst [vmem:[#allocation28_spill] sm:$0xff] %v5003_v63  ;;  %v5015_v2 = vld [vmem:[%s7160_s16 + $0x38] sm:$0xff] }
  0x2b   :  { %4004 = vmatpush3.msra.mxu0 %v4967_v57  ;;  %7191 = vst [vmem:[#allocation27_spill] sm:$0xff] %v4998_v62  ;;  %v5010_v1 = vld [vmem:[%s7161_s30 + $0x40] sm:$0xff]  ;;  %7194 = vst [vmem:[#allocation30_spill] sm:$0xff] %v5015_v2  ;;  %v5022_v3 = vld [vmem:[%s7161_s30 + $0xb8] sm:$0xff] }
  0x2c   :  { %4005 = vmatprep.subr.mxu0 %v4979_v59  ;;  %7193 = vst [vmem:[#allocation29_spill] sm:$0xff] %v5010_v1  ;;  %7195 = vst [vmem:[#allocation31_spill] sm:$0xff] %v5022_v3  ;;  %v5029_v4 = vld [vmem:[%s7160_s16 + $0xb0] sm:$0xff]  ;;  %v5034_v5 = vld [vmem:[%s7161_s30 + $0x38] sm:$0xff] }
  0x2d   :  { %4006 = vmatpush3.msra.mxu0 %v4991_v61  ;;  %7196 = vst [vmem:[#allocation32_spill] sm:$0xff] %v5029_v4  ;;  %7197 = vst [vmem:[#allocation33_spill] sm:$0xff] %v5034_v5  ;;  %v5041_v6 = vld [vmem:[%s7160_s16 + $0x30] sm:$0xff]  ;;  %v5190_v0 = vld [vmem:[%s7161_s30 + $0x80] sm:$0xff] }
  0x2e   :  { %4007 = vmatprep.subr.mxu0 %v5003_v63  ;;  %7198 = vst [vmem:[#allocation34_spill] sm:$0xff] %v5041_v6  ;;  %v5123_v20 = vld [vmem:[%s7160_s16 + $0x90] sm:$0xff]  ;;  %7223 = vst [vmem:[#allocation59_spill] sm:$0xff] %v5190_v0  ;;  %v3907_v61 = vld [vmem:[%s6931_s10 + $0x28] sm:$0xff] }
  0x2f   :  { %4008 = vmatpush3.msra.mxu0 %v5015_v2  ;;  %7212 = vst [vmem:[#allocation48_spill] sm:$0xff] %v5123_v20  ;;  %v3905_v2 = vld [vmem:[%s6931_s10 + $0x20] sm:$0xff]  ;;  %v3911_v51 = vld [vmem:[%s6931_s10 + $0x38] sm:$0xff] }
  0x30   :  { %4009 = vmatprep.subr.mxu0 %v5029_v4 }
  0x31   :  { %4010 = vmatpush3.msra.mxu0 %v5041_v6 }
  0xd3   :  { %v163_v8 = vpop.f32.mrf.mxu0 }
  0xd4   :  { %v164_v9 = vadd.f32 %v3880_v7, %v163_v8  ;;  %v5046_v7 = vld [vmem:[%s7161_s30 + $0xb0] sm:$0xff]  ;;  %v5051_v8 = vld [vmem:[%s7160_s16 + $0xa8] sm:$0xff] }
  0xd5   :  { %v4302_v10 = vpop.f32.mrf.mxu0  ;;  %7199 = vst [vmem:[#allocation35_spill] sm:$0xff] %v5046_v7  ;;  %7200 = vst [vmem:[#allocation36_spill] sm:$0xff] %v5051_v8  ;;  %4011 = vmatprep.subr.mxu0 %v5051_v8 }
  0xd6   :  { %v167_v11 = vmul.f32 %v164_v9, %v164_v9  ;;  %v5063_v10 = vld [vmem:[%s7160_s16 + $0x28] sm:$0xff] }
  0xd7   :  { %7202 = vst [vmem:[#allocation38_spill] sm:$0xff] %v5063_v10  ;;  %4012 = vmatpush3.msra.mxu0 %v5063_v10 }
  0xd8   :  { %v168_v12 = vmul.f32 %v167_v11, %v164_v9  ;;  %v5070_v11 = vld [vmem:[%s7161_s30 + $0xa8] sm:$0xff] }
  0xd9   :  { %7203 = vst [vmem:[#allocation39_spill] sm:$0xff] %v5070_v11 }
  0xda   :  { %v169_v13 = vmul.f32 0.044715, %v168_v12  ;;  %v5077_v12 = vld [vmem:[%s7160_s16 + $0xa0] sm:$0xff] }
  0xdb   :  { %7204 = vst [vmem:[#allocation40_spill] sm:$0xff] %v5077_v12  ;;  %4013 = vmatprep.subr.mxu0 %v5077_v12 }
  0xdc   :  { %v170_v14 = vadd.f32 %v169_v13, %v164_v9  ;;  %v5082_v13 = vld [vmem:[%s7161_s30 + $0x28] sm:$0xff] }
  0xdd   :  { %7205 = vst [vmem:[#allocation41_spill] sm:$0xff] %v5082_v13 }
  0xde   :  { %v171_v15 = vmul.f32 0.7978846, %v170_v14  ;;  %v5089_v14 = vld [vmem:[%s7160_s16 + $0x20] sm:$0xff] }
  0xdf   :  { %7206 = vst [vmem:[#allocation42_spill] sm:$0xff] %v5089_v14  ;;  %4014 = vmatpush3.msra.mxu0 %v5089_v14  ;;  %v5288_v14 = vld [vmem:[%s6928_s5 + $0x58] sm:$0xff] }
  0xe0   :  { %4405 = vtanh.f32 %v171_v15  ;;  %v5094_v15 = vld [vmem:[%s7161_s30 + $0xa0] sm:$0xff] }
  0xe1   :  { %7207 = vst [vmem:[#allocation43_spill] sm:$0xff] %v5094_v15 }
  0xed   :  { %v4406_v16 = vpop.eup %4405 }
  0xee   :  { %v173_v17 = vadd.f32 1.0, %v4406_v16  ;;  %v5099_v16 = vld [vmem:[%s7160_s16 + $0x98] sm:$0xff] }
  0xef   :  { %7208 = vst [vmem:[#allocation44_spill] sm:$0xff] %v5099_v16  ;;  %4015 = vmatprep.subr.mxu0 %v5099_v16 }
  0xf0   :  { %v174_v18 = vmul.f32 0.5, %v173_v17  ;;  %v5106_v17 = vld [vmem:[%s7161_s30 + $0x20] sm:$0xff] }
  0xf1   :  { %7209 = vst [vmem:[#allocation45_spill] sm:$0xff] %v5106_v17 }
  0xf2   :  { %v175_v19 = vmul.f32 %v174_v18, %v164_v9  ;;  %v5058_v9 = vld [vmem:[%s7161_s30 + $0x30] sm:$0xff]  ;;  %v5111_v18 = vld [vmem:[%s7160_s16 + $0x18] sm:$0xff] }
  0xf3   :  { %7201 = vst [vmem:[#allocation37_spill] sm:$0xff] %v5058_v9  ;;  %7210 = vst [vmem:[#allocation46_spill] sm:$0xff] %v5111_v18  ;;  %4016 = vmatpush3.msra.mxu0 %v5111_v18 }
  0xf4   :  { %4312 = vmatmul.mubr.msk.f32.vlgmr.msra.gmra.mxu1 %vm187_vm3, %v175_v19  ;;  %v5118_v19 = vld [vmem:[%s7161_s30 + $0x98] sm:$0xff]  ;;  %4017 = vmatprep.subr.mxu0 %v5123_v20 }
  0xf5   :  { %4027 = vmatpush3.msra.mxu1 %v4832_v36  ;;  %7211 = vst [vmem:[#allocation47_spill] sm:$0xff] %v5118_v19 }
  0xf6   :  { %4028 = vmatprep.subr.mxu1 %v4844_v38 }
  0xf7   :  { %4029 = vmatpush3.msra.mxu1 %v4858_v40 }
  0xf8   :  { %4030 = vmatprep.subr.mxu1 %v4872_v42 }
  0xf9   :  { %4031 = vmatpush3.msra.mxu1 %v4884_v44  ;;  %v3912_v44 = vld [vmem:[%s6932_s11 + $0x38] sm:$0xff] }
  0xfa   :  { %4032 = vmatprep.subr.mxu1 %v4898_v46 }
  0xfb   :  { %4033 = vmatpush3.msra.mxu1 %v4912_v48  ;;  %v3909_v48 = vld [vmem:[%s6931_s10 + $0x30] sm:$0xff] }
  0xfc   :  { %4034 = vmatprep.subr.mxu1 %v4924_v50 }
  0xfd   :  { %4035 = vmatpush3.msra.mxu1 %v4938_v52 }
  0xfe   :  { %4036 = vmatprep.subr.mxu1 %v4950_v54  ;;  %v3908_v54 = vld [vmem:[%s6932_s11 + $0x28] sm:$0xff] }
  0xff   :  { %4037 = vmatpush3.msra.mxu1 %v4962_v56 }
 0x100   :  { %4038 = vmatprep.subr.mxu1 %v4974_v58 }
 0x101   :  { %4039 = vmatpush3.msra.mxu1 %v4986_v60 }
 0x102   :  { %4040 = vmatprep.subr.mxu1 %v4998_v62 }
 0x103   :  { %4041 = vmatpush3.msra.mxu1 %v5010_v1 }
 0x104   :  { %4042 = vmatprep.subr.mxu1 %v5022_v3 }
 0x105   :  { %4043 = vmatpush3.msra.mxu1 %v5034_v5 }
 0x106   :  { %4044 = vmatprep.subr.mxu1 %v5046_v7 }
 0x107   :  { %4045 = vmatpush3.msra.mxu1 %v5058_v9 }
 0x108   :  { %4046 = vmatprep.subr.mxu1 %v5070_v11 }
 0x109   :  { %4047 = vmatpush3.msra.mxu1 %v5082_v13 }
 0x10a   :  { %4048 = vmatprep.subr.mxu1 %v5094_v15  ;;  %v5264_v15 = vld [vmem:[%s6928_s5 + $0x38] sm:$0xff] }
 0x10b   :  { %4049 = vmatpush3.msra.mxu1 %v5106_v17 }
 0x10c   :  { %4050 = vmatprep.subr.mxu1 %v5118_v19 }
 0x1b4   :  { %v257_v22 = vpop.f32.mrf.mxu1 }
 0x1b5   :  { %v258_v23 = vadd.f32 %v3883_v21, %v257_v22  ;;  %v5130_v21 = vld [vmem:[%s7161_s30 + $0x18] sm:$0xff]  ;;  %v5135_v22 = vld [vmem:[%s7160_s16 + $0x10] sm:$0xff] }
 0x1b6   :  { %v4313_v24 = vpop.f32.mrf.mxu1  ;;  %7213 = vst [vmem:[#allocation49_spill] sm:$0xff] %v5130_v21  ;;  %7214 = vst [vmem:[#allocation50_spill] sm:$0xff] %v5135_v22  ;;  %4051 = vmatpush3.msra.mxu1 %v5130_v21  ;;  %4018 = vmatpush3.msra.mxu0 %v5135_v22 }
 0x1b7   :  { %296 = vrot.lane.b32.xlu1 %v258_v23, %s4609_s26  ;;  %272 = vrot.lane.b32.xlu0 %v258_v23, %s4610_s0  ;;  %4361 = vpush %v258_v23  ;;  %v4804_v31 = vrot.slane %v258_v23, 1  ;;  %v5147_v24 = vld [vmem:[%s7160_s16 + $0x88] sm:$0xff] }
 0x1b8   :  { %7216 = vst [vmem:[#allocation52_spill] sm:$0xff] %v5147_v24  ;;  %4019 = vmatprep.subr.mxu0 %v5147_v24 }
 0x1bb   :  { %308 = vrot.lane.b32.xlu1 %v258_v23, %s6953_s7  ;;  %284 = vrot.lane.b32.xlu0 %v258_v23, %s4612_s27  ;;  %s7172_s7 = smov 123  }
 0x1bf   :  { %332 = vrot.lane.b32.xlu1 %v258_v23, %s6950_s4  ;;  %320 = vrot.lane.b32.xlu0 %v258_v23, %s6951_s28 }
 0x1c3   :  { %881 = vperm.xlu1 %4403, %v878_v25   ;;  %344 = vrot.lane.b32.xlu0 %v258_v23, %s6952_s29  ;;  %v5142_v23 = vld [vmem:[%s7161_s30 + $0x90] sm:$0xff] }
 0x1c4   :  { %7215 = vst [vmem:[#allocation51_spill] sm:$0xff] %v5142_v23  ;;  %v5154_v25 = vld [vmem:[%s7161_s30 + $0x10] sm:$0xff]  ;;  %4052 = vmatprep.subr.mxu1 %v5142_v23 }
 0x1c5   :  { %7217 = vst [vmem:[#allocation53_spill] sm:$0xff] %v5154_v25  ;;  %4053 = vmatpush3.msra.mxu1 %v5154_v25  ;;  %v5202_v25 = vld [vmem:[%s7161_s30] sm:$0xff] }
 0x1c6   :  { %7226 = vst [vmem:[#allocation61_spill] sm:$0xff] %v5202_v25 }
 0x1c7   :  { %1687 = vperm.xlu1 %4403, %v1669_v26   ;;  %1431 = vperm.xlu0 %4404, %v3935_v27   ;;  %v5159_v26 = vld [vmem:[%s7160_s16 + $0x8] sm:$0xff] }
 0x1c8   :  { %7218 = vst [vmem:[#allocation54_spill] sm:$0xff] %v5159_v26  ;;  %v5166_v27 = vld [vmem:[%s7161_s30 + $0x88] sm:$0xff]  ;;  %4020 = vmatpush3.msra.mxu0 %v5159_v26 }
 0x1c9   :  { %7219 = vst [vmem:[#allocation55_spill] sm:$0xff] %v5166_v27  ;;  %4054 = vmatprep.subr.mxu1 %v5166_v27 }
 0x1cb   :  { %1682 = vperm.xlu1 %4403, %v1668_v28   ;;  %1677 = vperm.xlu0 %4404, %v1667_v29   ;;  %v5171_v28 = vld [vmem:[%s7160_s16 + $0x80] sm:$0xff]  ;;  %v5178_v29 = vld [vmem:[%s7161_s30 + $0x8] sm:$0xff] }
 0x1cc   :  { %7220 = vst [vmem:[#allocation56_spill] sm:$0xff] %v5171_v28  ;;  %7221 = vst [vmem:[#allocation57_spill] sm:$0xff] %v5178_v29  ;;  %4021 = vmatprep.subr.mxu0 %v5171_v28  ;;  %4055 = vmatpush3.msra.mxu1 %v5178_v29 }
 0x1cd   :  { %4056 = vmatprep.subr.mxu1 %v5190_v0 }
 0x1ce   :  { %4057 = vmatpush3.msra.mxu1 %v5202_v25 }
 0x1cf   :  { %1672 = vperm.xlu1 %4403, %v1666_v30   ;;  %1967 = vrot.lane.b32.xlu0 %v4804_v31, %s4610_s0  ;;  %s7180_s0 = smov 121   ;;  %v5183_v30 = vld [vmem:[%s7160_s16] sm:$0xff] }
 0x1d0   :  { %7222 = vst [vmem:[#allocation58_spill] sm:$0xff] %v5183_v30  ;;  %4022 = vmatpush3.msra.mxu0 %v5183_v30 }
 0x1d3   :  { %1976 = vrot.lane.b32.xlu1 %v4804_v31, %s4612_s27  ;;  %1985 = vrot.lane.b32.xlu0 %v4804_v31, %s4609_s26 }
 0x1d7   :  { %1994 = vrot.lane.b32.xlu1 %v4804_v31, %s7171_s6  ;;  %2003 = vrot.lane.b32.xlu0 %v4804_v31, %s7172_s7  ;;  %s7179_s7 = smov 122   ;;  %s7224_s6 = sld [smem:[#allocation102_spill]] }
 0x1db   :  { %2012 = vrot.lane.b32.xlu1 %v4804_v31, %s7179_s7  ;;  %2021 = vrot.lane.b32.xlu0 %v4804_v31, %s7180_s0 }
 0x1dd   :  { %v5195_v23 = vld [vmem:[%s7224_s6 + $0x38] sm:$0xff]  ;;  %v5323_v60 = vld [vmem:[%s7224_s6 + $0x30] sm:$0xff] }
 0x1de   :  { %7225 = vst [vmem:[#allocation60_spill] sm:$0xff] %v5195_v23  ;;  %756 = vmatprep.subr.mxu0 %v5195_v23  ;;  %7233 = vst [vmem:[#allocation68_spill] sm:$0xff] %v5323_v60 }
 0x1e8   :  { %s4362_s29 = spop %4361 }
 0x229   :  { %v297_v21 = vpop.permute.xlu1 %296  ;;  %v273_v26 = vpop.permute.xlu0 %272 }
 0x22a   :  { %4363 = vpush %v273_v26 }
 0x22d   :  { %v309_v27 = vpop.permute.xlu1 %308  ;;  %v285_v28 = vpop.permute.xlu0 %284 }
 0x22e   :  { %4365 = vpush %v285_v28 }
 0x22f   :  { %4367 = vpush %v297_v21 }
 0x230   :  { %4369 = vpush %v309_v27 }
 0x231   :  { %v333_v19 = vpop.permute.xlu1 %332  ;;  %v321_v24 = vpop.permute.xlu0 %320 }
 0x232   :  { %4371 = vpush %v321_v24 }
 0x233   :  { %4373 = vpush %v333_v19 }
 0x235   :  { %v345_v29 = vpop.permute.xlu0 %344 }
 0x236   :  { %4375 = vpush %v345_v29 }
 0x237   :  { %4377 = vpush %v4804_v31 }
 0x23e   :  { %v5210_v0 = vpop.permute.xlu1 %881 }
 0x23f   :  { %7227 = vst [vmem:[#allocation62_spill] sm:$0xff] %v5210_v0 }
 0x242   :  { %v5212_v23 = vpop.permute.xlu1 %1687  ;;  %v5214_v25 = vpop.permute.xlu0 %1431 }
 0x243   :  { %7228 = vst [vmem:[#allocation63_spill] sm:$0xff] %v5212_v23  ;;  %7229 = vst [vmem:[#allocation64_spill] sm:$0xff] %v5214_v25  ;;  %v5253_v25 = vld [vmem:[%s6928_s5 + $0x28] sm:$0xff] }
 0x246   :  { %v5216_v26 = vpop.permute.xlu1 %1682  ;;  %v5218_v30 = vpop.permute.xlu0 %1677 }
 0x247   :  { %7230 = vst [vmem:[#allocation65_spill] sm:$0xff] %v5216_v26  ;;  %7231 = vst [vmem:[#allocation66_spill] sm:$0xff] %v5218_v30  ;;  %v5225_v26 = vld [vmem:[%s6928_s5 + $0x10] sm:$0xff] }
 0x24a   :  { %v5220_v21 = vpop.permute.xlu1 %1672  ;;  %v1968_v27 = vpop.permute.xlu0 %1967 }
 0x24b   :  { %7232 = vst [vmem:[#allocation67_spill] sm:$0xff] %v5220_v21  ;;  %4379 = vpush %v1968_v27  ;;  %v5230_v27 = vld [vmem:[%s6928_s5 + $0x18] sm:$0xff]  ;;  %v5248_v21 = vld [vmem:[%s6928_s5 + $0x20] sm:$0xff] }
 0x24e   :  { %v1977_v24 = vpop.permute.xlu1 %1976  ;;  %v1986_v19 = vpop.permute.xlu0 %1985 }
 0x24f   :  { %4381 = vpush %v1977_v24  ;;  %v5235_v24 = vld [vmem:[%s6928_s5] sm:$0xff] }
 0x250   :  { %4383 = vpush %v1986_v19  ;;  %v265_v19 = vstv %s4362_s29 }
 0x251   :  { %v267_v30 = vmul.f32 %v265_v19, %v5235_v24 }
 0x252   :  { %v1995_v28 = vpop.permute.xlu1 %1994  ;;  %v2004_v31 = vpop.permute.xlu0 %2003 }
 0x253   :  { %4385 = vpush %v1995_v28 }
 0x254   :  { %4387 = vpush %v2004_v31 }
 0x256   :  { %v2013_v29 = vpop.permute.xlu1 %2012  ;;  %v2022_v23 = vpop.permute.xlu0 %2021 }
 0x257   :  { %4389 = vpush %v2013_v29 }
 0x258   :  { %4391 = vpush %v2022_v23  ;;  %v5240_v23 = vld [vmem:[%s6928_s5 + $0x8] sm:$0xff] }
 0x259   :  { %v268_v0 = vmul.f32 %v265_v19, %v5240_v23 }
 0x25b   :  { %s4364_s3 = spop %4363 }
 0x25c   :  { %v275_v28 = vstv %s4364_s3 }
 0x25d   :  { %v277_v31 = vmul.f32 %v5225_v26, %v275_v28  ;;  %v278_v29 = vmul.f32 %v5230_v27, %v275_v28  ;;  %v5259_v28 = vld [vmem:[%s6928_s5 + $0x30] sm:$0xff] }
 0x25f   :  { %s4366_s27 = spop %4365  ;;  %v279_v17 = vadd.f32 %v277_v31, %v267_v30  ;;  %v280_v20 = vadd.f32 %v278_v29, %v268_v0  ;;  %v5271_v30 = vld [vmem:[%s6928_s5 + $0x40] sm:$0xff]  ;;  %v5276_v31 = vld [vmem:[%s6928_s5 + $0x48] sm:$0xff] }
 0x260   :  { %v287_v22 = vstv %s4366_s27  ;;  %s4368_s3 = spop %4367 }
 0x261   :  { %v289_v13 = vmul.f32 %v5248_v21, %v287_v22  ;;  %v290_v18 = vmul.f32 %v5253_v25, %v287_v22  ;;  %v299_v19 = vstv %s4368_s3  ;;  %s4370_s4 = spop %4369  ;;  %v5283_v22 = vld [vmem:[%s6928_s5 + $0x50] sm:$0xff] }
 0x262   :  { %v311_v11 = vstv %s4370_s4  ;;  %v301_v0 = vmul.f32 %v5259_v28, %v299_v19  ;;  %v302_v29 = vmul.f32 %v5264_v15, %v299_v19  ;;  %v5300_v19 = vld [vmem:[%s6928_s5 + $0x68] sm:$0xff] }
 0x263   :  { %v291_v16 = vadd.f32 %v289_v13, %v279_v17  ;;  %v292_v9 = vadd.f32 %v290_v18, %v280_v20  ;;  %s4372_s29 = spop %4371  ;;  %v313_v17 = vmul.f32 %v5271_v30, %v311_v11  ;;  %v314_v18 = vmul.f32 %v5276_v31, %v311_v11  ;;  %v5295_v20 = vld [vmem:[%s6928_s5 + $0x60] sm:$0xff]  ;;  %v5307_v11 = vld [vmem:[%s6928_s5 + $0x70] sm:$0xff] }
 0x264   :  { %v323_v7 = vstv %s4372_s29  ;;  %s4374_s1 = spop %4373 }
 0x265   :  { %v303_v12 = vadd.f32 %v301_v0, %v291_v16  ;;  %v304_v13 = vadd.f32 %v302_v29, %v292_v9  ;;  %v335_v5 = vstv %s4374_s1  ;;  %v325_v16 = vmul.f32 %v5283_v22, %v323_v7  ;;  %v5312_v0 = vld [vmem:[%s6928_s5 + $0x78] sm:$0xff] }
 0x266   :  { %v326_v9 = vmul.f32 %v5288_v14, %v323_v7 }
 0x267   :  { %v315_v10 = vadd.f32 %v313_v17, %v303_v12  ;;  %v316_v3 = vadd.f32 %v314_v18, %v304_v13  ;;  %s4376_s0 = spop %4375  ;;  %v337_v12 = vmul.f32 %v5295_v20, %v335_v5  ;;  %v338_v13 = vmul.f32 %v5300_v19, %v335_v5  ;;  %v5341_v5 = vld [vmem:[%s7224_s6 + $0x18] sm:$0xff] }
 0x268   :  { %v347_v29 = vstv %s4376_s0  ;;  %7236 = vst [vmem:[#allocation71_spill] sm:$0xff] %v5341_v5  ;;  %s4378_s13 = spop %4377 }
 0x269   :  { %v327_v8 = vadd.f32 %v325_v16, %v315_v10  ;;  %v328_v1 = vadd.f32 %v326_v9, %v316_v3  ;;  %v349_v18 = vmul.f32 %v5307_v11, %v347_v29  ;;  %v350_v6 = vmul.f32 %v5312_v0, %v347_v29  ;;  %v5328_v3 = vld [vmem:[%s7224_s6 + $0x28] sm:$0xff]  ;;  %v5361_v16 = vld [vmem:[%s7224_s6] sm:$0xff] }
 0x26a   :  { %7234 = vst [vmem:[#allocation69_spill] sm:$0xff] %v5328_v3  ;;  %v5355_v10 = vld [vmem:[%s7224_s6 + $0x8] sm:$0xff]  ;;  %7240 = vst [vmem:[#allocation74_spill] sm:$0xff] %v5361_v16  ;;  %v1963_v9 = vstv %s4378_s13 }
 0x26b   :  { %v339_v17 = vadd.f32 %v337_v12, %v327_v8  ;;  %v340_v7 = vadd.f32 %v338_v13, %v328_v1  ;;  %v5335_v1 = vld [vmem:[%s7224_s6 + $0x20] sm:$0xff]  ;;  %v5348_v8 = vld [vmem:[%s7224_s6 + $0x10] sm:$0xff]  ;;  %7239 = vst [vmem:[#allocation73_spill] sm:$0xff] %v5355_v10 }
 0x26c   :  { %7235 = vst [vmem:[#allocation70_spill] sm:$0xff] %v5335_v1  ;;  %7238 = vst [vmem:[#allocation72_spill] sm:$0xff] %v5348_v8 }
 0x26d   :  { %v5318_v62 = vadd.f32 %v349_v18, %v339_v17  ;;  %v352_v4 = vadd.f32 %v350_v6, %v340_v7  ;;  %v7237_v6 = vmov 0.0   ;;  %v1965_v17 = vmul.f32 %v1963_v9, %v5235_v24 }
 0x26e   :  { %v1966_v7 = vmul.f32 %v1963_v9, %v5240_v23 }
 0x26f   :  { %449 = vmatprep.mubr.f32.mxu0 %v352_v4  ;;  %551 = vmatprep.mubr.f32.mxu1 %v352_v4 }
 0x270   :  { %450 = vmatmul.mubr.f32.vlgmr.msra.gmra.mxu0 %v5318_v62  ;;  %552 = vmatmul.mubr.f32.vlgmr.msra.gmra.mxu1 %v5318_v62 }
 0x271   :  { %757 = vmatpush1.msra.mxu0 %v5323_v60  ;;  %796 = vmatprep.mubr.f32.mxu0 %v7237_v6 }
 0x272   :  { %758 = vmatprep.subr.mxu0 %v5328_v3  ;;  %870 = vmatprep.mubr.f32.mxu1 %v7237_v6 }
 0x273   :  { %759 = vmatpush1.msra.mxu0 %v5335_v1 }
 0x274   :  { %760 = vmatprep.subr.mxu0 %v5341_v5 }
 0x275   :  { %761 = vmatpush1.msra.mxu0 %v5348_v8 }
 0x276   :  { %762 = vmatprep.subr.mxu0 %v5355_v10 }
 0x277   :  { %763 = vmatpush1.msra.mxu0 %v5361_v16 }
 0x278   :  { %918 = vmatprep.subr.mxu0 %v352_v4 }
 0x27c   :  { %s4380_s5 = spop %4379 }
 0x27d   :  { %v1970_v29 = vstv %s4380_s5 }
 0x27e   :  { %v1972_v12 = vmul.f32 %v5225_v26, %v1970_v29  ;;  %v1973_v13 = vmul.f32 %v5230_v27, %v1970_v29 }
 0x280   :  { %s4382_s1 = spop %4381  ;;  %v1974_v18 = vadd.f32 %v1972_v12, %v1965_v17  ;;  %v1975_v10 = vadd.f32 %v1973_v13, %v1966_v7 }
 0x281   :  { %v1979_v8 = vstv %s4382_s1  ;;  %s4384_s3 = spop %4383 }
 0x282   :  { %v1981_v16 = vmul.f32 %v5248_v21, %v1979_v8  ;;  %v1982_v4 = vmul.f32 %v5253_v25, %v1979_v8  ;;  %v1988_v5 = vstv %s4384_s3 }
 0x283   :  { %v1990_v26 = vmul.f32 %v5259_v28, %v1988_v5  ;;  %v1991_v27 = vmul.f32 %v5264_v15, %v1988_v5 }
 0x284   :  { %v1983_v1 = vadd.f32 %v1981_v16, %v1974_v18  ;;  %v1984_v3 = vadd.f32 %v1982_v4, %v1975_v10  ;;  %s4386_s4 = spop %4385  ;;  %v5417_v4 = vld [vmem:[%s6929_s8 + $0x10] sm:$0xff] }
 0x285   :  { %v1997_v24 = vstv %s4386_s4  ;;  %s4388_s28 = spop %4387  ;;  %7248 = vst [vmem:[#allocation82_spill] sm:$0xff] %v5417_v4 }
 0x286   :  { %v1992_v23 = vadd.f32 %v1990_v26, %v1983_v1  ;;  %v1993_v9 = vadd.f32 %v1991_v27, %v1984_v3  ;;  %v1999_v29 = vmul.f32 %v5271_v30, %v1997_v24  ;;  %v2000_v12 = vmul.f32 %v5276_v31, %v1997_v24  ;;  %v5423_v26 = vld [vmem:[%s6929_s8 + $0x8] sm:$0xff]  ;;  %v5429_v27 = vld [vmem:[%s6929_s8] sm:$0xff] }
 0x287   :  { %v2006_v13 = vstv %s4388_s28  ;;  %7249 = vst [vmem:[#allocation83_spill] sm:$0xff] %v5423_v26  ;;  %7250 = vst [vmem:[#allocation84_spill] sm:$0xff] %v5429_v27  ;;  %v1864_v24 = vld [vmem:[%s6930_s18] sm:$0xff] }
 0x288   :  { %v2001_v21 = vadd.f32 %v1999_v29, %v1992_v23  ;;  %v2002_v17 = vadd.f32 %v2000_v12, %v1993_v9  ;;  %v2008_v25 = vmul.f32 %v5283_v22, %v2006_v13  ;;  %v2009_v8 = vmul.f32 %v5288_v14, %v2006_v13  ;;  %s4390_s7 = spop %4389  ;;  %v5389_v14 = vld [vmem:[%s6929_s8 + $0x38] sm:$0xff]  ;;  %1867 = vperm.xlu1 %4403, %v1864_v24  }
 0x289   :  { %v2015_v28 = vstv %s4390_s7  ;;  %s4392_s0 = spop %4391  ;;  %7243 = vst [vmem:[#allocation77_spill] sm:$0xff] %v5389_v14  ;;  %830 = vmatprep.subr.mxu1 %v5389_v14  ;;  %v559_v23 = vlaneseq }
 0x28a   :  { %v2010_v15 = vadd.f32 %v2008_v25, %v2001_v21  ;;  %v2011_v5 = vadd.f32 %v2009_v8, %v2002_v17  ;;  %v2017_v10 = vmul.f32 %v5295_v20, %v2015_v28  ;;  %v2018_v3 = vmul.f32 %v5300_v19, %v2015_v28  ;;  %v5394_v20 = vld [vmem:[%s6929_s8 + $0x30] sm:$0xff]  ;;  %v5399_v19 = vld [vmem:[%s6929_s8 + $0x28] sm:$0xff] }
 0x28b   :  { %v2024_v1 = vstv %s4392_s0  ;;  %7244 = vst [vmem:[#allocation78_spill] sm:$0xff] %v5394_v20  ;;  %7245 = vst [vmem:[#allocation79_spill] sm:$0xff] %v5399_v19  ;;  %831 = vmatpush1.msra.mxu1 %v5394_v20  ;;  %v560_v9 = vshrl.u32 %v559_v23, 7 }
 0x28c   :  { %v2019_v30 = vadd.f32 %v2017_v10, %v2010_v15  ;;  %v2020_v16 = vadd.f32 %v2018_v3, %v2011_v5  ;;  %v2026_v31 = vmul.f32 %v5307_v11, %v2024_v1  ;;  %v2027_v7 = vmul.f32 %v5312_v0, %v2024_v1  ;;  %v5405_v11 = vld [vmem:[%s6929_s8 + $0x20] sm:$0xff]  ;;  %v5411_v0 = vld [vmem:[%s6929_s8 + $0x18] sm:$0xff]  ;;  %832 = vmatprep.subr.mxu1 %v5399_v19  ;;  %v3899_v1 = vld [vmem:[%s6931_s10 + $0x8] sm:$0xff] }
 0x28d   :  { %7246 = vst [vmem:[#allocation80_spill] sm:$0xff] %v5405_v11  ;;  %7247 = vst [vmem:[#allocation81_spill] sm:$0xff] %v5411_v0  ;;  %833 = vmatpush1.msra.mxu1 %v5405_v11  ;;  %v5438_v13 = vsub.s32 0, %v560_v9  ;;  %v5440_v21 = vsub.s32 1, %v560_v9  ;;  %v5442_v8 = vsub.s32 2, %v560_v9  ;;  %v5444_v28 = vsub.s32 3, %v560_v9 }
 0x28e   :  { %v5382_v18 = vadd.f32 %v2026_v31, %v2019_v30  ;;  %v5384_v22 = vadd.f32 %v2027_v7, %v2020_v16  ;;  %834 = vmatprep.subr.mxu1 %v5411_v0  ;;  %v557_v5 = vld [vmem:[%s6931_s10] sm:$0xff]  ;;  %v5452_v3 = vsub.s32 4, %v560_v9  ;;  %v3900_v30 = vld [vmem:[%s6932_s11 + $0x8] sm:$0xff]  ;;  %v3901_v16 = vld [vmem:[%s6931_s10 + $0x10] sm:$0xff]  ;;  %v5463_v31 = vsub.s32 5, %v560_v9 }
 0x28f   :  { %835 = vmatpush1.msra.mxu1 %v5417_v4  ;;  %7251 = vst [vmem:[#allocation85_spill] sm:$0xff] %v5438_v13  ;;  %7252 = vst [vmem:[#allocation86_spill] sm:$0xff] %v5440_v21  ;;  %v558_v10 = vld [vmem:[%s6932_s11] sm:$0xff]  ;;  %v5465_v7 = vsub.s32 6, %v560_v9  ;;  %v5467_v24 = vsub.s32 7, %v560_v9  ;;  %v3904_v9 = vld [vmem:[%s6932_s11 + $0x18] sm:$0xff] }
 0x290   :  { %7241 = vst [vmem:[#allocation75_spill] sm:$0xff] %v5382_v18  ;;  %7242 = vst [vmem:[#allocation76_spill] sm:$0xff] %v5384_v22  ;;  %836 = vmatprep.subr.mxu1 %v5423_v26  ;;  %v3903_v18 = vld [vmem:[%s6931_s10 + $0x18] sm:$0xff] }
 0x291   :  { %837 = vmatpush1.msra.mxu1 %v5429_v27  ;;  %7253 = vst [vmem:[#allocation87_spill] sm:$0xff] %v5442_v8  ;;  %7254 = vst [vmem:[#allocation88_spill] sm:$0xff] %v5444_v28 }
 0x292   :  { %4096 = vmatprep.subr.mxu1 %v4827_v35  ;;  %7255 = vst [vmem:[#allocation89_spill] sm:$0xff] %v5452_v3  ;;  %7256 = vst [vmem:[#allocation90_spill] sm:$0xff] %v5463_v31 }
 0x293   :  { %7257 = vst [vmem:[#allocation91_spill] sm:$0xff] %v5465_v7  ;;  %7258 = vst [vmem:[#allocation92_spill] sm:$0xff] %v5467_v24 }
 0x330   :  { %v4023_v29 = vpop.f32.mrf.mxu0  ;;  %v4058_v12 = vpop.f32.mrf.mxu1 }
 0x332   :  { %v4024_v17 = vpop.f32.mrf.mxu0  ;;  %v4059_v25 = vpop.f32.mrf.mxu1 }
 0x333   :  { %v4025_v35 = vadd.f32 %v4024_v17, %v4023_v29  ;;  %v4060_v15 = vadd.f32 %v4059_v25, %v4058_v12  ;;  %v3902_v25 = vld [vmem:[%s6932_s11 + $0x10] sm:$0xff] }
 0x335   :  { %v562_v23 = vrot.slane %v4025_v35, %v5438_v13  ;;  %v567_v29 = vrot.slane %v4060_v15, %v5438_v13  ;;  %v580_v12 = vrot.slane %v4025_v35, %v5440_v21  ;;  %v585_v17 = vrot.slane %v4060_v15, %v5440_v21 }
 0x336   :  { %v600_v22 = vrot.slane %v4025_v35, %v5442_v8  ;;  %v605_v13 = vrot.slane %v4060_v15, %v5442_v8  ;;  %v620_v27 = vrot.slane %v4025_v35, %v5444_v28  ;;  %v625_v21 = vrot.slane %v4060_v15, %v5444_v28  ;;  %v3906_v8 = vld [vmem:[%s6932_s11 + $0x20] sm:$0xff] }
 0x337   :  { %v570_v26 = vmul.f32 %v562_v23, %v558_v10  ;;  %v571_v4 = vmul.f32 %v567_v29, %v557_v5  ;;  %v588_v0 = vmul.f32 %v3900_v30, %v580_v12  ;;  %v589_v11 = vmul.f32 %v3899_v1, %v585_v17 }
 0x338   :  { %v608_v19 = vmul.f32 %v3902_v25, %v600_v22  ;;  %v609_v20 = vmul.f32 %v3901_v16, %v605_v13  ;;  %v628_v60 = vmul.f32 %v3904_v9, %v620_v27  ;;  %v629_v14 = vmul.f32 %v3903_v18, %v625_v21 }
 0x339   :  { %v572_v58 = vadd.f32 %v571_v4, %v570_v26  ;;  %v590_v63 = vadd.f32 %v589_v11, %v588_v0  ;;  %v640_v28 = vrot.slane %v4025_v35, %v5452_v3  ;;  %v645_v56 = vrot.slane %v4060_v15, %v5452_v3  ;;  %v3910_v0 = vld [vmem:[%s6932_s11 + $0x30] sm:$0xff] }
 0x33a   :  { %v610_v59 = vadd.f32 %v609_v20, %v608_v19  ;;  %v660_v52 = vrot.slane %v4025_v35, %v5463_v31  ;;  %v665_v57 = vrot.slane %v4060_v15, %v5463_v31  ;;  %v680_v26 = vrot.slane %v4025_v35, %v5465_v7 }
 0x33b   :  { %v592_v50 = vadd.f32 %v590_v63, %v572_v58  ;;  %v648_v4 = vmul.f32 %v3906_v8, %v640_v28  ;;  %v649_v11 = vmul.f32 %v3905_v2, %v645_v56  ;;  %v685_v20 = vrot.slane %v4060_v15, %v5465_v7 }
 0x33c   :  { %v668_v3 = vmul.f32 %v3908_v54, %v660_v52  ;;  %v669_v55 = vmul.f32 %v3907_v61, %v665_v57  ;;  %v630_v53 = vadd.f32 %v629_v14, %v628_v60  ;;  %v700_v58 = vrot.slane %v4025_v35, %v5467_v24 }
 0x33d   :  { %v612_v19 = vadd.f32 %v610_v59, %v592_v50  ;;  %v705_v63 = vrot.slane %v4060_v15, %v5467_v24  ;;  %v650_v31 = vadd.f32 %v649_v11, %v648_v4  ;;  %v688_v46 = vmul.f32 %v3910_v0, %v680_v26 }
 0x33e   :  { %v563_v49 = vmul.f32 %v562_v23, %v557_v5  ;;  %v689_v47 = vmul.f32 %v3909_v48, %v685_v20  ;;  %v568_v7 = vmul.f32 %v567_v29, %v558_v10  ;;  %v581_v50 = vmul.f32 %v3899_v1, %v580_v12  ;;  %v7280_v29 = vld [vmem:[#allocation26_spill] sm:$0xff]  ;;  %v7281_v12 = vld [vmem:[#allocation21_spill] sm:$0xff] }
 0x33f   :  { %v632_v42 = vadd.f32 %v630_v53, %v612_v19  ;;  %v670_v59 = vadd.f32 %v669_v55, %v668_v3  ;;  %v586_v60 = vmul.f32 %v3900_v30, %v585_v17  ;;  %v601_v14 = vmul.f32 %v3901_v16, %v600_v22  ;;  %v7282_v17 = vld [vmem:[#allocation28_spill] sm:$0xff]  ;;  %v7288_v19 = vld [vmem:[#allocation34_spill] sm:$0xff] }
 0x340   :  { %v606_v35 = vmul.f32 %v3902_v25, %v605_v13  ;;  %v708_v4 = vmul.f32 %v3912_v44, %v700_v58  ;;  %v709_v11 = vmul.f32 %v3911_v51, %v705_v63  ;;  %v569_v24 = vsub.f32 %v563_v49, %v568_v7  ;;  %v7278_v7 = vld [vmem:[#allocation24_spill] sm:$0xff]  ;;  %v7283_v25 = vld [vmem:[#allocation23_spill] sm:$0xff] }
 0x341   :  { %v652_v15 = vadd.f32 %v650_v31, %v632_v42  ;;  %v587_v40 = vsub.f32 %v581_v50, %v586_v60  ;;  %v621_v45 = vmul.f32 %v3903_v18, %v620_v27  ;;  %v626_v38 = vmul.f32 %v3904_v9, %v625_v21  ;;  %v7274_v21 = vld [vmem:[#allocation20_spill] sm:$0xff]  ;;  %v7277_v31 = vld [vmem:[#allocation17_spill] sm:$0xff]  ;;  %v7284_v9 = vld [vmem:[#allocation30_spill] sm:$0xff] }
 0x342   :  { %v690_v36 = vadd.f32 %v689_v47, %v688_v46  ;;  %v607_v39 = vsub.f32 %v601_v14, %v606_v35  ;;  %v641_v5 = vmul.f32 %v3905_v2, %v640_v28  ;;  %v646_v53 = vmul.f32 %v3906_v8, %v645_v56  ;;  %v7260_v47 = vld [vmem:[#allocation6_spill] sm:$0xff]  ;;  %v7269_v56 = vld [vmem:[#allocation9_spill] sm:$0xff]  ;;  %v7275_v8 = vld [vmem:[#allocation15_spill] sm:$0xff] }
 0x343   :  { %v672_v43 = vadd.f32 %v670_v59, %v652_v15  ;;  %v591_v41 = vadd.f32 %v587_v40, %v569_v24  ;;  %v710_v10 = vadd.f32 %v709_v11, %v708_v4  ;;  %v661_v1 = vmul.f32 %v3907_v61, %v660_v52  ;;  %v7264_v52 = vld [vmem:[#allocation10_spill] sm:$0xff]  ;;  %v7271_v61 = vld [vmem:[#allocation11_spill] sm:$0xff]  ;;  %v7273_v2 = vld [vmem:[#allocation13_spill] sm:$0xff] }
 0x344   :  { %v666_v55 = vmul.f32 %v3908_v54, %v665_v57  ;;  %v627_v22 = vsub.f32 %v621_v45, %v626_v38  ;;  %v647_v30 = vsub.f32 %v641_v5, %v646_v53  ;;  %v681_v16 = vmul.f32 %v3909_v48, %v680_v26  ;;  %v7259_v45 = vld [vmem:[#allocation4_spill] sm:$0xff]  ;;  %v7267_v54 = vld [vmem:[#allocation7_spill] sm:$0xff]  ;;  %v7276_v28 = vld [vmem:[#allocation22_spill] sm:$0xff] }
 0x345   :  { %v692_v23 = vadd.f32 %v690_v36, %v672_v43  ;;  %v611_v3 = vadd.f32 %v607_v39, %v591_v41  ;;  %v686_v49 = vmul.f32 %v3910_v0, %v685_v20  ;;  %v701_v46 = vmul.f32 %v3911_v51, %v700_v58  ;;  %v877_v36 = vld [vmem:[%s6933_s12] sm:$0xff]  ;;  %v7262_v48 = vld [vmem:[#allocation8_spill] sm:$0xff]  ;;  %v7263_v51 = vld [vmem:[#allocation3_spill] sm:$0xff] }
 0x346   :  { %v667_v18 = vsub.f32 %v661_v1, %v666_v55  ;;  %v706_v40 = vmul.f32 %v3912_v44, %v705_v63  ;;  %v7270_v57 = vld [vmem:[#allocation16_spill] sm:$0xff]  ;;  %v7279_v24 = vld [vmem:[#allocation19_spill] sm:$0xff]  ;;  %v7285_v0 = vld [vmem:[#allocation25_spill] sm:$0xff] }
 0x347   :  { %v712_v13 = vadd.f32 %v710_v10, %v692_v23  ;;  %v631_v42 = vadd.f32 %v627_v22, %v611_v3  ;;  %v687_v39 = vsub.f32 %v681_v16, %v686_v49  ;;  %v7286_v26 = vld [vmem:[#allocation32_spill] sm:$0xff]  ;;  %v7287_v20 = vld [vmem:[#allocation27_spill] sm:$0xff]  ;;  %v7289_v58 = vld [vmem:[#allocation29_spill] sm:$0xff] }
 0x348   :  { %v707_v43 = vsub.f32 %v701_v46, %v706_v40  ;;  %v7290_v63 = vld [vmem:[#allocation36_spill] sm:$0xff]  ;;  %v7291_v50 = vld [vmem:[#allocation31_spill] sm:$0xff]  ;;  %v7292_v59 = vld [vmem:[#allocation38_spill] sm:$0xff] }
 0x349   :  { %3913 = vmatmul.mubr.msk.f32.vlgmr.msra.gmra.mxu0 %vm187_vm3, %v712_v13  ;;  %v651_v27 = vadd.f32 %v647_v30, %v631_v42  ;;  %v7293_v60 = vld [vmem:[#allocation33_spill] sm:$0xff]  ;;  %v7294_v14 = vld [vmem:[#allocation40_spill] sm:$0xff]  ;;  %v7295_v35 = vld [vmem:[#allocation35_spill] sm:$0xff] }
 0x34a   :  { %919 = vmatpush1.msra.mxu0 %v5318_v62  ;;  %952 = vmatprep.mubr.f32.mxu0 %v7237_v6  ;;  %v7272_v62 = vld [vmem:[#allocation18_spill] sm:$0xff]  ;;  %v7297_v4 = vld [vmem:[#allocation37_spill] sm:$0xff]  ;;  %v7298_v11 = vld [vmem:[#allocation44_spill] sm:$0xff] }
 0x34b   :  { %4061 = vmatprep.subr.mxu0 %v4810_v32  ;;  %v671_v38 = vadd.f32 %v667_v18, %v651_v27  ;;  %v7261_v32 = vld [vmem:[#allocation2_spill] sm:$0xff]  ;;  %v7299_v5 = vld [vmem:[#allocation39_spill] sm:$0xff]  ;;  %v7301_v23 = vld [vmem:[#allocation41_spill] sm:$0xff] }
 0x34c   :  { %v7296_v15 = vld [vmem:[#allocation42_spill] sm:$0xff]  ;;  %v7302_v10 = vld [vmem:[#allocation48_spill] sm:$0xff]  ;;  %v7303_v1 = vld [vmem:[#allocation43_spill] sm:$0xff] }
 0x34d   :  { %3915 = vmatmul.mubr.msk.f32.vlgmr.msra.gmra.mxu0 %vm884_vm4, %v877_v36  ;;  %v691_v41 = vadd.f32 %v687_v39, %v671_v38  ;;  %v7300_v53 = vld [vmem:[#allocation46_spill] sm:$0xff]  ;;  %v7305_v3 = vld [vmem:[#allocation45_spill] sm:$0xff]  ;;  %v7306_v22 = vld [vmem:[#allocation52_spill] sm:$0xff] }
 0x34e   :  { %4062 = vmatpush3.msra.mxu0 %v4816_v33  ;;  %v7265_v33 = vld [vmem:[#allocation5_spill] sm:$0xff]  ;;  %v7304_v55 = vld [vmem:[#allocation50_spill] sm:$0xff]  ;;  %v7307_v13 = vld [vmem:[#allocation47_spill] sm:$0xff] }
 0x34f   :  { %4063 = vmatprep.subr.mxu0 %v4821_v34  ;;  %v711_v44 = vadd.f32 %v707_v43, %v691_v41  ;;  %v7266_v34 = vld [vmem:[#allocation12_spill] sm:$0xff]  ;;  %v7308_v42 = vld [vmem:[#allocation54_spill] sm:$0xff]  ;;  %v7309_v30 = vld [vmem:[#allocation49_spill] sm:$0xff] }
 0x350   :  { %4064 = vmatpush3.msra.mxu0 %v4837_v37  ;;  %v7268_v37 = vld [vmem:[#allocation14_spill] sm:$0xff]  ;;  %v7310_v16 = vld [vmem:[#allocation56_spill] sm:$0xff]  ;;  %v7311_v49 = vld [vmem:[#allocation51_spill] sm:$0xff] }
 0x351   :  { %4065 = vmatprep.subr.mxu0 %v7259_v45  ;;  %3914 = vmatmul.mubr.msk.f32.vlgmr.msra.gmra.mxu1 %vm187_vm3, %v711_v44  ;;  %v7312_v18 = vld [vmem:[#allocation58_spill] sm:$0xff]  ;;  %v7313_v27 = vld [vmem:[#allocation53_spill] sm:$0xff]  ;;  %v7314_v46 = vld [vmem:[#allocation60_spill] sm:$0xff] }
 0x352   :  { %4066 = vmatpush3.msra.mxu0 %v7260_v47  ;;  %4097 = vmatpush3.msra.mxu1 %v7261_v32  ;;  %v7315_v40 = vld [vmem:[#allocation55_spill] sm:$0xff]  ;;  %v7316_v36 = vld [vmem:[#allocation57_spill] sm:$0xff]  ;;  %v7320_v32 = vld [vmem:[#allocation62_spill] sm:$0xff] }
 0x353   :  { %4067 = vmatprep.subr.mxu0 %v7262_v48  ;;  %4098 = vmatprep.subr.mxu1 %v7263_v51  ;;  %v7317_v38 = vld [vmem:[#allocation59_spill] sm:$0xff]  ;;  %v7318_v39 = vld [vmem:[#allocation61_spill] sm:$0xff] }
 0x354   :  { %4068 = vmatpush3.msra.mxu0 %v7264_v52  ;;  %4099 = vmatpush3.msra.mxu1 %v7265_v33  ;;  %v7319_v41 = vld [vmem:[#allocation77_spill] sm:$0xff] }
 0x355   :  { %4069 = vmatprep.subr.mxu0 %v7266_v34  ;;  %4100 = vmatprep.subr.mxu1 %v7267_v54 }
 0x356   :  { %4070 = vmatpush3.msra.mxu0 %v7268_v37  ;;  %4101 = vmatpush3.msra.mxu1 %v7269_v56 }
 0x357   :  { %4071 = vmatprep.subr.mxu0 %v7270_v57  ;;  %4102 = vmatprep.subr.mxu1 %v7271_v61 }
 0x358   :  { %4072 = vmatpush3.msra.mxu0 %v7272_v62  ;;  %4103 = vmatpush3.msra.mxu1 %v7273_v2 }
 0x359   :  { %4073 = vmatprep.subr.mxu0 %v7274_v21  ;;  %4104 = vmatprep.subr.mxu1 %v7275_v8 }
 0x35a   :  { %4074 = vmatpush3.msra.mxu0 %v7276_v28  ;;  %4105 = vmatpush3.msra.mxu1 %v7277_v31 }
 0x35b   :  { %4075 = vmatprep.subr.mxu0 %v7278_v7  ;;  %4106 = vmatprep.subr.mxu1 %v7279_v24 }
 0x35c   :  { %4076 = vmatpush3.msra.mxu0 %v7280_v29  ;;  %4107 = vmatpush3.msra.mxu1 %v7281_v12 }
 0x35d   :  { %4077 = vmatprep.subr.mxu0 %v7282_v17  ;;  %4108 = vmatprep.subr.mxu1 %v7283_v25 }
 0x35e   :  { %4078 = vmatpush3.msra.mxu0 %v7284_v9  ;;  %4109 = vmatpush3.msra.mxu1 %v7285_v0 }
 0x35f   :  { %4079 = vmatprep.subr.mxu0 %v7286_v26  ;;  %4110 = vmatprep.subr.mxu1 %v7287_v20 }
 0x360   :  { %4080 = vmatpush3.msra.mxu0 %v7288_v19  ;;  %4111 = vmatpush3.msra.mxu1 %v7289_v58  ;;  %v7321_v19 = vld [vmem:[#allocation68_spill] sm:$0xff]  ;;  %v7322_v58 = vld [vmem:[#allocation78_spill] sm:$0xff] }
 0x361   :  { %4081 = vmatprep.subr.mxu0 %v7290_v63  ;;  %4112 = vmatprep.subr.mxu1 %v7291_v50  ;;  %v7323_v63 = vld [vmem:[#allocation69_spill] sm:$0xff]  ;;  %v7324_v50 = vld [vmem:[#allocation79_spill] sm:$0xff] }
 0x362   :  { %4082 = vmatpush3.msra.mxu0 %v7292_v59  ;;  %4113 = vmatpush3.msra.mxu1 %v7293_v60  ;;  %v7325_v59 = vld [vmem:[#allocation70_spill] sm:$0xff]  ;;  %v7326_v60 = vld [vmem:[#allocation80_spill] sm:$0xff] }
 0x363   :  { %4083 = vmatprep.subr.mxu0 %v7294_v14  ;;  %4114 = vmatprep.subr.mxu1 %v7295_v35  ;;  %v7327_v14 = vld [vmem:[#allocation71_spill] sm:$0xff]  ;;  %v7328_v35 = vld [vmem:[#allocation81_spill] sm:$0xff] }
 0x364   :  { %4084 = vmatpush3.msra.mxu0 %v7296_v15  ;;  %4115 = vmatpush3.msra.mxu1 %v7297_v4  ;;  %v7329_v15 = vld [vmem:[#allocation72_spill] sm:$0xff]  ;;  %v7330_v4 = vld [vmem:[#allocation82_spill] sm:$0xff] }
 0x365   :  { %4085 = vmatprep.subr.mxu0 %v7298_v11  ;;  %4116 = vmatprep.subr.mxu1 %v7299_v5  ;;  %v7331_v11 = vld [vmem:[#allocation73_spill] sm:$0xff]  ;;  %v7332_v5 = vld [vmem:[#allocation83_spill] sm:$0xff] }
 0x366   :  { %4086 = vmatpush3.msra.mxu0 %v7300_v53  ;;  %4117 = vmatpush3.msra.mxu1 %v7301_v23  ;;  %v7333_v53 = vld [vmem:[#allocation74_spill] sm:$0xff]  ;;  %v7334_v23 = vld [vmem:[#allocation84_spill] sm:$0xff] }
 0x367   :  { %4087 = vmatprep.subr.mxu0 %v7302_v10  ;;  %4118 = vmatprep.subr.mxu1 %v7303_v1 }
 0x368   :  { %4088 = vmatpush3.msra.mxu0 %v7304_v55  ;;  %4119 = vmatpush3.msra.mxu1 %v7305_v3 }
 0x369   :  { %4089 = vmatprep.subr.mxu0 %v7306_v22  ;;  %4120 = vmatprep.subr.mxu1 %v7307_v13 }
 0x36a   :  { %4090 = vmatpush3.msra.mxu0 %v7308_v42  ;;  %4121 = vmatpush3.msra.mxu1 %v7309_v30  ;;  %v3916_v42 = vld [vmem:[%s6931_s10 + $0x40] sm:$0xff] }
 0x36b   :  { %4091 = vmatprep.subr.mxu0 %v7310_v16  ;;  %4122 = vmatprep.subr.mxu1 %v7311_v49  ;;  %v3917_v30 = vld [vmem:[%s6932_s11 + $0x40] sm:$0xff]  ;;  %v3918_v16 = vld [vmem:[%s6931_s10 + $0x48] sm:$0xff] }
 0x36c   :  { %4092 = vmatpush3.msra.mxu0 %v7312_v18  ;;  %4123 = vmatpush3.msra.mxu1 %v7313_v27  ;;  %v3919_v49 = vld [vmem:[%s6932_s11 + $0x48] sm:$0xff]  ;;  %v3920_v18 = vld [vmem:[%s6931_s10 + $0x50] sm:$0xff]  ;;  %v7335_v27 = vld [vmem:[#allocation85_spill] sm:$0xff] }
 0x36d   :  { %1304 = vmatprep.subr.mxu0 %v7314_v46  ;;  %4124 = vmatprep.subr.mxu1 %v7315_v40 }
 0x36e   :  { %4125 = vmatpush3.msra.mxu1 %v7316_v36  ;;  %v7336_v36 = vld [vmem:[#allocation86_spill] sm:$0xff] }
 0x36f   :  { %4126 = vmatprep.subr.mxu1 %v7317_v38 }
 0x370   :  { %4127 = vmatpush3.msra.mxu1 %v7318_v39 }
 0x371   :  { %1378 = vmatprep.subr.mxu1 %v7319_v41  ;;  %v3921_v41 = vld [vmem:[%s6932_s11 + $0x50] sm:$0xff] }
 0x409   :  { %v798_v43 = vpop.f32.mrf.mxu0 }
 0x40b   :  { %v800_v44 = vpop.f32.mrf.mxu0 }
 0x40d   :  { %v954_v45 = vpop.f32.mrf.mxu0 }
 0x40e   :  { %v955_v48 = vadd.f32 %v954_v45, %v7320_v32  ;;  %v7337_v45 = vld [vmem:[#allocation87_spill] sm:$0xff] }
 0x40f   :  { %v956_v47 = vpop.f32.mrf.mxu0 }
 0x410   :  { %v957_v33 = vadd.f32 %v956_v47, %v7320_v32 }
 0x411   :  { %v872_v51 = vpop.f32.mrf.mxu1 }
 0x412   :  { %v873_v52 = vadd.f32 %v872_v51, %v798_v43  ;;  %v3922_v43 = vld [vmem:[%s6931_s10 + $0x58] sm:$0xff]  ;;  %v7338_v51 = vld [vmem:[#allocation88_spill] sm:$0xff] }
 0x413   :  { %v874_v34 = vpop.f32.mrf.mxu1 }
 0x414   :  { %v875_v54 = vadd.f32 %v874_v34, %v800_v44  ;;  %v959_v37 = vadd.f32 %v955_v48, %v873_v52  ;;  %v3923_v44 = vld [vmem:[%s6932_s11 + $0x58] sm:$0xff] }
 0x416   :  { %v961_v56 = vmul.f32 %v959_v37, %v959_v37  ;;  %v960_v57 = vadd.f32 %v957_v33, %v875_v54 }
 0x418   :  { %v963_v61 = vmul.f32 %v961_v56, %v959_v37  ;;  %v962_v62 = vmul.f32 %v960_v57, %v960_v57 }
 0x41a   :  { %v965_v2 = vmul.f32 0.044715, %v963_v61  ;;  %v964_v21 = vmul.f32 %v962_v62, %v960_v57 }
 0x41c   :  { %v967_v8 = vadd.f32 %v965_v2, %v959_v37  ;;  %v966_v28 = vmul.f32 0.044715, %v964_v21  ;;  %v3924_v21 = vld [vmem:[%s6931_s10 + $0x60] sm:$0xff] }
 0x41e   :  { %v969_v31 = vmul.f32 0.7978846, %v967_v8  ;;  %v968_v7 = vadd.f32 %v966_v28, %v960_v57  ;;  %v3925_v8 = vld [vmem:[%s6932_s11 + $0x60] sm:$0xff] }
 0x420   :  { %4407 = vtanh.f32 %v969_v31  ;;  %v970_v24 = vmul.f32 0.7978846, %v968_v7  ;;  %v7339_v7 = vld [vmem:[#allocation89_spill] sm:$0xff] }
 0x422   :  { %4409 = vtanh.f32 %v970_v24 }
 0x42d   :  { %v4408_v29 = vpop.eup %4407 }
 0x42e   :  { %v973_v12 = vadd.f32 1.0, %v4408_v29 }
 0x42f   :  { %v4410_v17 = vpop.eup %4409 }
 0x430   :  { %v974_v25 = vadd.f32 1.0, %v4410_v17  ;;  %v975_v9 = vmul.f32 0.5, %v973_v12  ;;  %v3926_v12 = vld [vmem:[%s6931_s10 + $0x68] sm:$0xff] }
 0x431   :  { %v3927_v17 = vld [vmem:[%s6932_s11 + $0x68] sm:$0xff] }
 0x432   :  { %v976_v0 = vmul.f32 0.5, %v974_v25  ;;  %v5593_v20 = vmul.f32 %v975_v9, %v959_v37  ;;  %v7340_v9 = vld [vmem:[#allocation90_spill] sm:$0xff] }
 0x434   :  { %v978_v26 = vmul.f32 %v976_v0, %v960_v57 }
 0x436   :  { %1043 = vmatprep.mubr.f32.mxu0 %v978_v26  ;;  %1113 = vmatprep.mubr.f32.mxu1 %v978_v26 }
 0x437   :  { %1044 = vmatmul.mubr.f32.vlgmr.msra.gmra.mxu0 %v5593_v20  ;;  %1114 = vmatmul.mubr.f32.vlgmr.msra.gmra.mxu1 %v5593_v20 }
 0x438   :  { %1305 = vmatpush1.msra.mxu0 %v7321_v19  ;;  %1379 = vmatpush1.msra.mxu1 %v7322_v58 }
 0x439   :  { %1306 = vmatprep.subr.mxu0 %v7323_v63  ;;  %1380 = vmatprep.subr.mxu1 %v7324_v50  ;;  %v3929_v50 = vld [vmem:[%s6932_s11 + $0x70] sm:$0xff] }
 0x43a   :  { %1307 = vmatpush1.msra.mxu0 %v7325_v59  ;;  %1381 = vmatpush1.msra.mxu1 %v7326_v60  ;;  %v7341_v59 = vld [vmem:[#allocation91_spill] sm:$0xff] }
 0x43b   :  { %1308 = vmatprep.subr.mxu0 %v7327_v14  ;;  %1382 = vmatprep.subr.mxu1 %v7328_v35 }
 0x43c   :  { %1309 = vmatpush1.msra.mxu0 %v7329_v15  ;;  %1383 = vmatpush1.msra.mxu1 %v7330_v4  ;;  %v3928_v15 = vld [vmem:[%s6931_s10 + $0x70] sm:$0xff] }
 0x43d   :  { %1310 = vmatprep.subr.mxu0 %v7331_v11  ;;  %1384 = vmatprep.subr.mxu1 %v7332_v5 }
 0x43e   :  { %1311 = vmatpush1.msra.mxu0 %v7333_v53  ;;  %1344 = vmatprep.mubr.f32.mxu0 %v7237_v6  ;;  %v7342_v53 = vld [vmem:[#allocation92_spill] sm:$0xff] }
 0x43f   :  { %1467 = vmatprep.subr.mxu0 %v978_v26  ;;  %1385 = vmatpush1.msra.mxu1 %v7334_v23 }
 0x440   :  { %1418 = vmatprep.mubr.f32.mxu1 %v7237_v6 }
 0x4f7   :  { %v4093_v10 = vpop.f32.mrf.mxu0  ;;  %v4128_v1 = vpop.f32.mrf.mxu1 }
 0x4f9   :  { %v4094_v55 = vpop.f32.mrf.mxu0  ;;  %v4129_v3 = vpop.f32.mrf.mxu1 }
 0x4fa   :  { %v4095_v22 = vadd.f32 %v4094_v55, %v4093_v10  ;;  %v4130_v13 = vadd.f32 %v4129_v3, %v4128_v1  ;;  %v3930_v3 = vld [vmem:[%s6931_s10 + $0x78] sm:$0xff] }
 0x4fc   :  { %v1126_v46 = vrot.slane %v4095_v22, %v7335_v27  ;;  %v1131_v40 = vrot.slane %v4130_v13, %v7335_v27  ;;  %v1144_v38 = vrot.slane %v4095_v22, %v7336_v36  ;;  %v1149_v39 = vrot.slane %v4130_v13, %v7336_v36 }
 0x4fd   :  { %v1164_v47 = vrot.slane %v4095_v22, %v7337_v45  ;;  %v1169_v48 = vrot.slane %v4130_v13, %v7337_v45  ;;  %v1184_v52 = vrot.slane %v4095_v22, %v7338_v51  ;;  %v1189_v33 = vrot.slane %v4130_v13, %v7338_v51 }
 0x4fe   :  { %v1134_v34 = vmul.f32 %v3917_v30, %v1126_v46  ;;  %v1135_v54 = vmul.f32 %v3916_v42, %v1131_v40  ;;  %v1152_v37 = vmul.f32 %v3919_v49, %v1144_v38  ;;  %v1153_v56 = vmul.f32 %v3918_v16, %v1149_v39 }
 0x4ff   :  { %v1172_v57 = vmul.f32 %v3921_v41, %v1164_v47  ;;  %v1173_v61 = vmul.f32 %v3920_v18, %v1169_v48  ;;  %v1192_v62 = vmul.f32 %v3923_v44, %v1184_v52  ;;  %v1193_v2 = vmul.f32 %v3922_v43, %v1189_v33 }
 0x500   :  { %v1136_v28 = vadd.f32 %v1135_v54, %v1134_v34  ;;  %v1154_v31 = vadd.f32 %v1153_v56, %v1152_v37  ;;  %v1204_v24 = vrot.slane %v4095_v22, %v7339_v7  ;;  %v1209_v29 = vrot.slane %v4130_v13, %v7339_v7  ;;  %v3931_v34 = vld [vmem:[%s6932_s11 + $0x78] sm:$0xff] }
 0x501   :  { %v1174_v25 = vadd.f32 %v1173_v61, %v1172_v57  ;;  %v1224_v0 = vrot.slane %v4095_v22, %v7340_v9  ;;  %v1229_v26 = vrot.slane %v4130_v13, %v7340_v9  ;;  %v1244_v60 = vrot.slane %v4095_v22, %v7341_v59 }
 0x502   :  { %v1156_v19 = vadd.f32 %v1154_v31, %v1136_v28  ;;  %v1212_v58 = vmul.f32 %v3925_v8, %v1204_v24  ;;  %v1213_v63 = vmul.f32 %v3924_v21, %v1209_v29  ;;  %v1249_v4 = vrot.slane %v4130_v13, %v7341_v59 }
 0x503   :  { %v1232_v14 = vmul.f32 %v3927_v17, %v1224_v0  ;;  %v1233_v35 = vmul.f32 %v3926_v12, %v1229_v26  ;;  %v1194_v5 = vadd.f32 %v1193_v2, %v1192_v62  ;;  %v1264_v23 = vrot.slane %v4095_v22, %v7342_v53 }
 0x504   :  { %v1176_v11 = vadd.f32 %v1174_v25, %v1156_v19  ;;  %v1269_v10 = vrot.slane %v4130_v13, %v7342_v53  ;;  %v1214_v1 = vadd.f32 %v1213_v63, %v1212_v58  ;;  %v1252_v55 = vmul.f32 %v3929_v50, %v1244_v60 }
 0x505   :  { %v1127_v54 = vmul.f32 %v3916_v42, %v1126_v46  ;;  %v1253_v56 = vmul.f32 %v3928_v15, %v1249_v4  ;;  %v1132_v57 = vmul.f32 %v3917_v30, %v1131_v40  ;;  %v1145_v61 = vmul.f32 %v3918_v16, %v1144_v38 }
 0x506   :  { %v1196_v37 = vadd.f32 %v1194_v5, %v1176_v11  ;;  %v1234_v62 = vadd.f32 %v1233_v35, %v1232_v14  ;;  %v1150_v2 = vmul.f32 %v3919_v49, %v1149_v39  ;;  %v1165_v22 = vmul.f32 %v3920_v18, %v1164_v47 }
 0x507   :  { %v1170_v28 = vmul.f32 %v3921_v41, %v1169_v48  ;;  %v1272_v31 = vmul.f32 %v3931_v34, %v1264_v23  ;;  %v1273_v25 = vmul.f32 %v3930_v3, %v1269_v10  ;;  %v1133_v19 = vsub.f32 %v1127_v54, %v1132_v57 }
 0x508   :  { %v1216_v13 = vadd.f32 %v1214_v1, %v1196_v37  ;;  %v1151_v58 = vsub.f32 %v1145_v61, %v1150_v2  ;;  %v1185_v63 = vmul.f32 %v3922_v43, %v1184_v52  ;;  %v1190_v32 = vmul.f32 %v3923_v44, %v1189_v33 }
 0x509   :  { %v1254_v59 = vadd.f32 %v1253_v56, %v1252_v55  ;;  %v1171_v7 = vsub.f32 %v1165_v22, %v1170_v28  ;;  %v1205_v42 = vmul.f32 %v3924_v21, %v1204_v24  ;;  %v1210_v46 = vmul.f32 %v3925_v8, %v1209_v29  ;;  %v3934_v21 = vld [vmem:[%s6933_s12 + $0x8] sm:$0xff] }
 0x50a   :  { %v1236_v53 = vadd.f32 %v1234_v62, %v1216_v13  ;;  %v1155_v9 = vadd.f32 %v1151_v58, %v1133_v19  ;;  %v1274_v30 = vadd.f32 %v1273_v25, %v1272_v31  ;;  %v1225_v16 = vmul.f32 %v3926_v12, %v1224_v0  ;;  %v7343_v0 = vld [vmem:[#allocation64_spill] sm:$0xff]  ;;  %v1528_v19 = vld [vmem:[%s6934_s14] sm:$0xff] }
 0x50b   :  { %v1230_v40 = vmul.f32 %v3927_v17, %v1229_v26  ;;  %v1191_v18 = vsub.f32 %v1185_v63, %v1190_v32  ;;  %v1211_v41 = vsub.f32 %v1205_v42, %v1210_v46  ;;  %v1245_v47 = vmul.f32 %v3928_v15, %v1244_v60  ;;  %v3937_v31 = vld [vmem:[%s6934_s14 + $0x10] sm:$0xff]  ;;  %v1662_v63 = vld [vmem:[%s6935_s15] sm:$0xff]  ;;  %v3938_v42 = vld [vmem:[%s6934_s14 + $0x18] sm:$0xff] }
 0x50c   :  { %v1256_v11 = vadd.f32 %v1254_v59, %v1236_v53  ;;  %v1175_v49 = vadd.f32 %v1171_v7, %v1155_v9  ;;  %v1250_v48 = vmul.f32 %v3929_v50, %v1249_v4  ;;  %v1265_v52 = vmul.f32 %v3930_v3, %v1264_v23  ;;  %v1529_v46 = vld [vmem:[%s6934_s14 + $0x8] sm:$0xff] }
 0x50d   :  { %v1231_v43 = vsub.f32 %v1225_v16, %v1230_v40  ;;  %v1270_v33 = vmul.f32 %v3931_v34, %v1269_v10 }
 0x50e   :  { %v1276_v38 = vadd.f32 %v1274_v30, %v1256_v11  ;;  %v1195_v39 = vadd.f32 %v1191_v18, %v1175_v49  ;;  %v1251_v8 = vsub.f32 %v1245_v47, %v1250_v48  ;;  %v5722_v49 = vld [vmem:[%s7160_s16 + $0xf8] sm:$0xff]  ;;  %v1663_v47 = vld [vmem:[%s6935_s15 + $0x8] sm:$0xff] }
 0x50f   :  { %v1271_v24 = vsub.f32 %v1265_v52, %v1270_v33  ;;  %v3940_v48 = vld [vmem:[%s6934_s14 + $0x28] sm:$0xff] }
 0x510   :  { %3932 = vmatmul.mubr.msk.f32.vlgmr.msra.gmra.mxu0 %vm187_vm3, %v1276_v38  ;;  %v1215_v44 = vadd.f32 %v1211_v41, %v1195_v39  ;;  %v5730_v41 = vld [vmem:[%s7160_s16 + $0x78] sm:$0xff] }
 0x511   :  { %1468 = vmatpush1.msra.mxu0 %v5593_v20  ;;  %1501 = vmatprep.mubr.f32.mxu0 %v7237_v6 }
 0x512   :  { %v1235_v32 = vadd.f32 %v1231_v43, %v1215_v44  ;;  %v5743_v43 = vld [vmem:[%s7160_s16 + $0xf0] sm:$0xff] }
 0x514   :  { %3936 = vmatmul.mubr.msk.f32.vlgmr.msra.gmra.mxu0 %vm884_vm4, %v3934_v21  ;;  %v1255_v7 = vadd.f32 %v1251_v8, %v1235_v32  ;;  %v5751_v21 = vld [vmem:[%s7160_s16 + $0x70] sm:$0xff]  ;;  %v3939_v32 = vld [vmem:[%s6934_s14 + $0x20] sm:$0xff]  ;;  %v5761_v8 = vld [vmem:[%s7160_s16 + $0xe8] sm:$0xff] }
 0x515   :  { %1937 = vmatprep.mubr.f32.mxu0 %v7237_v6 }
 0x516   :  { %v1275_v29 = vadd.f32 %v1271_v24, %v1255_v7 }
 0x518   :  { %3933 = vmatmul.mubr.msk.f32.vlgmr.msra.gmra.mxu1 %vm187_vm3, %v1275_v29  ;;  %v3942_v29 = vld [vmem:[%s6934_s14 + $0x38] sm:$0xff] }
 0x519   :  { %1766 = vmatprep.mubr.f32.mxu1 %v7237_v6 }
 0x5d0   :  { %v1346_v20 = vpop.f32.mrf.mxu0 }
 0x5d2   :  { %v1348_v12 = vpop.f32.mrf.mxu0 }
 0x5d4   :  { %v1503_v17 = vpop.f32.mrf.mxu0 }
 0x5d5   :  { %v1504_v26 = vadd.f32 %v1503_v17, %v7343_v0 }
 0x5d6   :  { %v1505_v9 = vpop.f32.mrf.mxu0 }
 0x5d7   :  { %v1506_v60 = vadd.f32 %v1505_v9, %v7343_v0 }
 0x5d8   :  { %v1420_v50 = vpop.f32.mrf.mxu1 }
 0x5d9   :  { %v1421_v59 = vadd.f32 %v1420_v50, %v1346_v20  ;;  %v5772_v20 = vld [vmem:[%s7160_s16 + $0x68] sm:$0xff]  ;;  %v3941_v50 = vld [vmem:[%s6934_s14 + $0x30] sm:$0xff] }
 0x5da   :  { %v1422_v14 = vpop.f32.mrf.mxu1 }
 0x5db   :  { %v1423_v35 = vadd.f32 %v1422_v14, %v1348_v12  ;;  %v1508_v15 = vadd.f32 %v1504_v26, %v1421_v59  ;;  %v1664_v12 = vld [vmem:[%s6935_s15 + $0x10] sm:$0xff]  ;;  %v5784_v26 = vld [vmem:[%s7160_s16 + $0xe0] sm:$0xff] }
 0x5dc   :  { %7344 = vst [vmem:[#allocation4_spill] sm:$0xff] %v5784_v26  ;;  %v5793_v59 = vld [vmem:[%s7160_s16 + $0x60] sm:$0xff] }
 0x5dd   :  { %v1510_v4 = vmul.f32 %v1508_v15, %v1508_v15  ;;  %v1509_v5 = vadd.f32 %v1506_v60, %v1423_v35  ;;  %7345 = vst [vmem:[#allocation6_spill] sm:$0xff] %v5793_v59  ;;  %v7346_v35 = vld [vmem:[#allocation89_spill] sm:$0xff] }
 0x5df   :  { %v1512_v53 = vmul.f32 %v1510_v4, %v1508_v15  ;;  %v1511_v23 = vmul.f32 %v1509_v5, %v1509_v5  ;;  %v5802_v4 = vld [vmem:[%s7160_s16 + $0xd8] sm:$0xff] }
 0x5e0   :  { %7347 = vst [vmem:[#allocation2_spill] sm:$0xff] %v5802_v4 }
 0x5e1   :  { %v1514_v10 = vmul.f32 0.044715, %v1512_v53  ;;  %v1513_v1 = vmul.f32 %v1511_v23, %v1509_v5  ;;  %v5811_v53 = vld [vmem:[%s7160_s16 + $0x58] sm:$0xff] }
 0x5e2   :  { %7348 = vst [vmem:[#allocation8_spill] sm:$0xff] %v5811_v53  ;;  %v1665_v23 = vld [vmem:[%s6935_s15 + $0x18] sm:$0xff] }
 0x5e3   :  { %v1516_v55 = vadd.f32 %v1514_v10, %v1508_v15  ;;  %v1515_v3 = vmul.f32 0.044715, %v1513_v1 }
 0x5e5   :  { %v1518_v34 = vmul.f32 0.7978846, %v1516_v55  ;;  %v1517_v54 = vadd.f32 %v1515_v3, %v1509_v5  ;;  %v5822_v55 = vld [vmem:[%s7160_s16 + $0xd0] sm:$0xff]  ;;  %v3943_v3 = vld [vmem:[%s6934_s14 + $0x40] sm:$0xff] }
 0x5e6   :  { %7349 = vst [vmem:[#allocation3_spill] sm:$0xff] %v5822_v55 }
 0x5e7   :  { %4411 = vtanh.f32 %v1518_v34  ;;  %v1519_v37 = vmul.f32 0.7978846, %v1517_v54  ;;  %v5832_v34 = vld [vmem:[%s7160_s16 + $0x50] sm:$0xff] }
 0x5e8   :  { %7350 = vst [vmem:[#allocation10_spill] sm:$0xff] %v5832_v34 }
 0x5e9   :  { %4413 = vtanh.f32 %v1519_v37 }
 0x5f4   :  { %v4412_v56 = vpop.eup %4411 }
 0x5f5   :  { %v1522_v57 = vadd.f32 1.0, %v4412_v56  ;;  %v7351_v56 = vld [vmem:[#allocation90_spill] sm:$0xff] }
 0x5f6   :  { %v4414_v61 = vpop.eup %4413 }
 0x5f7   :  { %v1524_v62 = vmul.f32 0.5, %v1522_v57  ;;  %v1523_v2 = vadd.f32 1.0, %v4414_v61  ;;  %v5841_v61 = vld [vmem:[%s7160_s16 + $0xc8] sm:$0xff] }
 0x5f8   :  { %7352 = vst [vmem:[#allocation5_spill] sm:$0xff] %v5841_v61 }
 0x5f9   :  { %v5689_v22 = vmul.f32 %v1524_v62, %v1508_v15  ;;  %v1525_v28 = vmul.f32 0.5, %v1523_v2  ;;  %v3946_v62 = vld [vmem:[%s6934_s14 + $0x58] sm:$0xff]  ;;  %v5850_v2 = vld [vmem:[%s7160_s16 + $0x48] sm:$0xff] }
 0x5fa   :  { %7353 = vst [vmem:[#allocation12_spill] sm:$0xff] %v5850_v2 }
 0x5fb   :  { %v5691_v13 = vmul.f32 %v1525_v28, %v1509_v5  ;;  %v1549_v25 = vrot.slane %v5689_v22, %v7336_v36  ;;  %v1533_v58 = vrot.slane %v5689_v22, %v7335_v27  ;;  %v1566_v33 = vrot.slane %v5689_v22, %v7337_v45  ;;  %v3944_v5 = vld [vmem:[%s6934_s14 + $0x48] sm:$0xff] }
 0x5fc   :  { %v1583_v9 = vrot.slane %v5689_v22, %v7338_v51  ;;  %v1600_v1 = vrot.slane %v5689_v22, %v7346_v35 }
 0x5fd   :  { %1732 = vmatprep.subr.mxu1 %v5691_v13  ;;  %v1553_v11 = vrot.slane %v5691_v13, %v7336_v36  ;;  %v1537_v30 = vrot.slane %v5691_v13, %v7335_v27  ;;  %v1554_v16 = vmul.f32 %v3937_v31, %v1549_v25  ;;  %v1538_v40 = vmul.f32 %v1533_v58, %v1528_v19  ;;  %v7354_v25 = vld [vmem:[#allocation76_spill] sm:$0xff]  ;;  %v5859_v19 = vld [vmem:[%s7160_s16 + $0xc0] sm:$0xff] }
 0x5fe   :  { %1733 = vmatpush1.msra.mxu1 %v5689_v22  ;;  %v1570_v39 = vrot.slane %v5691_v13, %v7337_v45  ;;  %v1587_v24 = vrot.slane %v5691_v13, %v7338_v51  ;;  %v1571_v17 = vmul.f32 %v3939_v32, %v1566_v33  ;;  %v1604_v15 = vrot.slane %v5691_v13, %v7346_v35  ;;  %v3945_v58 = vld [vmem:[%s6934_s14 + $0x50] sm:$0xff] }
 0x5ff   :  { %3951 = vmatmul.mubr.msk.f32.vlgmr.msra.gmra.mxu1 %vm884_vm4, %v1662_v63  ;;  %4131 = vmatprep.subr.mxu1 %v5722_v49  ;;  %v1555_v18 = vmul.f32 %v3938_v42, %v1553_v11  ;;  %v1539_v38 = vmul.f32 %v1537_v30, %v1529_v46  ;;  %v1588_v10 = vmul.f32 %v3941_v50, %v1583_v9  ;;  %v5868_v63 = vld [vmem:[%s7160_s16 + $0x40] sm:$0xff]  ;;  %v7357_v11 = vld [vmem:[#allocation91_spill] sm:$0xff]  ;;  %v7362_v32 = vld [vmem:[#allocation92_spill] sm:$0xff] }
 0x600   :  { %4132 = vmatpush3.msra.mxu1 %v5730_v41  ;;  %1772 = vmatprep.mubr.f32.mxu1 %v7237_v6  ;;  %v1572_v7 = vmul.f32 %v3940_v48, %v1570_v39  ;;  %v1589_v14 = vmul.f32 %v3942_v29, %v1587_v24  ;;  %v1606_v37 = vmul.f32 %v3944_v5, %v1604_v15  ;;  %v3947_v48 = vld [vmem:[%s6934_s14 + $0x60] sm:$0xff]  ;;  %v5910_v24 = vld [vmem:[%s7160_s16 + $0xa8] sm:$0xff]  ;;  %v3950_v29 = vld [vmem:[%s6934_s14 + $0x78] sm:$0xff] }
 0x601   :  { %4133 = vmatprep.subr.mxu1 %v5743_v43  ;;  %v1556_v44 = vadd.f32 %v1555_v18, %v1554_v16  ;;  %v1540_v52 = vadd.f32 %v1539_v38, %v1538_v40  ;;  %v1621_v57 = vrot.slane %v5691_v13, %v7351_v56  ;;  %v1605_v28 = vmul.f32 %v3943_v3, %v1600_v1  ;;  %v5876_v16 = vld [vmem:[%s7160_s16 + $0xb8] sm:$0xff]  ;;  %v3948_v40 = vld [vmem:[%s6934_s14 + $0x68] sm:$0xff]  ;;  %v5927_v9 = vld [vmem:[%s7160_s16 + $0xa0] sm:$0xff] }
 0x602   :  { %4134 = vmatpush3.msra.mxu1 %v5751_v21  ;;  %v1573_v60 = vadd.f32 %v1572_v7, %v1571_v17  ;;  %v1590_v54 = vadd.f32 %v1589_v14, %v1588_v10  ;;  %v1617_v31 = vrot.slane %v5689_v22, %v7351_v56  ;;  %7355 = vst [vmem:[#allocation7_spill] sm:$0xff] %v5859_v19  ;;  %7356 = vst [vmem:[#allocation14_spill] sm:$0xff] %v5868_v63  ;;  %v5885_v18 = vld [vmem:[%s7160_s16 + $0x38] sm:$0xff]  ;;  %v3949_v50 = vld [vmem:[%s6934_s14 + $0x70] sm:$0xff] }
 0x603   :  { %3952 = vmatmul.mubr.msk.f32.gmra.mxu1 %vm884_vm4, %v1663_v47  ;;  %4135 = vmatprep.subr.mxu1 %v5761_v8  ;;  %v1607_v42 = vadd.f32 %v1606_v37, %v1605_v28  ;;  %v1623_v46 = vmul.f32 %v3946_v62, %v1621_v57  ;;  %v1638_v30 = vrot.slane %v5691_v13, %v7357_v11  ;;  %v5893_v47 = vld [vmem:[%s7160_s16 + $0xb0] sm:$0xff]  ;;  %v5942_v15 = vld [vmem:[%s7160_s16 + $0x98] sm:$0xff]  ;;  %v5972_v37 = vld [vmem:[%s7160_s16 + $0x8] sm:$0xff] }
 0x604   :  { %1557 = vadd.xlane.f32.xlu1 %v1556_v44  ;;  %1541 = vadd.xlane.f32.xlu0 %v1540_v52  ;;  %7358 = vst [vmem:[#allocation9_spill] sm:$0xff] %v5876_v16  ;;  %7359 = vst [vmem:[#allocation16_spill] sm:$0xff] %v5885_v18  ;;  %v1622_v38 = vmul.f32 %v3945_v58, %v1617_v31  ;;  %v1634_v39 = vrot.slane %v5689_v22, %v7357_v11  ;;  %v5902_v44 = vld [vmem:[%s7160_s16 + $0x30] sm:$0xff]  ;;  %v5948_v5 = vld [vmem:[%s7160_s16 + $0x18] sm:$0xff] }
 0x605   :  { %4136 = vmatpush3.msra.mxu1 %v5772_v20  ;;  %1778 = vmatprep.mubr.f32.mxu1 %v7237_v6  ;;  %7360 = vst [vmem:[#allocation11_spill] sm:$0xff] %v5893_v47  ;;  %7361 = vst [vmem:[#allocation18_spill] sm:$0xff] %v5902_v44  ;;  %v1640_v33 = vmul.f32 %v3948_v40, %v1638_v30  ;;  %v1655_v7 = vrot.slane %v5691_v13, %v7362_v32  ;;  %v5954_v10 = vld [vmem:[%s7160_s16 + $0x90] sm:$0xff]  ;;  %v5978_v57 = vld [vmem:[%s7160_s16 + $0x80] sm:$0xff] }
 0x606   :  { %4137 = vmatprep.subr.mxu1 %v5784_v26  ;;  %v1624_v52 = vadd.f32 %v1623_v46, %v1622_v38  ;;  %7363 = vst [vmem:[#allocation13_spill] sm:$0xff] %v5910_v24  ;;  %v1639_v13 = vmul.f32 %v3947_v48, %v1634_v39  ;;  %v1651_v17 = vrot.slane %v5689_v22, %v7362_v32  ;;  %7365 = vst [vmem:[#allocation15_spill] sm:$0xff] %v5927_v9  ;;  %v5960_v1 = vld [vmem:[%s7160_s16 + $0x10] sm:$0xff]  ;;  %v5984_v62 = vld [vmem:[%s7160_s16] sm:$0xff] }
 0x607   :  { %4138 = vmatpush3.msra.mxu1 %v5793_v59  ;;  %v1657_v22 = vmul.f32 %v3950_v29, %v1655_v7  ;;  %7367 = vst [vmem:[#allocation17_spill] sm:$0xff] %v5942_v15  ;;  %7368 = vst [vmem:[#allocation24_spill] sm:$0xff] %v5948_v5  ;;  %v7375_v28 = vld [vmem:[#allocation75_spill] sm:$0xff]  ;;  %v5991_v31 = vld [vmem:[%s7224_s6 + $0x38] sm:$0xff] }
 0x608   :  { %3953 = vmatmul.mubr.msk.f32.gmra.mxu1 %vm884_vm4, %v1664_v12  ;;  %4139 = vmatprep.subr.mxu1 %v5802_v4  ;;  %v5919_v12 = vld [vmem:[%s7160_s16 + $0x28] sm:$0xff]  ;;  %v1641_v14 = vadd.f32 %v1640_v33, %v1639_v13  ;;  %7369 = vst [vmem:[#allocation19_spill] sm:$0xff] %v5954_v10  ;;  %7370 = vst [vmem:[#allocation26_spill] sm:$0xff] %v5960_v1  ;;  %v5997_v58 = vld [vmem:[%s7224_s6 + $0x30] sm:$0xff] }
 0x609   :  { %1574 = vadd.xlane.f32.xlu1 %v1573_v60  ;;  %4140 = vmatpush3.msra.mxu1 %v5811_v53  ;;  %7364 = vst [vmem:[#allocation20_spill] sm:$0xff] %v5919_v12  ;;  %v5936_v60 = vld [vmem:[%s7160_s16 + $0x20] sm:$0xff]  ;;  %7372 = vst [vmem:[#allocation28_spill] sm:$0xff] %v5972_v37  ;;  %v6016_v30 = vld [vmem:[%s7224_s6 + $0x18] sm:$0xff] }
 0x60a   :  { %4141 = vmatprep.subr.mxu1 %v5822_v55  ;;  %1784 = vmatprep.mubr.f32.mxu1 %v7237_v6  ;;  %7366 = vst [vmem:[#allocation22_spill] sm:$0xff] %v5936_v60  ;;  %7373 = vst [vmem:[#allocation23_spill] sm:$0xff] %v5978_v57  ;;  %v6010_v46 = vld [vmem:[%s7224_s6 + $0x20] sm:$0xff]  ;;  %v6022_v40 = vld [vmem:[%s7224_s6 + $0x10] sm:$0xff] }
 0x60b   :  { %4142 = vmatpush3.msra.mxu1 %v5832_v34  ;;  %7374 = vst [vmem:[#allocation30_spill] sm:$0xff] %v5984_v62  ;;  %7376 = vst [vmem:[#allocation25_spill] sm:$0xff] %v5991_v31  ;;  %v6028_v38 = vld [vmem:[%s7224_s6 + $0x8] sm:$0xff]  ;;  %v6034_v39 = vld [vmem:[%s7224_s6] sm:$0xff] }
 0x60c   :  { %3954 = vmatmul.mubr.msk.f32.gmra.mxu1 %vm884_vm4, %v1665_v23  ;;  %4143 = vmatprep.subr.mxu1 %v5841_v61  ;;  %v1656_v23 = vmul.f32 %v3949_v50, %v1651_v17  ;;  %7377 = vst [vmem:[#allocation32_spill] sm:$0xff] %v5997_v58  ;;  %7379 = vst [vmem:[#allocation34_spill] sm:$0xff] %v6010_v46  ;;  %v7384_v33 = vld [vmem:[#allocation67_spill] sm:$0xff]  ;;  %v7385_v50 = vld [vmem:[#allocation66_spill] sm:$0xff] }
 0x60d   :  { %1591 = vadd.xlane.f32.xlu1 %v1590_v54  ;;  %4144 = vmatpush3.msra.mxu1 %v5850_v2  ;;  %v5966_v54 = vld [vmem:[%s7160_s16 + $0x88] sm:$0xff]  ;;  %7380 = vst [vmem:[#allocation29_spill] sm:$0xff] %v6016_v30  ;;  %7381 = vst [vmem:[#allocation36_spill] sm:$0xff] %v6022_v40 }
 0x60e   :  { %2094 = vmatprep.mubr.f32.mxu1 %v7354_v25  ;;  %4145 = vmatprep.subr.mxu1 %v5859_v19  ;;  %v1658_v3 = vadd.f32 %v1657_v22, %v1656_v23  ;;  %7371 = vst [vmem:[#allocation21_spill] sm:$0xff] %v5966_v54  ;;  %7382 = vst [vmem:[#allocation31_spill] sm:$0xff] %v6028_v38  ;;  %v4560_v2 = vld [vmem:[%s6932_s11 + $0x28] sm:$0xff] }
 0x60f   :  { %4146 = vmatpush3.msra.mxu1 %v5868_v63  ;;  %7383 = vst [vmem:[#allocation38_spill] sm:$0xff] %v6034_v39 }
 0x610   :  { %4147 = vmatprep.subr.mxu1 %v5876_v16 }
 0x611   :  { %1608 = vadd.xlane.f32.xlu1 %v1607_v42  ;;  %4148 = vmatpush3.msra.mxu1 %v5885_v18  ;;  %v6004_v42 = vld [vmem:[%s7224_s6 + $0x28] sm:$0xff]  ;;  %v4556_v18 = vld [vmem:[%s6931_s10 + $0x10] sm:$0xff] }
 0x612   :  { %4149 = vmatprep.subr.mxu1 %v5893_v47  ;;  %7378 = vst [vmem:[#allocation27_spill] sm:$0xff] %v6004_v42  ;;  %v4555_v47 = vld [vmem:[%s6931_s10 + $0x8] sm:$0xff] }
 0x613   :  { %4150 = vmatpush3.msra.mxu1 %v5902_v44 }
 0x614   :  { %4151 = vmatprep.subr.mxu1 %v5910_v24 }
 0x615   :  { %1625 = vadd.xlane.f32.xlu1 %v1624_v52  ;;  %4152 = vmatpush3.msra.mxu1 %v5919_v12 }
 0x616   :  { %4153 = vmatprep.subr.mxu1 %v5927_v9 }
 0x617   :  { %4154 = vmatpush3.msra.mxu1 %v5936_v60 }
 0x618   :  { %4155 = vmatprep.subr.mxu1 %v5942_v15 }
 0x619   :  { %1642 = vadd.xlane.f32.xlu1 %v1641_v14  ;;  %4156 = vmatpush3.msra.mxu1 %v5948_v5 }
 0x61a   :  { %4157 = vmatprep.subr.mxu1 %v5954_v10 }
 0x61b   :  { %4158 = vmatpush3.msra.mxu1 %v5960_v1 }
 0x61c   :  { %4159 = vmatprep.subr.mxu1 %v5966_v54 }
 0x61d   :  { %1659 = vadd.xlane.f32.xlu1 %v1658_v3  ;;  %4160 = vmatpush3.msra.mxu1 %v5972_v37 }
 0x61e   :  { %4161 = vmatprep.subr.mxu1 %v5978_v57 }
 0x61f   :  { %4162 = vmatpush3.msra.mxu1 %v5984_v62 }
 0x620   :  { %2095 = vmatmul.mubr.f32.vlgmr.msra.gmra.mxu1 %v7375_v28  ;;  %2323 = vmatprep.subr.mxu1 %v5991_v31  ;;  %v7387_v31 = vld [vmem:[#allocation63_spill] sm:$0xff] }
 0x621   :  { %2324 = vmatpush1.msra.mxu1 %v5997_v58  ;;  %2363 = vmatprep.mubr.f32.mxu1 %v7237_v6 }
 0x622   :  { %2325 = vmatprep.subr.mxu1 %v6004_v42 }
 0x623   :  { %2326 = vmatpush1.msra.mxu1 %v6010_v46 }
 0x624   :  { %2327 = vmatprep.subr.mxu1 %v6016_v30 }
 0x625   :  { %2328 = vmatpush1.msra.mxu1 %v6022_v40 }
 0x626   :  { %2329 = vmatprep.subr.mxu1 %v6028_v38  ;;  %v7386_v38 = vld [vmem:[#allocation65_spill] sm:$0xff] }
 0x627   :  { %2330 = vmatpush1.msra.mxu1 %v6034_v39 }
 0x628   :  { %2474 = vmatprep.subr.mxu1 %v7354_v25 }
 0x6bf   :  { %v1768_v48 = vpop.f32.mrf.mxu1 }
 0x6c0   :  { %v6042_v13 = vadd.f32 %v1768_v48, %v7384_v33 }
 0x6c1   :  { %v1770_v52 = vpop.f32.mrf.mxu1 }
 0x6c2   :  { %v6039_v7 = vadd.f32 %v1770_v52, %v7384_v33  ;;  %v1791_v52 = vmul.f32 %v6042_v13, %v6042_v13 }
 0x6c3   :  { %v1774_v29 = vpop.f32.mrf.mxu1 }
 0x6c4   :  { %v1792_v17 = vmul.f32 %v6039_v7, %v6039_v7  ;;  %v6047_v14 = vadd.f32 %v1774_v29, %v7385_v50 }
 0x6c5   :  { %v1776_v22 = vpop.f32.mrf.mxu1 }
 0x6c6   :  { %v1800_v23 = vmul.f32 %v1792_v17, %v6039_v7  ;;  %v1793_v3 = vmul.f32 %v6047_v14, %v6047_v14  ;;  %v6053_v0 = vadd.f32 %v1776_v22, %v7385_v50 }
 0x6c8   :  { %v1808_v48 = vmul.f32 0.044715, %v1800_v23  ;;  %v1794_v33 = vmul.f32 %v6053_v0, %v6053_v0  ;;  %v1780_v39 = vpop.f32.mrf.mxu1  ;;  %v1801_v40 = vmul.f32 %v1793_v3, %v6047_v14  ;;  %v1799_v23 = vmul.f32 %v1791_v52, %v6042_v13 }
 0x6c9   :  { %v6060_v29 = vadd.f32 %v1780_v39, %v7386_v38 }
 0x6ca   :  { %v1802_v17 = vmul.f32 %v1794_v33, %v6053_v0  ;;  %v1782_v30 = vpop.f32.mrf.mxu1  ;;  %v1816_v46 = vadd.f32 %v1808_v48, %v6039_v7  ;;  %v1809_v62 = vmul.f32 0.044715, %v1801_v40  ;;  %v1807_v48 = vmul.f32 0.044715, %v1799_v23 }
 0x6cb   :  { %v1795_v22 = vmul.f32 %v6060_v29, %v6060_v29  ;;  %v6067_v50 = vadd.f32 %v1782_v30, %v7386_v38 }
 0x6cc   :  { %v1810_v42 = vmul.f32 0.044715, %v1802_v17  ;;  %v1786_v58 = vpop.f32.mrf.mxu1  ;;  %v1824_v17 = vmul.f32 0.7978846, %v1816_v46  ;;  %v1817_v15 = vadd.f32 %v1809_v62, %v6047_v14 }
 0x6cd   :  { %v1803_v39 = vmul.f32 %v1795_v22, %v6060_v29  ;;  %v1796_v3 = vmul.f32 %v6067_v50, %v6067_v50  ;;  %v1787_v33 = vadd.f32 %v1786_v58, %v7387_v31 }
 0x6ce   :  { %v1818_v57 = vadd.f32 %v1810_v42, %v6053_v0  ;;  %v1788_v37 = vpop.f32.mrf.mxu1  ;;  %4415 = vtanh.f32 %v1824_v17  ;;  %v1825_v46 = vmul.f32 0.7978846, %v1817_v15 }
 0x6cf   :  { %v1811_v54 = vmul.f32 0.044715, %v1803_v39  ;;  %v1804_v30 = vmul.f32 %v1796_v3, %v6067_v50  ;;  %v1797_v38 = vmul.f32 %v1787_v33, %v1787_v33  ;;  %v1789_v52 = vadd.f32 %v1788_v37, %v7387_v31 }
 0x6d0   :  { %v1826_v58 = vmul.f32 0.7978846, %v1818_v57  ;;  %v1815_v39 = vadd.f32 %v1807_v48, %v6042_v13 }
 0x6d1   :  { %v1819_v1 = vadd.f32 %v1811_v54, %v6060_v29  ;;  %v1812_v22 = vmul.f32 0.044715, %v1804_v30  ;;  %v1805_v10 = vmul.f32 %v1797_v38, %v1787_v33  ;;  %v1798_v5 = vmul.f32 %v1789_v52, %v1789_v52 }
 0x6d2   :  { %4417 = vtanh.f32 %v1826_v58  ;;  %v1823_v30 = vmul.f32 0.7978846, %v1815_v39 }
 0x6d3   :  { %v1820_v40 = vadd.f32 %v1812_v22, %v6067_v50  ;;  %v1813_v42 = vmul.f32 0.044715, %v1805_v10  ;;  %v1806_v60 = vmul.f32 %v1798_v5, %v1789_v52  ;;  %v1827_v3 = vmul.f32 0.7978846, %v1819_v1 }
 0x6d5   :  { %v1828_v9 = vmul.f32 0.7978846, %v1820_v40  ;;  %v1821_v37 = vadd.f32 %v1813_v42, %v1787_v33  ;;  %v1814_v23 = vmul.f32 0.044715, %v1806_v60 }
 0x6d7   :  { %4419 = vtanh.f32 %v1828_v9  ;;  %v1829_v54 = vmul.f32 0.7978846, %v1821_v37  ;;  %v1822_v38 = vadd.f32 %v1814_v23, %v1789_v52 }
 0x6d8   :  { %4421 = vtanh.f32 %v1827_v3 }
 0x6d9   :  { %4423 = vtanh.f32 %v1829_v54  ;;  %v1830_v57 = vmul.f32 0.7978846, %v1822_v38 }
 0x6da   :  { %4425 = vtanh.f32 %v1825_v46 }
 0x6db   :  { %4427 = vtanh.f32 %v1830_v57  ;;  %v4416_v5 = vpop.eup %4415 }
 0x6dc   :  { %4429 = vtanh.f32 %v1823_v30  ;;  %v1840_v46 = vadd.f32 1.0, %v4416_v5 }
 0x6df   :  { %v4418_v10 = vpop.eup %4417 }
 0x6e0   :  { %v1842_v42 = vadd.f32 1.0, %v4418_v10 }
 0x6e2   :  { %v1850_v57 = vmul.f32 0.5, %v1842_v42  ;;  %v6180_v42 = vld [vmem:[%s7161_s30 + $0xc0] sm:$0xff] }
 0x6e3   :  { %7396 = vst [vmem:[#allocation41_spill] sm:$0xff] %v6180_v42 }
 0x6e4   :  { %v4420_v62 = vpop.eup %4419  ;;  %v1858_v10 = vmul.f32 %v1850_v57, %v6053_v0  ;;  %v6095_v0 = vld [vmem:[%s7161_s30 + $0xf8] sm:$0xff]  ;;  %v6234_v57 = vld [vmem:[%s7161_s30 + $0x20] sm:$0xff] }
 0x6e5   :  { %v4422_v1 = vpop.eup %4421  ;;  %v1844_v60 = vadd.f32 1.0, %v4420_v62  ;;  %v1848_v62 = vmul.f32 0.5, %v1840_v46  ;;  %v6210_v46 = vld [vmem:[%s7161_s30 + $0x30] sm:$0xff]  ;;  %7405 = vst [vmem:[#allocation56_spill] sm:$0xff] %v6234_v57 }
 0x6e6   :  { %v4424_v48 = vpop.eup %4423  ;;  %v1843_v58 = vadd.f32 1.0, %v4422_v1  ;;  %7401 = vst [vmem:[#allocation52_spill] sm:$0xff] %v6210_v46 }
 0x6e7   :  { %v4426_v17 = vpop.eup %4425  ;;  %v1845_v22 = vadd.f32 1.0, %v4424_v48  ;;  %v1852_v23 = vmul.f32 0.5, %v1844_v60  ;;  %v6156_v60 = vld [vmem:[%s7161_s30 + $0xd0] sm:$0xff] }
 0x6e8   :  { %v4428_v15 = vpop.eup %4427  ;;  %v1841_v3 = vadd.f32 1.0, %v4426_v17  ;;  %v1851_v54 = vmul.f32 0.5, %v1843_v58  ;;  %v6144_v17 = vld [vmem:[%s7161_s30 + $0xd8] sm:$0xff]  ;;  %7392 = vst [vmem:[#allocation37_spill] sm:$0xff] %v6156_v60  ;;  %v6162_v58 = vld [vmem:[%s7161_s30 + $0x50] sm:$0xff] }
 0x6e9   :  { %v4430_v9 = vpop.eup %4429  ;;  %v1846_v40 = vadd.f32 1.0, %v4428_v15  ;;  %v1853_v39 = vmul.f32 0.5, %v1845_v22  ;;  %v1860_v48 = vmul.f32 %v1852_v23, %v6067_v50  ;;  %v1863_v50 = vld [vmem:[%s6936_s17] sm:$0xff]  ;;  %7390 = vst [vmem:[#allocation35_spill] sm:$0xff] %v6144_v17  ;;  %v6150_v22 = vld [vmem:[%s7161_s30 + $0x58] sm:$0xff]  ;;  %7393 = vst [vmem:[#allocation44_spill] sm:$0xff] %v6162_v58 }
 0x6ea   :  { %v1839_v38 = vadd.f32 1.0, %v4430_v9  ;;  %v1849_v12 = vmul.f32 0.5, %v1841_v3  ;;  %v1859_v1 = vmul.f32 %v1851_v54, %v6060_v29  ;;  %v6138_v29 = vld [vmem:[%s7161_s30 + $0x60] sm:$0xff]  ;;  %7391 = vst [vmem:[#allocation42_spill] sm:$0xff] %v6150_v22  ;;  %v6168_v9 = vld [vmem:[%s7161_s30 + $0xc8] sm:$0xff]  ;;  %v6192_v3 = vld [vmem:[%s7161_s30 + $0xb8] sm:$0xff] }
 0x6eb   :  { %v1854_v37 = vmul.f32 0.5, %v1846_v40  ;;  %v1861_v31 = vmul.f32 %v1853_v39, %v1787_v33  ;;  %7389 = vst [vmem:[#allocation40_spill] sm:$0xff] %v6138_v29  ;;  %7394 = vst [vmem:[#allocation39_spill] sm:$0xff] %v6168_v9  ;;  %v6174_v40 = vld [vmem:[%s7161_s30 + $0x48] sm:$0xff]  ;;  %v6186_v39 = vld [vmem:[%s7161_s30 + $0x40] sm:$0xff] }
 0x6ec   :  { %v1847_v15 = vmul.f32 0.5, %v1839_v38  ;;  %v1857_v5 = vmul.f32 %v1849_v12, %v6047_v14  ;;  %v6101_v12 = vld [vmem:[%s7161_s30 + $0x78] sm:$0xff]  ;;  %v6132_v14 = vld [vmem:[%s7161_s30 + $0xe0] sm:$0xff]  ;;  %7395 = vst [vmem:[#allocation46_spill] sm:$0xff] %v6174_v40  ;;  %7397 = vst [vmem:[#allocation48_spill] sm:$0xff] %v6186_v39 }
 0x6ed   :  { %v1862_v30 = vmul.f32 %v1854_v37, %v1789_v52  ;;  %v1856_v52 = vmul.f32 %v1848_v62, %v6039_v7  ;;  %v6114_v7 = vld [vmem:[%s7161_s30 + $0x70] sm:$0xff]  ;;  %7388 = vst [vmem:[#allocation33_spill] sm:$0xff] %v6132_v14  ;;  %7398 = vst [vmem:[#allocation43_spill] sm:$0xff] %v6192_v3  ;;  %v6198_v37 = vld [vmem:[%s7161_s30 + $0x38] sm:$0xff] }
 0x6ee   :  { %v1855_v33 = vmul.f32 %v1847_v15, %v6042_v13  ;;  %v6120_v13 = vld [vmem:[%s7161_s30 + $0xe8] sm:$0xff]  ;;  %7399 = vst [vmem:[#allocation50_spill] sm:$0xff] %v6198_v37  ;;  %v6204_v23 = vld [vmem:[%s7161_s30 + $0xb0] sm:$0xff]  ;;  %v6246_v62 = vld [vmem:[%s7161_s30 + $0x18] sm:$0xff] }
 0x6ef   :  { %1897 = vmatprep.subr.mxu0 %v1862_v30  ;;  %7400 = vst [vmem:[#allocation45_spill] sm:$0xff] %v6204_v23  ;;  %v6216_v54 = vld [vmem:[%s7161_s30 + $0xa8] sm:$0xff]  ;;  %v6228_v30 = vld [vmem:[%s7161_s30 + $0xa0] sm:$0xff]  ;;  %7407 = vst [vmem:[#allocation58_spill] sm:$0xff] %v6246_v62 }
 0x6f0   :  { %1898 = vmatpush1.msra.mxu0 %v1861_v31  ;;  %v6108_v31 = vld [vmem:[%s7161_s30 + $0xf0] sm:$0xff]  ;;  %7402 = vst [vmem:[#allocation47_spill] sm:$0xff] %v6216_v54  ;;  %v6222_v38 = vld [vmem:[%s7161_s30 + $0x28] sm:$0xff]  ;;  %7404 = vst [vmem:[#allocation49_spill] sm:$0xff] %v6228_v30 }
 0x6f1   :  { %1899 = vmatprep.subr.mxu0 %v1860_v48  ;;  %7403 = vst [vmem:[#allocation54_spill] sm:$0xff] %v6222_v38  ;;  %v6240_v48 = vld [vmem:[%s7161_s30 + $0x98] sm:$0xff]  ;;  %v6258_v15 = vld [vmem:[%s7161_s30 + $0x10] sm:$0xff] }
 0x6f2   :  { %1900 = vmatpush1.msra.mxu0 %v1859_v1  ;;  %7406 = vst [vmem:[#allocation51_spill] sm:$0xff] %v6240_v48  ;;  %v6252_v1 = vld [vmem:[%s7161_s30 + $0x90] sm:$0xff]  ;;  %7409 = vst [vmem:[#allocation60_spill] sm:$0xff] %v6258_v15 }
 0x6f3   :  { %1901 = vmatprep.subr.mxu0 %v1858_v10  ;;  %7408 = vst [vmem:[#allocation53_spill] sm:$0xff] %v6252_v1  ;;  %v6264_v10 = vld [vmem:[%s7161_s30 + $0x88] sm:$0xff] }
 0x6f4   :  { %1902 = vmatpush1.msra.mxu0 %v1857_v5  ;;  %7410 = vst [vmem:[#allocation55_spill] sm:$0xff] %v6264_v10  ;;  %v6270_v5 = vld [vmem:[%s7161_s30 + $0x8] sm:$0xff] }
 0x6f5   :  { %1903 = vmatprep.subr.mxu0 %v1856_v52  ;;  %7411 = vst [vmem:[#allocation57_spill] sm:$0xff] %v6270_v5  ;;  %v6276_v52 = vld [vmem:[%s7161_s30 + $0x80] sm:$0xff] }
 0x6f6   :  { %1904 = vmatpush1.msra.mxu0 %v1855_v33  ;;  %7412 = vst [vmem:[#allocation59_spill] sm:$0xff] %v6276_v52  ;;  %v6282_v33 = vld [vmem:[%s7161_s30] sm:$0xff] }
 0x6f7   :  { %3955 = vmatmul.mubr.msk.f32.vlgmr.msra.gmra.mxu0 %vm187_vm3, %v1863_v50  ;;  %4166 = vmatprep.subr.mxu0 %v6095_v0  ;;  %7413 = vst [vmem:[#allocation61_spill] sm:$0xff] %v6282_v33  ;;  %v6289_v50 = vld [vmem:[%s6929_s8 + $0x38] sm:$0xff] }
 0x6f8   :  { %4167 = vmatpush3.msra.mxu0 %v6101_v12  ;;  %2164 = vmatprep.mubr.f32.mxu0 %v7354_v25  ;;  %v6126_v25 = vld [vmem:[%s7161_s30 + $0x68] sm:$0xff]  ;;  %7414 = vst [vmem:[#allocation77_spill] sm:$0xff] %v6289_v50 }
 0x6f9   :  { %4168 = vmatprep.subr.mxu0 %v6108_v31 }
 0x6fa   :  { %4169 = vmatpush3.msra.mxu0 %v6114_v7 }
 0x6fb   :  { %4170 = vmatprep.subr.mxu0 %v6120_v13 }
 0x6fc   :  { %4171 = vmatpush3.msra.mxu0 %v6126_v25 }
 0x6fd   :  { %4172 = vmatprep.subr.mxu0 %v6132_v14 }
 0x6fe   :  { %4173 = vmatpush3.msra.mxu0 %v6138_v29 }
 0x6ff   :  { %4174 = vmatprep.subr.mxu0 %v6144_v17 }
 0x700   :  { %4175 = vmatpush3.msra.mxu0 %v6150_v22  ;;  %v4561_v22 = vld [vmem:[%s6931_s10 + $0x20] sm:$0xff] }
 0x701   :  { %4176 = vmatprep.subr.mxu0 %v6156_v60 }
 0x702   :  { %4177 = vmatpush3.msra.mxu0 %v6162_v58 }
 0x703   :  { %4178 = vmatprep.subr.mxu0 %v6168_v9 }
 0x704   :  { %4179 = vmatpush3.msra.mxu0 %v6174_v40 }
 0x705   :  { %4180 = vmatprep.subr.mxu0 %v6180_v42  ;;  %v4559_v42 = vld [vmem:[%s6932_s11 + $0x20] sm:$0xff] }
 0x706   :  { %4181 = vmatpush3.msra.mxu0 %v6186_v39  ;;  %v4558_v39 = vld [vmem:[%s6931_s10 + $0x18] sm:$0xff] }
 0x707   :  { %4182 = vmatprep.subr.mxu0 %v6192_v3 }
 0x708   :  { %4183 = vmatpush3.msra.mxu0 %v6198_v37 }
 0x709   :  { %4184 = vmatprep.subr.mxu0 %v6204_v23 }
 0x70a   :  { %4185 = vmatpush3.msra.mxu0 %v6210_v46  ;;  %v4552_v46 = vld [vmem:[%s6932_s11 + $0x8] sm:$0xff] }
 0x70b   :  { %4186 = vmatprep.subr.mxu0 %v6216_v54 }
 0x70c   :  { %4187 = vmatpush3.msra.mxu0 %v6222_v38 }
 0x70d   :  { %4188 = vmatprep.subr.mxu0 %v6228_v30  ;;  %v4163_v30 = vpop.f32.mrf.mxu1 }
 0x70e   :  { %4189 = vmatpush3.msra.mxu0 %v6234_v57 }
 0x70f   :  { %4190 = vmatprep.subr.mxu0 %v6240_v48  ;;  %v4164_v38 = vpop.f32.mrf.mxu1 }
 0x710   :  { %4191 = vmatpush3.msra.mxu0 %v6246_v62  ;;  %v6357_v54 = vadd.f32 %v4164_v38, %v4163_v30  ;;  %v3667_v38 = vld [vmem:[%s6938_s22 + $0x10] sm:$0xff] }
 0x711   :  { %4192 = vmatprep.subr.mxu0 %v6252_v1 }
 0x712   :  { %4193 = vmatpush3.msra.mxu0 %v6258_v15  ;;  %v2219_v30 = vrot.slane %v6357_v54, %v7338_v51  ;;  %v2267_v34 = vrot.slane %v6357_v54, %v7357_v11 }
 0x713   :  { %4194 = vmatprep.subr.mxu0 %v6264_v10 }
 0x714   :  { %4195 = vmatpush3.msra.mxu0 %v6270_v5  ;;  %v6320_v5 = vld [vmem:[%s6929_s8 + $0x10] sm:$0xff] }
 0x715   :  { %4196 = vmatprep.subr.mxu0 %v6276_v52  ;;  %v6295_v52 = vld [vmem:[%s6929_s8 + $0x30] sm:$0xff]  ;;  %7419 = vst [vmem:[#allocation70_spill] sm:$0xff] %v6320_v5 }
 0x716   :  { %4197 = vmatpush3.msra.mxu0 %v6282_v33  ;;  %7415 = vst [vmem:[#allocation68_spill] sm:$0xff] %v6295_v52  ;;  %v6302_v33 = vld [vmem:[%s6929_s8 + $0x28] sm:$0xff] }
 0x717   :  { %2165 = vmatmul.mubr.f32.vlgmr.msra.gmra.mxu0 %v7375_v28  ;;  %2397 = vmatprep.subr.mxu0 %v6289_v50  ;;  %7416 = vst [vmem:[#allocation78_spill] sm:$0xff] %v6302_v33  ;;  %v6308_v50 = vld [vmem:[%s6929_s8 + $0x20] sm:$0xff] }
 0x718   :  { %2398 = vmatpush1.msra.mxu0 %v6295_v52  ;;  %2437 = vmatprep.mubr.f32.mxu0 %v7237_v6  ;;  %7417 = vst [vmem:[#allocation69_spill] sm:$0xff] %v6308_v50  ;;  %v6314_v52 = vld [vmem:[%s6929_s8 + $0x18] sm:$0xff] }
 0x719   :  { %2399 = vmatprep.subr.mxu0 %v6302_v33  ;;  %7418 = vst [vmem:[#allocation79_spill] sm:$0xff] %v6314_v52  ;;  %v6326_v33 = vld [vmem:[%s6929_s8 + $0x8] sm:$0xff] }
 0x71a   :  { %2400 = vmatpush1.msra.mxu0 %v6308_v50  ;;  %7420 = vst [vmem:[#allocation80_spill] sm:$0xff] %v6326_v33  ;;  %v6332_v50 = vld [vmem:[%s6929_s8] sm:$0xff] }
 0x71b   :  { %2401 = vmatprep.subr.mxu0 %v6314_v52  ;;  %7421 = vst [vmem:[#allocation71_spill] sm:$0xff] %v6332_v50  ;;  %v6339_v52 = vpop.permute.xlu1 %1867 }
 0x71c   :  { %2402 = vmatpush1.msra.mxu0 %v6320_v5  ;;  %v1944_v5 = vld [vmem:[%s6937_s19] sm:$0x3]  ;;  %7422 = vst [vmem:[#allocation81_spill] sm:$0xff] %v6339_v52 }
 0x71d   :  { %2403 = vmatprep.subr.mxu0 %v6326_v33  ;;  %v6343_v33 = vrot.slane %v1944_v5, %v7335_v27  ;;  %v6346_v1 = vrot.slane %v1944_v5, %v7336_v36  ;;  %v3670_v5 = vld [vmem:[%s6938_s22 + $0x28] sm:$0xff] }
 0x71e   :  { %2404 = vmatpush1.msra.mxu0 %v6332_v50 }
 0x71f   :  { %4236 = vmatprep.subr.mxu0 %v6095_v0  ;;  %7423 = vst [vmem:[#allocation72_spill] sm:$0xff] %v6343_v33  ;;  %7424 = vst [vmem:[#allocation82_spill] sm:$0xff] %v6346_v1 }
 0x7b7   :  { %v1939_v10 = vpop.f32.mrf.mxu0 }
 0x7b8   :  { %v1940_v15 = vadd.f32 %v1939_v10, %v6339_v52  ;;  %v3672_v10 = vld [vmem:[%s6938_s22 + $0x38] sm:$0xff] }
 0x7b9   :  { %v1941_v62 = vpop.f32.mrf.mxu0 }
 0x7ba   :  { %v1942_v50 = vadd.f32 %v1941_v62, %v6339_v52  ;;  %v1956_v0 = vmul.f32 %v6343_v33, %v1940_v15  ;;  %v3669_v62 = vld [vmem:[%s6938_s22 + $0x20] sm:$0xff]  ;;  %v2173_v15 = vrot.slane %v6357_v54, %v7335_v27 }
 0x7bb   :  { %v4551_v52 = vld [vmem:[%s6932_s11] sm:$0xff] }
 0x7bc   :  { %v1957_v48 = vmul.f32 %v6346_v1, %v1942_v50  ;;  %v2187_v50 = vrot.slane %v6357_v54, %v7336_v36  ;;  %v2181_v24 = vmul.f32 %v4551_v52, %v2173_v15 }
 0x7be   :  { %v1958_v57 = vadd.f32 %v1957_v48, %v1956_v0  ;;  %v2203_v0 = vrot.slane %v6357_v54, %v7337_v45  ;;  %v2195_v44 = vmul.f32 %v4552_v46, %v2187_v50  ;;  %v2188_v17 = vmul.f32 %v4555_v47, %v2187_v50 }
 0x7c0   :  { %1959 = vadd.xlane.f32.xlu1 %v1958_v57 }
 0x7d1   :  { %3710 = vperm.xlu1 %4403, %v3672_v10  }
 0x7d5   :  { %3700 = vperm.xlu1 %4403, %v3670_v5   ;;  %v6375_v5 = vrot.slane %v6357_v54, %v7346_v35 }
 0x7d7   :  { %v4198_v48 = vpop.f32.mrf.mxu0  ;;  %v2243_v19 = vmul.f32 %v4559_v42, %v6375_v5 }
 0x7d9   :  { %v4199_v57 = vpop.f32.mrf.mxu0  ;;  %3695 = vperm.xlu1 %4403, %v3669_v62   ;;  %v6379_v62 = vrot.slane %v6357_v54, %v7351_v56 }
 0x7da   :  { %v4200_v10 = vadd.f32 %v4199_v57, %v4198_v48 }
 0x7db   :  { %v2259_v9 = vmul.f32 %v4560_v2, %v6379_v62 }
 0x7dc   :  { %v2178_v1 = vrot.slane %v4200_v10, %v7335_v27  ;;  %v2192_v33 = vrot.slane %v4200_v10, %v7336_v36  ;;  %v2208_v48 = vrot.slane %v4200_v10, %v7337_v45  ;;  %v2224_v57 = vrot.slane %v4200_v10, %v7338_v51  ;;  %v4553_v27 = vld [vmem:[%s6932_s11 + $0x10] sm:$0xff]  ;;  %v4554_v51 = vld [vmem:[%s6931_s10] sm:$0xff] }
 0x7dd   :  { %3685 = vperm.xlu1 %4403, %v3667_v38   ;;  %v2211_v36 = vmul.f32 %v4553_v27, %v2203_v0  ;;  %v2240_v45 = vrot.slane %v4200_v10, %v7346_v35  ;;  %v3665_v38 = vld [vmem:[%s6938_s22] sm:$0xff]  ;;  %v4557_v35 = vld [vmem:[%s6932_s11 + $0x18] sm:$0xff]  ;;  %v2256_v40 = vrot.slane %v4200_v10, %v7351_v56  ;;  %v2174_v60 = vmul.f32 %v4554_v51, %v2173_v15 }
 0x7de   :  { %v2182_v23 = vmul.f32 %v4554_v51, %v2178_v1  ;;  %v2196_v37 = vmul.f32 %v4555_v47, %v2192_v33  ;;  %v2212_v3 = vmul.f32 %v4556_v18, %v2208_v48  ;;  %v2227_v16 = vmul.f32 %v4557_v35, %v2219_v30 }
 0x7df   :  { %v2228_v63 = vmul.f32 %v4558_v39, %v2224_v57  ;;  %v2244_v53 = vmul.f32 %v4561_v22, %v2240_v45  ;;  %v2272_v56 = vrot.slane %v4200_v10, %v7357_v11  ;;  %v2179_v29 = vmul.f32 %v4551_v52, %v2178_v1 }
 0x7e0   :  { %v2183_v61 = vadd.f32 %v2182_v23, %v2181_v24  ;;  %v2197_v58 = vadd.f32 %v2196_v37, %v2195_v44  ;;  %v2213_v55 = vadd.f32 %v2212_v3, %v2211_v36  ;;  %v2193_v59 = vmul.f32 %v4552_v46, %v2192_v33  ;;  %v4562_v44 = vld [vmem:[%s6931_s10 + $0x28] sm:$0xff] }
 0x7e1   :  { %3675 = vperm.xlu1 %4403, %v3665_v38   ;;  %v2209_v14 = vmul.f32 %v4553_v27, %v2208_v48  ;;  %v2229_v24 = vadd.f32 %v2228_v63, %v2227_v16  ;;  %v2260_v51 = vmul.f32 %v4562_v44, %v2256_v40  ;;  %v2288_v36 = vrot.slane %v4200_v10, %v7362_v32 }
 0x7e2   :  { %v2199_v4 = vadd.f32 %v2197_v58, %v2183_v61  ;;  %v2204_v3 = vmul.f32 %v4556_v18, %v2203_v0  ;;  %v2180_v23 = vsub.f32 %v2174_v60, %v2179_v29  ;;  %v2194_v15 = vsub.f32 %v2188_v17, %v2193_v59  ;;  %v4563_v61 = vld [vmem:[%s6931_s10 + $0x30] sm:$0xff] }
 0x7e3   :  { %v2225_v38 = vmul.f32 %v4557_v35, %v2224_v57  ;;  %v2245_v26 = vadd.f32 %v2244_v53, %v2243_v19  ;;  %v2276_v47 = vmul.f32 %v4563_v61, %v2272_v56  ;;  %v2283_v27 = vrot.slane %v6357_v54, %v7362_v32  ;;  %v4564_v59 = vld [vmem:[%s6932_s11 + $0x30] sm:$0xff] }
 0x7e4   :  { %v2215_v37 = vadd.f32 %v2213_v55, %v2199_v4  ;;  %v2220_v63 = vmul.f32 %v4558_v39, %v2219_v30  ;;  %v2198_v58 = vadd.f32 %v2194_v15, %v2180_v23  ;;  %v2210_v46 = vsub.f32 %v2204_v3, %v2209_v14  ;;  %v4565_v4 = vld [vmem:[%s6931_s10 + $0x38] sm:$0xff]  ;;  %v7441_v3 = vld [vmem:[#allocation7_spill] sm:$0xff]  ;;  %v7443_v23 = vld [vmem:[#allocation14_spill] sm:$0xff] }
 0x7e5   :  { %v2241_v1 = vmul.f32 %v4559_v42, %v2240_v45  ;;  %v2261_v52 = vadd.f32 %v2260_v51, %v2259_v9  ;;  %v2275_v35 = vmul.f32 %v4564_v59, %v2267_v34  ;;  %v2292_v53 = vmul.f32 %v4565_v4, %v2288_v36  ;;  %v4566_v45 = vld [vmem:[%s6932_s11 + $0x38] sm:$0xff]  ;;  %v7439_v51 = vld [vmem:[#allocation12_spill] sm:$0xff] }
 0x7e6   :  { %v2231_v16 = vadd.f32 %v2229_v24, %v2215_v37  ;;  %v2236_v55 = vmul.f32 %v4561_v22, %v6375_v5  ;;  %v2214_v18 = vadd.f32 %v2210_v46, %v2198_v58  ;;  %v2226_v29 = vsub.f32 %v2220_v63, %v2225_v38  ;;  %v7442_v37 = vld [vmem:[#allocation41_spill] sm:$0xff]  ;;  %v7444_v15 = vld [vmem:[#allocation48_spill] sm:$0xff]  ;;  %v7449_v63 = vld [vmem:[#allocation11_spill] sm:$0xff] }
 0x7e7   :  { %v2257_v17 = vmul.f32 %v4560_v2, %v2256_v40  ;;  %v2277_v60 = vadd.f32 %v2276_v47, %v2275_v35  ;;  %v2291_v14 = vmul.f32 %v4566_v45, %v2283_v27  ;;  %v2252_v9 = vmul.f32 %v4562_v44, %v6379_v62  ;;  %v7438_v44 = vld [vmem:[#allocation39_spill] sm:$0xff]  ;;  %v7445_v38 = vld [vmem:[#allocation9_spill] sm:$0xff]  ;;  %v7447_v47 = vld [vmem:[#allocation16_spill] sm:$0xff] }
 0x7e8   :  { %v2247_v19 = vadd.f32 %v2245_v26, %v2231_v16  ;;  %v2230_v39 = vadd.f32 %v2226_v29, %v2214_v18  ;;  %v2242_v54 = vsub.f32 %v2236_v55, %v2241_v1  ;;  %v2273_v33 = vmul.f32 %v4564_v59, %v2272_v56  ;;  %v7427_v56 = vld [vmem:[#allocation6_spill] sm:$0xff]  ;;  %v7450_v16 = vld [vmem:[#allocation45_spill] sm:$0xff]  ;;  %v7452_v46 = vld [vmem:[#allocation52_spill] sm:$0xff] }
 0x7e9   :  { %v2293_v50 = vadd.f32 %v2292_v53, %v2291_v14  ;;  %v2268_v0 = vmul.f32 %v4563_v61, %v2267_v34  ;;  %v2258_v26 = vsub.f32 %v2252_v9, %v2257_v17  ;;  %v2289_v30 = vmul.f32 %v4566_v45, %v2288_v36  ;;  %v4567_v34 = vld [vmem:[%s6933_s12] sm:$0xff]  ;;  %v7446_v61 = vld [vmem:[#allocation43_spill] sm:$0xff]  ;;  %v7453_v1 = vld [vmem:[#allocation13_spill] sm:$0xff] }
 0x7ea   :  { %v2263_v42 = vadd.f32 %v2261_v52, %v2247_v19  ;;  %v2246_v22 = vadd.f32 %v2242_v54, %v2230_v39  ;;  %v2284_v48 = vmul.f32 %v4565_v4, %v2283_v27  ;;  %v7440_v36 = vld [vmem:[#allocation46_spill] sm:$0xff]  ;;  %v7454_v52 = vld [vmem:[#allocation47_spill] sm:$0xff]  ;;  %v7455_v59 = vld [vmem:[#allocation20_spill] sm:$0xff] }
 0x7eb   :  { %v2274_v40 = vsub.f32 %v2268_v0, %v2273_v33  ;;  %v7448_v27 = vld [vmem:[#allocation50_spill] sm:$0xff]  ;;  %v7457_v4 = vld [vmem:[#allocation15_spill] sm:$0xff]  ;;  %v7458_v53 = vld [vmem:[#allocation49_spill] sm:$0xff] }
 0x7ec   :  { %v2279_v10 = vadd.f32 %v2277_v60, %v2263_v42  ;;  %v2262_v2 = vadd.f32 %v2258_v26, %v2246_v22  ;;  %v2290_v24 = vsub.f32 %v2284_v48, %v2289_v30  ;;  %v7451_v58 = vld [vmem:[#allocation18_spill] sm:$0xff]  ;;  %v7460_v19 = vld [vmem:[#allocation56_spill] sm:$0xff]  ;;  %v7461_v18 = vld [vmem:[#allocation17_spill] sm:$0xff] }
 0x7ed   :  { %v7456_v35 = vld [vmem:[#allocation54_spill] sm:$0xff]  ;;  %v7462_v29 = vld [vmem:[#allocation51_spill] sm:$0xff]  ;;  %v7463_v17 = vld [vmem:[#allocation24_spill] sm:$0xff] }
 0x7ee   :  { %v2295_v5 = vadd.f32 %v2293_v50, %v2279_v10  ;;  %v2278_v57 = vadd.f32 %v2274_v40, %v2262_v2  ;;  %v7459_v55 = vld [vmem:[#allocation22_spill] sm:$0xff]  ;;  %v7465_v45 = vld [vmem:[#allocation19_spill] sm:$0xff]  ;;  %v7466_v14 = vld [vmem:[#allocation53_spill] sm:$0xff] }
 0x7ef   :  { %v7464_v60 = vld [vmem:[#allocation58_spill] sm:$0xff]  ;;  %v7468_v42 = vld [vmem:[#allocation60_spill] sm:$0xff]  ;;  %v7469_v39 = vld [vmem:[#allocation21_spill] sm:$0xff] }
 0x7f0   :  { %3956 = vmatmul.mubr.msk.f32.vlgmr.msra.gmra.mxu1 %vm187_vm3, %v2295_v5  ;;  %v2294_v62 = vadd.f32 %v2290_v24, %v2278_v57  ;;  %v7467_v9 = vld [vmem:[#allocation26_spill] sm:$0xff]  ;;  %v7470_v54 = vld [vmem:[#allocation55_spill] sm:$0xff]  ;;  %v7471_v33 = vld [vmem:[#allocation28_spill] sm:$0xff] }
 0x7f1   :  { %2475 = vmatpush1.msra.mxu1 %v7375_v28  ;;  %2508 = vmatprep.mubr.f32.mxu1 %v7237_v6  ;;  %v7429_v28 = vld [vmem:[#allocation2_spill] sm:$0xff]  ;;  %v7472_v50 = vld [vmem:[#allocation57_spill] sm:$0xff]  ;;  %v7473_v0 = vld [vmem:[#allocation23_spill] sm:$0xff] }
 0x7f2   :  { %4201 = vmatprep.subr.mxu1 %v5722_v49  ;;  %3957 = vmatmul.mubr.msk.f32.vlgmr.msra.gmra.mxu0 %vm187_vm3, %v2294_v62  ;;  %v7425_v49 = vld [vmem:[#allocation4_spill] sm:$0xff]  ;;  %v7474_v10 = vld [vmem:[#allocation59_spill] sm:$0xff]  ;;  %v7475_v22 = vld [vmem:[#allocation30_spill] sm:$0xff] }
 0x7f3   :  { %4237 = vmatpush3.msra.mxu0 %v6101_v12  ;;  %v7431_v12 = vld [vmem:[#allocation8_spill] sm:$0xff]  ;;  %v7476_v26 = vld [vmem:[#allocation61_spill] sm:$0xff]  ;;  %v7479_v62 = vld [vmem:[#allocation62_spill] sm:$0xff] }
 0x7f4   :  { %3958 = vmatmul.mubr.msk.f32.vlgmr.msra.gmra.mxu1 %vm884_vm4, %v4567_v34  ;;  %4238 = vmatprep.subr.mxu0 %v6108_v31  ;;  %v7433_v31 = vld [vmem:[#allocation3_spill] sm:$0xff]  ;;  %v7477_v30 = vld [vmem:[#allocation25_spill] sm:$0xff] }
 0x7f5   :  { %4202 = vmatpush3.msra.mxu1 %v5730_v41  ;;  %4239 = vmatpush3.msra.mxu0 %v6114_v7  ;;  %v7426_v41 = vld [vmem:[#allocation33_spill] sm:$0xff]  ;;  %v7435_v7 = vld [vmem:[#allocation10_spill] sm:$0xff] }
 0x7f6   :  { %4203 = vmatprep.subr.mxu1 %v5743_v43  ;;  %4240 = vmatprep.subr.mxu0 %v6120_v13  ;;  %v7428_v43 = vld [vmem:[#allocation40_spill] sm:$0xff]  ;;  %v7478_v5 = vld [vmem:[#allocation77_spill] sm:$0xff] }
 0x7f7   :  { %4204 = vmatpush3.msra.mxu1 %v5751_v21  ;;  %4241 = vmatpush3.msra.mxu0 %v6126_v25  ;;  %v7430_v21 = vld [vmem:[#allocation35_spill] sm:$0xff]  ;;  %v7436_v13 = vld [vmem:[#allocation44_spill] sm:$0xff]  ;;  %v7437_v25 = vld [vmem:[#allocation5_spill] sm:$0xff] }
 0x7f8   :  { %4205 = vmatprep.subr.mxu1 %v5761_v8  ;;  %4242 = vmatprep.subr.mxu0 %v7426_v41  ;;  %v7432_v8 = vld [vmem:[#allocation42_spill] sm:$0xff] }
 0x7f9   :  { %4206 = vmatpush3.msra.mxu1 %v5772_v20  ;;  %4243 = vmatpush3.msra.mxu0 %v7428_v43  ;;  %v7434_v20 = vld [vmem:[#allocation37_spill] sm:$0xff] }
 0x7fa   :  { %4207 = vmatprep.subr.mxu1 %v7425_v49  ;;  %4244 = vmatprep.subr.mxu0 %v7430_v21 }
 0x7fb   :  { %4208 = vmatpush3.msra.mxu1 %v7427_v56  ;;  %4245 = vmatpush3.msra.mxu0 %v7432_v8 }
 0x7fc   :  { %4209 = vmatprep.subr.mxu1 %v7429_v28  ;;  %4246 = vmatprep.subr.mxu0 %v7434_v20 }
 0x7fd   :  { %4210 = vmatpush3.msra.mxu1 %v7431_v12  ;;  %4247 = vmatpush3.msra.mxu0 %v7436_v13 }
 0x7fe   :  { %4211 = vmatprep.subr.mxu1 %v7433_v31  ;;  %4248 = vmatprep.subr.mxu0 %v7438_v44 }
 0x7ff   :  { %4212 = vmatpush3.msra.mxu1 %v7435_v7  ;;  %4249 = vmatpush3.msra.mxu0 %v7440_v36 }
 0x800   :  { %4213 = vmatprep.subr.mxu1 %v7437_v25  ;;  %4250 = vmatprep.subr.mxu0 %v7442_v37 }
 0x801   :  { %4214 = vmatpush3.msra.mxu1 %v7439_v51  ;;  %4251 = vmatpush3.msra.mxu0 %v7444_v15 }
 0x802   :  { %4215 = vmatprep.subr.mxu1 %v7441_v3  ;;  %4252 = vmatprep.subr.mxu0 %v7446_v61 }
 0x803   :  { %4216 = vmatpush3.msra.mxu1 %v7443_v23  ;;  %4253 = vmatpush3.msra.mxu0 %v7448_v27 }
 0x804   :  { %4217 = vmatprep.subr.mxu1 %v7445_v38  ;;  %4254 = vmatprep.subr.mxu0 %v7450_v16  ;;  %v7481_v16 = vld [vmem:[#allocation68_spill] sm:$0xff] }
 0x805   :  { %4218 = vmatpush3.msra.mxu1 %v7447_v47  ;;  %4255 = vmatpush3.msra.mxu0 %v7452_v46  ;;  %v7483_v46 = vld [vmem:[#allocation78_spill] sm:$0xff] }
 0x806   :  { %4219 = vmatprep.subr.mxu1 %v7449_v63  ;;  %4256 = vmatprep.subr.mxu0 %v7454_v52  ;;  %v7480_v63 = vld [vmem:[#allocation32_spill] sm:$0xff]  ;;  %v7485_v52 = vld [vmem:[#allocation69_spill] sm:$0xff] }
 0x807   :  { %4220 = vmatpush3.msra.mxu1 %v7451_v58  ;;  %4257 = vmatpush3.msra.mxu0 %v7456_v35  ;;  %v7482_v58 = vld [vmem:[#allocation27_spill] sm:$0xff] }
 0x808   :  { %4221 = vmatprep.subr.mxu1 %v7453_v1  ;;  %4258 = vmatprep.subr.mxu0 %v7458_v53  ;;  %v7484_v1 = vld [vmem:[#allocation34_spill] sm:$0xff]  ;;  %v7487_v35 = vld [vmem:[#allocation79_spill] sm:$0xff] }
 0x809   :  { %4222 = vmatpush3.msra.mxu1 %v7455_v59  ;;  %4259 = vmatpush3.msra.mxu0 %v7460_v19  ;;  %v7486_v59 = vld [vmem:[#allocation29_spill] sm:$0xff]  ;;  %v7489_v53 = vld [vmem:[#allocation70_spill] sm:$0xff]  ;;  %v7491_v19 = vld [vmem:[#allocation80_spill] sm:$0xff] }
 0x80a   :  { %4223 = vmatprep.subr.mxu1 %v7457_v4  ;;  %4260 = vmatprep.subr.mxu0 %v7462_v29  ;;  %v7488_v4 = vld [vmem:[#allocation36_spill] sm:$0xff]  ;;  %v7493_v29 = vld [vmem:[#allocation71_spill] sm:$0xff] }
 0x80b   :  { %4224 = vmatpush3.msra.mxu1 %v7459_v55  ;;  %4261 = vmatpush3.msra.mxu0 %v7464_v60  ;;  %v7490_v55 = vld [vmem:[#allocation31_spill] sm:$0xff] }
 0x80c   :  { %4225 = vmatprep.subr.mxu1 %v7461_v18  ;;  %4262 = vmatprep.subr.mxu0 %v7466_v14  ;;  %v7492_v18 = vld [vmem:[#allocation38_spill] sm:$0xff] }
 0x80d   :  { %4226 = vmatpush3.msra.mxu1 %v7463_v17  ;;  %4263 = vmatpush3.msra.mxu0 %v7468_v42 }
 0x80e   :  { %4227 = vmatprep.subr.mxu1 %v7465_v45  ;;  %4264 = vmatprep.subr.mxu0 %v7470_v54 }
 0x80f   :  { %4228 = vmatpush3.msra.mxu1 %v7467_v9  ;;  %4265 = vmatpush3.msra.mxu0 %v7472_v50  ;;  %v7495_v50 = vld [vmem:[#allocation86_spill] sm:$0xff] }
 0x810   :  { %4229 = vmatprep.subr.mxu1 %v7469_v39  ;;  %4266 = vmatprep.subr.mxu0 %v7474_v10  ;;  %v7494_v39 = vld [vmem:[#allocation85_spill] sm:$0xff] }
 0x811   :  { %4230 = vmatpush3.msra.mxu1 %v7471_v33  ;;  %4267 = vmatpush3.msra.mxu0 %v7476_v26 }
 0x812   :  { %4231 = vmatprep.subr.mxu1 %v7473_v0  ;;  %2902 = vmatprep.subr.mxu0 %v7478_v5  ;;  %v7497_v5 = vld [vmem:[#allocation88_spill] sm:$0xff] }
 0x813   :  { %4232 = vmatpush3.msra.mxu1 %v7475_v22  ;;  %v7496_v22 = vld [vmem:[#allocation87_spill] sm:$0xff] }
 0x814   :  { %2828 = vmatprep.subr.mxu1 %v7477_v30 }
 0x8b0   :  { %v2365_v2 = vpop.f32.mrf.mxu1 }
 0x8b2   :  { %v2367_v40 = vpop.f32.mrf.mxu1  ;;  %v2439_v48 = vpop.f32.mrf.mxu0 }
 0x8b3   :  { %v2440_v24 = vadd.f32 %v2439_v48, %v2365_v2  ;;  %v4568_v48 = vld [vmem:[%s6932_s11 + $0x40] sm:$0xff] }
 0x8b4   :  { %v2510_v57 = vpop.f32.mrf.mxu1  ;;  %v2441_v49 = vpop.f32.mrf.mxu0 }
 0x8b5   :  { %v2511_v34 = vadd.f32 %v2510_v57, %v7479_v62  ;;  %v2442_v56 = vadd.f32 %v2441_v49, %v2367_v40 }
 0x8b6   :  { %v2512_v41 = vpop.f32.mrf.mxu1 }
 0x8b7   :  { %v2515_v43 = vadd.f32 %v2511_v34, %v2440_v24  ;;  %v2513_v28 = vadd.f32 %v2512_v41, %v7479_v62  ;;  %v4569_v24 = vld [vmem:[%s6931_s10 + $0x40] sm:$0xff]  ;;  %v4570_v34 = vld [vmem:[%s6932_s11 + $0x48] sm:$0xff] }
 0x8b8   :  { %v4571_v41 = vld [vmem:[%s6931_s10 + $0x48] sm:$0xff] }
 0x8b9   :  { %v2517_v21 = vmul.f32 %v2515_v43, %v2515_v43  ;;  %v2516_v12 = vadd.f32 %v2513_v28, %v2442_v56 }
 0x8bb   :  { %v2519_v8 = vmul.f32 %v2517_v21, %v2515_v43  ;;  %v2518_v31 = vmul.f32 %v2516_v12, %v2516_v12  ;;  %v4573_v21 = vld [vmem:[%s6931_s10 + $0x50] sm:$0xff] }
 0x8bd   :  { %v2521_v20 = vmul.f32 0.044715, %v2519_v8  ;;  %v2520_v7 = vmul.f32 %v2518_v31, %v2516_v12  ;;  %v4574_v8 = vld [vmem:[%s6932_s11 + $0x58] sm:$0xff] }
 0x8bf   :  { %v2523_v13 = vadd.f32 %v2521_v20, %v2515_v43  ;;  %v2522_v25 = vmul.f32 0.044715, %v2520_v7  ;;  %v4575_v20 = vld [vmem:[%s6931_s10 + $0x58] sm:$0xff] }
 0x8c1   :  { %v2525_v44 = vmul.f32 0.7978846, %v2523_v13  ;;  %v2524_v51 = vadd.f32 %v2522_v25, %v2516_v12 }
 0x8c3   :  { %4431 = vtanh.f32 %v2525_v44  ;;  %v2526_v36 = vmul.f32 0.7978846, %v2524_v51  ;;  %v7498_v44 = vld [vmem:[#allocation89_spill] sm:$0xff] }
 0x8c5   :  { %4433 = vtanh.f32 %v2526_v36 }
 0x8d0   :  { %v4432_v3 = vpop.eup %4431 }
 0x8d1   :  { %v2529_v37 = vadd.f32 1.0, %v4432_v3 }
 0x8d2   :  { %v4434_v23 = vpop.eup %4433 }
 0x8d3   :  { %v2530_v15 = vadd.f32 1.0, %v4434_v23  ;;  %v2531_v38 = vmul.f32 0.5, %v2529_v37  ;;  %v7499_v37 = vld [vmem:[#allocation90_spill] sm:$0xff] }
 0x8d5   :  { %v2532_v61 = vmul.f32 0.5, %v2530_v15  ;;  %v6523_v27 = vmul.f32 %v2531_v38, %v2515_v43  ;;  %v4572_v43 = vld [vmem:[%s6932_s11 + $0x50] sm:$0xff] }
 0x8d7   :  { %v2534_v47 = vmul.f32 %v2532_v61, %v2516_v12  ;;  %v4576_v61 = vld [vmem:[%s6932_s11 + $0x60] sm:$0xff] }
 0x8d9   :  { %2599 = vmatprep.mubr.f32.mxu1 %v2534_v47  ;;  %2669 = vmatprep.mubr.f32.mxu0 %v2534_v47 }
 0x8da   :  { %2600 = vmatmul.mubr.f32.vlgmr.msra.gmra.mxu1 %v6523_v27  ;;  %2670 = vmatmul.mubr.f32.vlgmr.msra.gmra.mxu0 %v6523_v27 }
 0x8db   :  { %2829 = vmatpush1.msra.mxu1 %v7480_v63  ;;  %2903 = vmatpush1.msra.mxu0 %v7481_v16  ;;  %v4577_v63 = vld [vmem:[%s6931_s10 + $0x60] sm:$0xff] }
 0x8dc   :  { %2830 = vmatprep.subr.mxu1 %v7482_v58  ;;  %2904 = vmatprep.subr.mxu0 %v7483_v46  ;;  %v4578_v46 = vld [vmem:[%s6932_s11 + $0x68] sm:$0xff] }
 0x8dd   :  { %2831 = vmatpush1.msra.mxu1 %v7484_v1  ;;  %2905 = vmatpush1.msra.mxu0 %v7485_v52  ;;  %v4579_v52 = vld [vmem:[%s6931_s10 + $0x68] sm:$0xff] }
 0x8de   :  { %2832 = vmatprep.subr.mxu1 %v7486_v59  ;;  %2906 = vmatprep.subr.mxu0 %v7487_v35 }
 0x8df   :  { %2833 = vmatpush1.msra.mxu1 %v7488_v4  ;;  %2907 = vmatpush1.msra.mxu0 %v7489_v53 }
 0x8e0   :  { %2834 = vmatprep.subr.mxu1 %v7490_v55  ;;  %2908 = vmatprep.subr.mxu0 %v7491_v19 }
 0x8e1   :  { %2835 = vmatpush1.msra.mxu1 %v7492_v18  ;;  %2868 = vmatprep.mubr.f32.mxu1 %v7237_v6 }
 0x8e2   :  { %2979 = vmatprep.subr.mxu1 %v2534_v47  ;;  %2909 = vmatpush1.msra.mxu0 %v7493_v29  ;;  %v4580_v29 = vld [vmem:[%s6932_s11 + $0x70] sm:$0xff] }
 0x8e3   :  { %2942 = vmatprep.mubr.f32.mxu0 %v7237_v6 }
 0x99a   :  { %v4233_v17 = vpop.f32.mrf.mxu1  ;;  %v4268_v60 = vpop.f32.mrf.mxu0 }
 0x99c   :  { %v4234_v45 = vpop.f32.mrf.mxu1  ;;  %v4269_v14 = vpop.f32.mrf.mxu0 }
 0x99d   :  { %v4235_v9 = vadd.f32 %v4234_v45, %v4233_v17  ;;  %v4270_v42 = vadd.f32 %v4269_v14, %v4268_v60  ;;  %v4581_v14 = vld [vmem:[%s6931_s10 + $0x70] sm:$0xff] }
 0x99f   :  { %v2678_v54 = vrot.slane %v4235_v9, %v7494_v39  ;;  %v2683_v33 = vrot.slane %v4270_v42, %v7494_v39  ;;  %v2692_v0 = vrot.slane %v4235_v9, %v7495_v50  ;;  %v2697_v10 = vrot.slane %v4270_v42, %v7495_v50 }
 0x9a0   :  { %v2708_v26 = vrot.slane %v4235_v9, %v7496_v22  ;;  %v2713_v30 = vrot.slane %v4270_v42, %v7496_v22  ;;  %v2724_v2 = vrot.slane %v4235_v9, %v7497_v5  ;;  %v2729_v40 = vrot.slane %v4270_v42, %v7497_v5 }
 0x9a1   :  { %v2686_v57 = vmul.f32 %v4568_v48, %v2678_v54  ;;  %v2687_v62 = vmul.f32 %v4569_v24, %v2683_v33  ;;  %v2700_v49 = vmul.f32 %v4570_v34, %v2692_v0  ;;  %v2701_v56 = vmul.f32 %v4571_v41, %v2697_v10 }
 0x9a2   :  { %v2716_v28 = vmul.f32 %v4572_v43, %v2708_v26  ;;  %v2717_v12 = vmul.f32 %v4573_v21, %v2713_v30  ;;  %v2732_v31 = vmul.f32 %v4574_v8, %v2724_v2  ;;  %v2733_v7 = vmul.f32 %v4575_v20, %v2729_v40 }
 0x9a3   :  { %v2688_v13 = vadd.f32 %v2687_v62, %v2686_v57  ;;  %v2702_v25 = vadd.f32 %v2701_v56, %v2700_v49  ;;  %v2740_v51 = vrot.slane %v4235_v9, %v7498_v44  ;;  %v2745_v36 = vrot.slane %v4270_v42, %v7498_v44 }
 0x9a4   :  { %v2718_v3 = vadd.f32 %v2717_v12, %v2716_v28  ;;  %v2756_v23 = vrot.slane %v4235_v9, %v7499_v37  ;;  %v2761_v15 = vrot.slane %v4270_v42, %v7499_v37  ;;  %v2772_v58 = vrot.slane %v4235_v9, %v7357_v11 }
 0x9a5   :  { %v2704_v38 = vadd.f32 %v2702_v25, %v2688_v13  ;;  %v2748_v47 = vmul.f32 %v4576_v61, %v2740_v51  ;;  %v2749_v16 = vmul.f32 %v4577_v63, %v2745_v36  ;;  %v2777_v35 = vrot.slane %v4270_v42, %v7357_v11 }
 0x9a6   :  { %v2764_v1 = vmul.f32 %v4578_v46, %v2756_v23  ;;  %v2765_v59 = vmul.f32 %v4579_v52, %v2761_v15  ;;  %v2734_v53 = vadd.f32 %v2733_v7, %v2732_v31  ;;  %v2788_v55 = vrot.slane %v4235_v9, %v7362_v32  ;;  %v4582_v31 = vld [vmem:[%s6932_s11 + $0x78] sm:$0xff] }
 0x9a7   :  { %v2720_v4 = vadd.f32 %v2718_v3, %v2704_v38  ;;  %v2793_v19 = vrot.slane %v4270_v42, %v7362_v32  ;;  %v2750_v18 = vadd.f32 %v2749_v16, %v2748_v47  ;;  %v2780_v17 = vmul.f32 %v4580_v29, %v2772_v58 }
 0x9a8   :  { %v2679_v60 = vmul.f32 %v4569_v24, %v2678_v54  ;;  %v2781_v57 = vmul.f32 %v4581_v14, %v2777_v35  ;;  %v2684_v62 = vmul.f32 %v4568_v48, %v2683_v33  ;;  %v2693_v49 = vmul.f32 %v4571_v41, %v2692_v0  ;;  %v4583_v54 = vld [vmem:[%s6931_s10 + $0x78] sm:$0xff] }
 0x9a9   :  { %v2736_v45 = vadd.f32 %v2734_v53, %v2720_v4  ;;  %v2766_v56 = vadd.f32 %v2765_v59, %v2764_v1  ;;  %v2698_v28 = vmul.f32 %v4570_v34, %v2697_v10  ;;  %v2709_v9 = vmul.f32 %v4573_v21, %v2708_v26 }
 0x9aa   :  { %v2714_v12 = vmul.f32 %v4572_v43, %v2713_v30  ;;  %v2796_v7 = vmul.f32 %v4582_v31, %v2788_v55  ;;  %v2797_v24 = vmul.f32 %v4583_v54, %v2793_v19  ;;  %v2685_v13 = vsub.f32 %v2679_v60, %v2684_v62 }
 0x9ab   :  { %v2752_v42 = vadd.f32 %v2750_v18, %v2736_v45  ;;  %v2699_v25 = vsub.f32 %v2693_v49, %v2698_v28  ;;  %v2725_v3 = vmul.f32 %v4575_v20, %v2724_v2  ;;  %v2730_v33 = vmul.f32 %v4574_v8, %v2729_v40 }
 0x9ac   :  { %v2782_v48 = vadd.f32 %v2781_v57, %v2780_v17  ;;  %v2715_v26 = vsub.f32 %v2709_v9, %v2714_v12  ;;  %v2741_v30 = vmul.f32 %v4577_v63, %v2740_v51  ;;  %v2746_v34 = vmul.f32 %v4576_v61, %v2745_v36 }
 0x9ad   :  { %v2768_v0 = vadd.f32 %v2766_v56, %v2752_v42  ;;  %v2703_v10 = vadd.f32 %v2699_v25, %v2685_v13  ;;  %v2798_v43 = vadd.f32 %v2797_v24, %v2796_v7  ;;  %v2757_v21 = vmul.f32 %v4579_v52, %v2756_v23  ;;  %v4584_v23 = vld [vmem:[%s6933_s12 + $0x8] sm:$0xff] }
 0x9ae   :  { %v2762_v38 = vmul.f32 %v4578_v46, %v2761_v15  ;;  %v2731_v16 = vsub.f32 %v2725_v3, %v2730_v33  ;;  %v2747_v4 = vsub.f32 %v2741_v30, %v2746_v34  ;;  %v2773_v53 = vmul.f32 %v4581_v14, %v2772_v58 }
 0x9af   :  { %v2784_v41 = vadd.f32 %v2782_v48, %v2768_v0  ;;  %v2719_v47 = vadd.f32 %v2715_v26, %v2703_v10  ;;  %v2778_v18 = vmul.f32 %v4580_v29, %v2777_v35  ;;  %v2789_v8 = vmul.f32 %v4583_v54, %v2788_v55  ;;  %v7500_v35 = vld [vmem:[#allocation64_spill] sm:$0xff] }
 0x9b0   :  { %v2763_v2 = vsub.f32 %v2757_v21, %v2762_v38  ;;  %v2794_v20 = vmul.f32 %v4582_v31, %v2793_v19 }
 0x9b1   :  { %v2800_v1 = vadd.f32 %v2798_v43, %v2784_v41  ;;  %v2735_v59 = vadd.f32 %v2731_v16, %v2719_v47  ;;  %v2779_v36 = vsub.f32 %v2773_v53, %v2778_v18  ;;  %v4585_v41 = vld [vmem:[%s6935_s15] sm:$0xff]  ;;  %v4589_v53 = vld [vmem:[%s6935_s15 + $0x8] sm:$0xff] }
 0x9b2   :  { %v2795_v61 = vsub.f32 %v2789_v8, %v2794_v20  ;;  %v4586_v43 = vld [vmem:[%s6934_s14] sm:$0xff]  ;;  %v4591_v8 = vld [vmem:[%s6934_s14 + $0x28] sm:$0xff] }
 0x9b3   :  { %3959 = vmatmul.mubr.msk.f32.vlgmr.msra.gmra.mxu1 %vm187_vm3, %v2800_v1  ;;  %v2751_v40 = vadd.f32 %v2747_v4, %v2735_v59  ;;  %v4588_v1 = vld [vmem:[%s6934_s14 + $0x18] sm:$0xff] }
 0x9b4   :  { %2980 = vmatpush1.msra.mxu1 %v6523_v27  ;;  %3013 = vmatprep.mubr.f32.mxu1 %v7237_v6 }
 0x9b5   :  { %v2767_v51 = vadd.f32 %v2763_v2, %v2751_v40 }
 0x9b7   :  { %3961 = vmatmul.mubr.msk.f32.vlgmr.msra.gmra.mxu1 %vm884_vm4, %v4584_v23  ;;  %v2783_v15 = vadd.f32 %v2779_v36, %v2767_v51  ;;  %v4592_v36 = vld [vmem:[%s6935_s15 + $0x10] sm:$0xff] }
 0x9b8   :  { %3376 = vmatprep.mubr.f32.mxu1 %v7237_v6 }
 0x9b9   :  { %v2799_v63 = vadd.f32 %v2795_v61, %v2783_v15 }
 0x9bb   :  { %3960 = vmatmul.mubr.msk.f32.vlgmr.msra.gmra.mxu0 %vm187_vm3, %v2799_v63  ;;  %v4594_v63 = vld [vmem:[%s6934_s14 + $0x38] sm:$0xff] }
 0x9bc   :  { %3215 = vmatprep.mubr.f32.mxu0 %v7237_v6 }
 0xa73   :  { %v2870_v27 = vpop.f32.mrf.mxu1 }
 0xa75   :  { %v2872_v58 = vpop.f32.mrf.mxu1 }
 0xa77   :  { %v3015_v46 = vpop.f32.mrf.mxu1 }
 0xa78   :  { %v3016_v55 = vadd.f32 %v3015_v46, %v7500_v35  ;;  %v4595_v46 = vld [vmem:[%s6935_s15 + $0x18] sm:$0xff] }
 0xa79   :  { %v3017_v52 = vpop.f32.mrf.mxu1 }
 0xa7a   :  { %v3018_v17 = vadd.f32 %v3017_v52, %v7500_v35 }
 0xa7b   :  { %v2944_v19 = vpop.f32.mrf.mxu0 }
 0xa7c   :  { %v2945_v29 = vadd.f32 %v2944_v19, %v2870_v27  ;;  %v4597_v19 = vld [vmem:[%s6934_s14 + $0x48] sm:$0xff] }
 0xa7d   :  { %v2946_v60 = vpop.f32.mrf.mxu0 }
 0xa7e   :  { %v2947_v45 = vadd.f32 %v2946_v60, %v2872_v58  ;;  %v3020_v14 = vadd.f32 %v3016_v55, %v2945_v29  ;;  %v4598_v60 = vld [vmem:[%s6934_s14 + $0x40] sm:$0xff] }
 0xa80   :  { %v3022_v57 = vmul.f32 %v3020_v14, %v3020_v14  ;;  %v3021_v62 = vadd.f32 %v3018_v17, %v2947_v45 }
 0xa82   :  { %v3024_v49 = vmul.f32 %v3022_v57, %v3020_v14  ;;  %v3023_v56 = vmul.f32 %v3021_v62, %v3021_v62 }
 0xa84   :  { %v3026_v28 = vmul.f32 0.044715, %v3024_v49  ;;  %v3025_v9 = vmul.f32 %v3023_v56, %v3021_v62  ;;  %v4600_v56 = vld [vmem:[%s6934_s14 + $0x50] sm:$0xff] }
 0xa86   :  { %v3028_v12 = vadd.f32 %v3026_v28, %v3020_v14  ;;  %v3027_v42 = vmul.f32 0.044715, %v3025_v9 }
 0xa88   :  { %v3030_v31 = vmul.f32 0.7978846, %v3028_v12  ;;  %v3029_v7 = vadd.f32 %v3027_v42, %v3021_v62 }
 0xa8a   :  { %4435 = vtanh.f32 %v3030_v31  ;;  %v3031_v54 = vmul.f32 0.7978846, %v3029_v7  ;;  %v4602_v7 = vld [vmem:[%s6934_s14 + $0x60] sm:$0xff] }
 0xa8c   :  { %4437 = vtanh.f32 %v3031_v54 }
 0xa97   :  { %v4436_v24 = vpop.eup %4435 }
 0xa98   :  { %v3034_v13 = vadd.f32 1.0, %v4436_v24 }
 0xa99   :  { %v4438_v25 = vpop.eup %4437 }
 0xa9a   :  { %v3036_v3 = vmul.f32 0.5, %v3034_v13  ;;  %v3035_v33 = vadd.f32 1.0, %v4438_v25 }
 0xa9c   :  { %v6619_v0 = vmul.f32 %v3036_v3, %v3020_v14  ;;  %v3037_v48 = vmul.f32 0.5, %v3035_v33  ;;  %v4604_v3 = vld [vmem:[%s6934_s14 + $0x70] sm:$0xff] }
 0xa9e   :  { %v6621_v10 = vmul.f32 %v3037_v48, %v3021_v62  ;;  %v3043_v26 = vrot.slane %v6619_v0, %v7494_v39  ;;  %v3056_v47 = vrot.slane %v6619_v0, %v7495_v50  ;;  %v3070_v2 = vrot.slane %v6619_v0, %v7496_v22 }
 0xa9f   :  { %v3084_v15 = vrot.slane %v6619_v0, %v7497_v5  ;;  %v3098_v35 = vrot.slane %v6619_v0, %v7498_v44  ;;  %v3112_v14 = vrot.slane %v6619_v0, %v7499_v37  ;;  %v3126_v9 = vrot.slane %v6619_v0, %v7357_v11 }
 0xaa0   :  { %3181 = vmatprep.subr.mxu0 %v6621_v10  ;;  %v3047_v30 = vrot.slane %v6621_v10, %v7494_v39  ;;  %v3060_v34 = vrot.slane %v6621_v10, %v7495_v50  ;;  %v3048_v21 = vmul.f32 %v4586_v43, %v3043_v26  ;;  %v4587_v39 = vld [vmem:[%s6934_s14 + $0x8] sm:$0xff]  ;;  %v3074_v4 = vrot.slane %v6621_v10, %v7496_v22  ;;  %v4590_v50 = vld [vmem:[%s6934_s14 + $0x10] sm:$0xff]  ;;  %v4593_v22 = vld [vmem:[%s6934_s14 + $0x20] sm:$0xff]  ;;  %v1542_v26 = vpop.xlane.xlu0 %1541 }
 0xaa1   :  { %3182 = vmatpush1.msra.mxu0 %v6619_v0  ;;  %v3061_v18 = vmul.f32 %v4590_v50, %v3056_v47  ;;  %v3088_v51 = vrot.slane %v6621_v10, %v7497_v5  ;;  %v3075_v23 = vmul.f32 %v4593_v22, %v3070_v2  ;;  %v3102_v58 = vrot.slane %v6621_v10, %v7498_v44  ;;  %v4596_v5 = vld [vmem:[%s6934_s14 + $0x30] sm:$0xff]  ;;  %v4599_v44 = vld [vmem:[%s6934_s14 + $0x58] sm:$0xff] }
 0xaa2   :  { %3962 = vmatmul.mubr.msk.f32.vlgmr.msra.gmra.mxu0 %vm884_vm4, %v4585_v41  ;;  %v3049_v38 = vmul.f32 %v4587_v39, %v3047_v30  ;;  %v3062_v59 = vmul.f32 %v4588_v1, %v3060_v34  ;;  %v3076_v20 = vmul.f32 %v4591_v8, %v3074_v4  ;;  %v3089_v52 = vmul.f32 %v4596_v5, %v3084_v15  ;;  %v7501_v5 = vld [vmem:[#allocation67_spill] sm:$0xff] }
 0xaa3   :  { %3221 = vmatprep.mubr.f32.mxu0 %v7237_v6  ;;  %v3090_v27 = vmul.f32 %v4594_v63, %v3088_v51  ;;  %v3104_v29 = vmul.f32 %v4597_v19, %v3102_v58  ;;  %v3116_v17 = vrot.slane %v6621_v10, %v7499_v37  ;;  %v3103_v45 = vmul.f32 %v4598_v60, %v3098_v35  ;;  %v4601_v37 = vld [vmem:[%s6934_s14 + $0x68] sm:$0xff] }
 0xaa4   :  { %v3050_v16 = vadd.f32 %v3049_v38, %v3048_v21  ;;  %v3063_v40 = vadd.f32 %v3062_v59, %v3061_v18  ;;  %v3077_v61 = vadd.f32 %v3076_v20, %v3075_v23  ;;  %v3130_v49 = vrot.slane %v6621_v10, %v7357_v11  ;;  %v4603_v11 = vld [vmem:[%s6934_s14 + $0x78] sm:$0xff] }
 0xaa5   :  { %v3091_v55 = vadd.f32 %v3090_v27, %v3089_v52  ;;  %v3105_v57 = vadd.f32 %v3104_v29, %v3103_v45  ;;  %v3118_v62 = vmul.f32 %v4599_v44, %v3116_v17  ;;  %v3117_v28 = vmul.f32 %v4600_v56, %v3112_v14  ;;  %v7502_v29 = vld [vmem:[#allocation66_spill] sm:$0xff] }
 0xaa6   :  { %3963 = vmatmul.mubr.msk.f32.gmra.mxu0 %vm884_vm4, %v4589_v53  ;;  %3051 = vadd.xlane.f32.xlu0 %v3050_v16  ;;  %v3132_v42 = vmul.f32 %v4601_v37, %v3130_v49  ;;  %v3144_v31 = vrot.slane %v6621_v10, %v7362_v32  ;;  %v3131_v54 = vmul.f32 %v4602_v7, %v3126_v9  ;;  %v1558_v10 = vpop.xlane.xlu1 %1557  ;;  %v7503_v9 = vld [vmem:[#allocation65_spill] sm:$0xff] }
 0xaa7   :  { %3227 = vmatprep.mubr.f32.mxu0 %v7237_v6  ;;  %v3119_v12 = vadd.f32 %v3118_v62, %v3117_v28  ;;  %v3140_v24 = vrot.slane %v6619_v0, %v7362_v32  ;;  %v1559_v47 = vadd.f32 %v1558_v10, %v1542_v26  ;;  %v7504_v10 = vld [vmem:[#allocation63_spill] sm:$0xff] }
 0xaa8   :  { %v3133_v13 = vadd.f32 %v3132_v42, %v3131_v54  ;;  %v3146_v25 = vmul.f32 %v4603_v11, %v3144_v31 }
 0xaa9   :  { %v3145_v33 = vmul.f32 %v4604_v3, %v3140_v24 }
 0xaaa   :  { %3964 = vmatmul.mubr.msk.f32.gmra.mxu0 %vm884_vm4, %v4592_v36  ;;  %3064 = vadd.xlane.f32.xlu0 %v3063_v40  ;;  %v1575_v30 = vpop.xlane.xlu1 %1574 }
 0xaab   :  { %3233 = vmatprep.mubr.f32.mxu0 %v7237_v6  ;;  %v3147_v48 = vadd.f32 %v3146_v25, %v3145_v33  ;;  %v1576_v1 = vadd.f32 %v1575_v30, %v1559_v47 }
 0xaae   :  { %3965 = vmatmul.mubr.msk.f32.gmra.mxu0 %vm884_vm4, %v4595_v46  ;;  %3078 = vadd.xlane.f32.xlu0 %v3077_v61  ;;  %v1592_v41 = vpop.xlane.xlu1 %1591 }
 0xaaf   :  { %v1593_v50 = vadd.f32 %v1592_v41, %v1576_v1 }
 0xab2   :  { %3092 = vadd.xlane.f32.xlu0 %v3091_v55  ;;  %v1609_v0 = vpop.xlane.xlu1 %1608 }
 0xab3   :  { %v1610_v2 = vadd.f32 %v1609_v0, %v1593_v50 }
 0xab6   :  { %3106 = vadd.xlane.f32.xlu0 %v3105_v57  ;;  %v1626_v39 = vpop.xlane.xlu1 %1625 }
 0xab7   :  { %v1627_v20 = vadd.f32 %v1626_v39, %v1610_v2 }
 0xaba   :  { %3120 = vadd.xlane.f32.xlu0 %v3119_v12  ;;  %v1643_v4 = vpop.xlane.xlu1 %1642 }
 0xabb   :  { %v1644_v22 = vadd.f32 %v1643_v4, %v1627_v20 }
 0xabe   :  { %3134 = vadd.xlane.f32.xlu0 %v3133_v13  ;;  %v1660_v36 = vpop.xlane.xlu1 %1659 }
 0xabf   :  { %v1661_v61 = vadd.f32 %v1660_v36, %v1644_v22 }
 0xac2   :  { %3148 = vadd.xlane.f32.xlu0 %v3147_v48 }
 0xb2f   :  { %v3052_v34 = vpop.xlane.xlu0 %3051 }
 0xb33   :  { %v3065_v32 = vpop.xlane.xlu0 %3064 }
 0xb34   :  { %v3066_v16 = vadd.f32 %v3065_v32, %v3052_v34 }
 0xb37   :  { %v3079_v43 = vpop.xlane.xlu0 %3078 }
 0xb38   :  { %v3080_v59 = vadd.f32 %v3079_v43, %v3066_v16 }
 0xb3b   :  { %v3093_v21 = vpop.xlane.xlu0 %3092 }
 0xb3c   :  { %v3094_v18 = vadd.f32 %v3093_v21, %v3080_v59 }
 0xb3f   :  { %v3107_v38 = vpop.xlane.xlu0 %3106 }
 0xb40   :  { %v3108_v40 = vadd.f32 %v3107_v38, %v3094_v18 }
 0xb43   :  { %v3121_v53 = vpop.xlane.xlu0 %3120 }
 0xb44   :  { %v3122_v51 = vadd.f32 %v3121_v53, %v3108_v40 }
 0xb47   :  { %v3135_v8 = vpop.xlane.xlu0 %3134 }
 0xb48   :  { %v3136_v23 = vadd.f32 %v3135_v8, %v3122_v51 }
 0xb4b   :  { %v3149_v15 = vpop.xlane.xlu0 %3148 }
 0xb4c   :  { %v3150_v63 = vadd.f32 %v3149_v15, %v3136_v23 }
 0xb4e   :  { %v3389_v27 = vsel %vm3388_vm5, %v1661_v61, %v3150_v63 }
 0xb4f   :  { %4328 = vmatprep.subr.mxu0 %v3389_v27 }
 0xb50   :  { %4329 = vmatpush3.msra.mxu0 %v3389_v27 }
 0xb62   :  { %v3217_v58 = vpop.f32.mrf.mxu0 }
 0xb63   :  { %v6729_v35 = vadd.f32 %v3217_v58, %v7501_v5 }
 0xb64   :  { %v3219_v46 = vpop.f32.mrf.mxu0 }
 0xb65   :  { %v6726_v52 = vadd.f32 %v3219_v46, %v7501_v5  ;;  %v3240_v44 = vmul.f32 %v6729_v35, %v6729_v35 }
 0xb66   :  { %v3223_v55 = vpop.f32.mrf.mxu0 }
 0xb67   :  { %v3241_v19 = vmul.f32 %v6726_v52, %v6726_v52  ;;  %v6734_v17 = vadd.f32 %v3223_v55, %v7502_v29  ;;  %v3248_v7 = vmul.f32 %v3240_v44, %v6729_v35 }
 0xb68   :  { %v3225_v60 = vpop.f32.mrf.mxu0 }
 0xb69   :  { %v3249_v45 = vmul.f32 %v3241_v19, %v6726_v52  ;;  %v3242_v14 = vmul.f32 %v6734_v17, %v6734_v17  ;;  %v6740_v57 = vadd.f32 %v3225_v60, %v7502_v29  ;;  %v3256_v41 = vmul.f32 0.044715, %v3248_v7 }
 0xb6a   :  { %v3229_v62 = vpop.f32.mrf.mxu0 }
 0xb6b   :  { %v3257_v49 = vmul.f32 0.044715, %v3249_v45  ;;  %v3250_v56 = vmul.f32 %v3242_v14, %v6734_v17  ;;  %v3243_v28 = vmul.f32 %v6740_v57, %v6740_v57  ;;  %v6748_v12 = vadd.f32 %v3229_v62, %v7503_v9 }
 0xb6c   :  { %v3231_v37 = vpop.f32.mrf.mxu0  ;;  %v3264_v53 = vadd.f32 %v3256_v41, %v6729_v35 }
 0xb6d   :  { %v3258_v42 = vmul.f32 0.044715, %v3250_v56  ;;  %v3251_v31 = vmul.f32 %v3243_v28, %v6740_v57  ;;  %v3244_v54 = vmul.f32 %v6748_v12, %v6748_v12  ;;  %v6755_v24 = vadd.f32 %v3231_v37, %v7503_v9 }
 0xb6e   :  { %v3235_v13 = vpop.f32.mrf.mxu0  ;;  %v3265_v11 = vadd.f32 %v3257_v49, %v6726_v52  ;;  %v3272_v22 = vmul.f32 0.7978846, %v3264_v53  ;;  %v3397_v53 = vld [vmem:[%s6940_s20 + $0x30] sm:$0xff] }
 0xb6f   :  { %v3259_v25 = vmul.f32 0.044715, %v3251_v31  ;;  %v3266_v3 = vadd.f32 %v3258_v42, %v6734_v17  ;;  %v3252_v33 = vmul.f32 %v3244_v54, %v6748_v12  ;;  %v3245_v48 = vmul.f32 %v6755_v24, %v6755_v24 }
 0xb70   :  { %v3236_v26 = vadd.f32 %v3235_v13, %v7504_v10  ;;  %v3237_v30 = vpop.f32.mrf.mxu0  ;;  %v3273_v21 = vmul.f32 0.7978846, %v3265_v11 }
 0xb71   :  { %v3238_v34 = vadd.f32 %v3237_v30, %v7504_v10  ;;  %v3260_v32 = vmul.f32 0.044715, %v3252_v33  ;;  %v3253_v0 = vmul.f32 %v3245_v48, %v6755_v24  ;;  %v3267_v39 = vadd.f32 %v3259_v25, %v6740_v57 }
 0xb72   :  { %v3246_v43 = vmul.f32 %v3236_v26, %v3236_v26  ;;  %v3274_v47 = vmul.f32 0.7978846, %v3266_v3  ;;  %4439 = vtanh.f32 %v3273_v21 }
 0xb73   :  { %v3247_v38 = vmul.f32 %v3238_v34, %v3238_v34  ;;  %v3268_v16 = vadd.f32 %v3260_v32, %v6748_v12  ;;  %v3261_v1 = vmul.f32 0.044715, %v3253_v0  ;;  %v3275_v40 = vmul.f32 0.7978846, %v3267_v39  ;;  %v7506_v32 = vld [vmem:[#allocation72_spill] sm:$0xff]  ;;  %v3391_v39 = vld [vmem:[%s6940_s20] sm:$0xff] }
 0xb74   :  { %v3254_v59 = vmul.f32 %v3246_v43, %v3236_v26  ;;  %4441 = vtanh.f32 %v3274_v47  ;;  %4330 = vmatprep.mubr.msk.f32.mxu0 %vm884_vm4, %v3391_v39  ;;  %v3393_v47 = vld [vmem:[%s6940_s20 + $0x10] sm:$0xff] }
 0xb75   :  { %v3255_v4 = vmul.f32 %v3247_v38, %v3238_v34  ;;  %v3276_v50 = vmul.f32 0.7978846, %v3268_v16  ;;  %v3269_v18 = vadd.f32 %v3261_v1, %v6755_v24  ;;  %v3392_v38 = vld [vmem:[%s6940_s20 + $0x8] sm:$0xff]  ;;  %v3394_v16 = vld [vmem:[%s6940_s20 + $0x18] sm:$0xff]  ;;  %v3395_v1 = vld [vmem:[%s6940_s20 + $0x20] sm:$0xff] }
 0xb76   :  { %v3262_v2 = vmul.f32 0.044715, %v3254_v59  ;;  %4331 = vmatmul.mubr.msk.f32.vlgmr.msra.gmra.mxu0 %vm884_vm4, %v3392_v38  ;;  %v3671_v59 = vld [vmem:[%s6938_s22 + $0x30] sm:$0xff] }
 0xb77   :  { %v3263_v8 = vmul.f32 0.044715, %v3255_v4  ;;  %v3277_v20 = vmul.f32 0.7978846, %v3269_v18  ;;  %4443 = vtanh.f32 %v3276_v50  ;;  %4333 = vmatprep.mubr.msk.f32.mxu0 %vm884_vm4, %v3393_v47  ;;  %v3396_v4 = vld [vmem:[%s6940_s20 + $0x28] sm:$0xff]  ;;  %v3668_v50 = vld [vmem:[%s6938_s22 + $0x18] sm:$0xff] }
 0xb78   :  { %v3270_v51 = vadd.f32 %v3262_v2, %v3236_v26  ;;  %v3398_v18 = vld [vmem:[%s6940_s20 + $0x38] sm:$0xff]  ;;  %v3666_v2 = vld [vmem:[%s6938_s22 + $0x8] sm:$0xff] }
 0xb79   :  { %v3271_v36 = vadd.f32 %v3263_v8, %v3238_v34  ;;  %4445 = vtanh.f32 %v3277_v20  ;;  %v1960_v8 = vpop.xlane.xlu1 %1959 }
 0xb7a   :  { %v3278_v23 = vmul.f32 0.7978846, %v3270_v51  ;;  %4447 = vtanh.f32 %v3275_v40  ;;  %4334 = vmatmul.mubr.msk.f32.gmra.mxu0 %vm884_vm4, %v3394_v16  ;;  %v3794_v40 = vld [vmem:[%s6941_s24] sm:$0x7] }
 0xb7b   :  { %v3279_v15 = vmul.f32 0.7978846, %v3271_v36  ;;  %4336 = vmatprep.mubr.msk.f32.mxu0 %vm884_vm4, %v3395_v1  ;;  %v3400_v36 = vld [vmem:[%s6939_s21 + $0x8] sm:$0xff] }
 0xb7c   :  { %4449 = vtanh.f32 %v3278_v23  ;;  %v3402_v23 = vld [vmem:[%s6939_s21 + $0x18] sm:$0xff] }
 0xb7d   :  { %4451 = vtanh.f32 %v3279_v15  ;;  %v3403_v15 = vld [vmem:[%s6939_s21 + $0x20] sm:$0xff] }
 0xb7e   :  { %4453 = vtanh.f32 %v3272_v22  ;;  %4337 = vmatmul.mubr.msk.f32.gmra.mxu0 %vm884_vm4, %v3396_v4  ;;  %v3401_v22 = vld [vmem:[%s6939_s21 + $0x10] sm:$0xff] }
 0xb7f   :  { %v4440_v61 = vpop.eup %4439  ;;  %4339 = vmatprep.mubr.msk.f32.mxu0 %vm884_vm4, %v3397_v53 }
 0xb80   :  { %v3289_v9 = vadd.f32 1.0, %v4440_v61  ;;  %v3404_v61 = vld [vmem:[%s6939_s21 + $0x28] sm:$0xff] }
 0xb81   :  { %v4442_v63 = vpop.eup %4441 }
 0xb82   :  { %v3290_v49 = vadd.f32 1.0, %v4442_v63  ;;  %v3297_v25 = vmul.f32 0.5, %v3289_v9  ;;  %4340 = vmatmul.mubr.msk.f32.gmra.mxu0 %vm884_vm4, %v3398_v18  ;;  %v3405_v63 = vld [vmem:[%s6939_s21 + $0x30] sm:$0xff] }
 0xb84   :  { %v4444_v27 = vpop.eup %4443  ;;  %v3298_v13 = vmul.f32 0.5, %v3290_v49  ;;  %v3305_v30 = vmul.f32 %v3297_v25, %v6726_v52  ;;  %v7507_v52 = vld [vmem:[#allocation82_spill] sm:$0xff] }
 0xb85   :  { %v3292_v60 = vadd.f32 1.0, %v4444_v27  ;;  %v3406_v27 = vld [vmem:[%s6939_s21 + $0x38] sm:$0xff] }
 0xb86   :  { %v4446_v58 = vpop.eup %4445  ;;  %v3306_v10 = vmul.f32 %v3298_v13, %v6734_v17 }
 0xb87   :  { %v4448_v46 = vpop.eup %4447  ;;  %v3293_v55 = vadd.f32 1.0, %v4446_v58  ;;  %v3300_v37 = vmul.f32 0.5, %v3292_v60  ;;  %v3711_v58 = vpop.permute.xlu1 %3710 }
 0xb88   :  { %v3291_v44 = vadd.f32 1.0, %v4448_v46 }
 0xb89   :  { %v4450_v5 = vpop.eup %4449  ;;  %v3301_v28 = vmul.f32 0.5, %v3293_v55  ;;  %v3308_v3 = vmul.f32 %v3300_v37, %v6748_v12 }
 0xb8a   :  { %v4452_v19 = vpop.eup %4451  ;;  %v3294_v29 = vadd.f32 1.0, %v4450_v5  ;;  %v3299_v7 = vmul.f32 0.5, %v3291_v44 }
 0xb8b   :  { %v4454_v45 = vpop.eup %4453  ;;  %v3295_v14 = vadd.f32 1.0, %v4452_v19  ;;  %v3309_v11 = vmul.f32 %v3301_v28, %v6755_v24  ;;  %v4605_v24 = vld [vmem:[%s6936_s17] sm:$0xff]  ;;  %v3701_v55 = vpop.permute.xlu1 %3700 }
 0xb8c   :  { %v3302_v62 = vmul.f32 0.5, %v3294_v29  ;;  %v3288_v42 = vadd.f32 1.0, %v4454_v45  ;;  %v3307_v48 = vmul.f32 %v3299_v7, %v6740_v57 }
 0xb8d   :  { %v3303_v56 = vmul.f32 0.5, %v3295_v14 }
 0xb8e   :  { %v3310_v54 = vmul.f32 %v3302_v62, %v3236_v26  ;;  %v3296_v33 = vmul.f32 0.5, %v3288_v42 }
 0xb8f   :  { %v3311_v31 = vmul.f32 %v3303_v56, %v3238_v34  ;;  %v7505_v34 = vld [vmem:[#allocation81_spill] sm:$0xff]  ;;  %v3696_v60 = vpop.permute.xlu1 %3695 }
 0xb90   :  { %v3304_v26 = vmul.f32 %v3296_v33, %v6729_v35  ;;  %v3399_v35 = vld [vmem:[%s6939_s21] sm:$0xff] }
 0xb91   :  { %3336 = vmatprep.subr.mxu1 %v3311_v31 }
 0xb92   :  { %3337 = vmatpush1.msra.mxu1 %v3310_v54 }
 0xb93   :  { %3338 = vmatprep.subr.mxu1 %v3309_v11  ;;  %v3686_v56 = vpop.permute.xlu1 %3685 }
 0xb94   :  { %3339 = vmatpush1.msra.mxu1 %v3308_v3 }
 0xb95   :  { %3340 = vmatprep.subr.mxu1 %v3307_v48 }
 0xb96   :  { %3341 = vmatpush1.msra.mxu1 %v3306_v10 }
 0xb97   :  { %3342 = vmatprep.subr.mxu1 %v3305_v30  ;;  %v3676_v10 = vpop.permute.xlu1 %3675 }
 0xb98   :  { %3343 = vmatpush1.msra.mxu1 %v3304_v26 }
 0xb99   :  { %3966 = vmatmul.mubr.msk.f32.vlgmr.msra.gmra.mxu1 %vm187_vm3, %v4605_v24 }
 0xb9a   :  { %4316 = vmatprep.mubr.msk.f32.mxu1 %vm884_vm4, %v3399_v35 }
 0xc36   :  { %v4332_v46 = vpop.f32.mrf.mxu0 }
 0xc38   :  { %v3626_v5 = vpop.f32.mrf.mxu0 }
 0xc3a   :  { %v4335_v19 = vpop.f32.mrf.mxu0 }
 0xc3c   :  { %v3636_v45 = vpop.f32.mrf.mxu0 }
 0xc3e   :  { %v4338_v49 = vpop.f32.mrf.mxu0 }
 0xc40   :  { %v3646_v13 = vpop.f32.mrf.mxu0 }
 0xc59   :  { %v3378_v12 = vpop.f32.mrf.mxu1 }
 0xc5a   :  { %v3379_v57 = vadd.f32 %v3378_v12, %v7505_v34 }
 0xc5b   :  { %v3380_v41 = vpop.f32.mrf.mxu1 }
 0xc5c   :  { %v3381_v17 = vadd.f32 %v3380_v41, %v7505_v34  ;;  %v3383_v0 = vmul.f32 %v3379_v57, %v7506_v32  ;;  %v4341_v34 = vpop.f32.mrf.mxu0 }
 0xc5e   :  { %v3384_v43 = vmul.f32 %v3381_v17, %v7507_v52  ;;  %v3656_v47 = vpop.f32.mrf.mxu0 }
 0xc60   :  { %v3385_v21 = vadd.f32 %v3384_v43, %v3383_v0 }
 0xc62   :  { %3386 = vadd.xlane.f32.xlu0 %v3385_v21 }
 0xc78   :  { %3705 = vperm.xlu0 %4404, %v3671_v59  }
 0xc7c   :  { %3690 = vperm.xlu0 %4404, %v3668_v50  }
 0xc80   :  { %3680 = vperm.xlu0 %4404, %v3666_v2  }
 0xc84   :  { %3797 = vperm.xlu0 %4404, %v3794_v40  }
 0xceb   :  { %v3387_v20 = vpop.xlane.xlu0 %3386 }
 0xcec   :  { %v3390_v51 = vsel %vm3388_vm5, %v1960_v8, %v3387_v20 }
 0xced   :  { %4314 = vmatprep.subr.mxu1 %v3390_v51 }
 0xcee   :  { %4315 = vmatpush3.msra.mxu1 %v3390_v51 }
 0xcef   :  { %4317 = vmatmul.mubr.msk.f32.vlgmr.msra.gmra.mxu1 %vm884_vm4, %v3400_v36  ;;  %4342 = vmatprep.subr.mxu1 %v7237_v6 }
 0xcf0   :  { %4319 = vmatprep.mubr.msk.f32.mxu1 %vm884_vm4, %v3401_v22 }
 0xcf3   :  { %4320 = vmatmul.mubr.msk.f32.gmra.mxu1 %vm884_vm4, %v3402_v23  ;;  %v3706_v29 = vpop.permute.xlu0 %3705 }
 0xcf4   :  { %4322 = vmatprep.mubr.msk.f32.mxu1 %vm884_vm4, %v3403_v15 }
 0xcf7   :  { %4323 = vmatmul.mubr.msk.f32.gmra.mxu1 %vm884_vm4, %v3404_v61  ;;  %v3691_v44 = vpop.permute.xlu0 %3690 }
 0xcf8   :  { %4325 = vmatprep.mubr.msk.f32.mxu1 %vm884_vm4, %v3405_v63 }
 0xcfb   :  { %4326 = vmatmul.mubr.msk.f32.gmra.mxu1 %vm884_vm4, %v3406_v27  ;;  %v3681_v11 = vpop.permute.xlu0 %3680 }
 0xcfc   :  { %4358 = vmatprep.mubr.msk.f32.mxu1 %vm4607_vm2, %v7237_v6 }
 0xdaf   :  { %v4318_v14 = vpop.f32.mrf.mxu1 }
 0xdb0   :  { %v3632_v9 = vadd.f32 %v4332_v46, %v4318_v14 }
 0xdb1   :  { %v3497_v62 = vpop.f32.mrf.mxu1 }
 0xdb2   :  { %v3627_v31 = vadd.f32 %v3626_v5, %v3497_v62  ;;  %v6865_v3 = vadd.f32 %v3681_v11, %v3632_v9 }
 0xdb3   :  { %v4321_v28 = vpop.f32.mrf.mxu1 }
 0xdb4   :  { %v3642_v37 = vadd.f32 %v4335_v19, %v4321_v28  ;;  %v6871_v24 = vadd.f32 %v3676_v10, %v3627_v31  ;;  %v3722_v32 = vmul.f32 %v6865_v3, %v6865_v3 }
 0xdb5   :  { %v3507_v42 = vpop.f32.mrf.mxu1 }
 0xdb6   :  { %v6863_v7 = vadd.f32 %v3691_v44, %v3642_v37  ;;  %v3637_v54 = vadd.f32 %v3636_v45, %v3507_v42  ;;  %v3721_v39 = vmul.f32 %v6871_v24, %v6871_v24  ;;  %v3730_v53 = vmul.f32 %v3722_v32, %v6865_v3 }
 0xdb7   :  { %v4324_v25 = vpop.f32.mrf.mxu1 }
 0xdb8   :  { %v3724_v33 = vmul.f32 %v6863_v7, %v6863_v7  ;;  %v6869_v48 = vadd.f32 %v3686_v56, %v3637_v54  ;;  %v3652_v30 = vadd.f32 %v4338_v49, %v4324_v25  ;;  %v3729_v20 = vmul.f32 %v3721_v39, %v6871_v24 }
 0xdb9   :  { %v3517_v26 = vpop.f32.mrf.mxu1  ;;  %v3738_v61 = vmul.f32 0.044715, %v3730_v53 }
 0xdba   :  { %v3723_v12 = vmul.f32 %v6869_v48, %v6869_v48  ;;  %v6875_v57 = vadd.f32 %v3701_v55, %v3652_v30  ;;  %v3647_v41 = vadd.f32 %v3646_v13, %v3517_v26  ;;  %v3732_v0 = vmul.f32 %v3724_v33, %v6863_v7 }
 0xdbb   :  { %v4327_v17 = vpop.f32.mrf.mxu1  ;;  %v3737_v55 = vmul.f32 0.044715, %v3729_v20  ;;  %v3746_v44 = vadd.f32 %v3738_v61, %v6865_v3 }
 0xdbc   :  { %v3726_v52 = vmul.f32 %v6875_v57, %v6875_v57  ;;  %v6882_v43 = vadd.f32 %v3696_v60, %v3647_v41  ;;  %v3662_v21 = vadd.f32 %v4341_v34, %v4327_v17  ;;  %v3731_v38 = vmul.f32 %v3723_v12, %v6869_v48 }
 0xdbd   :  { %v3527_v35 = vpop.f32.mrf.mxu1  ;;  %v3740_v50 = vmul.f32 0.044715, %v3732_v0  ;;  %v3745_v56 = vadd.f32 %v3737_v55, %v6871_v24  ;;  %v3754_v37 = vmul.f32 0.7978846, %v3746_v44 }
 0xdbe   :  { %v3734_v16 = vmul.f32 %v3726_v52, %v6875_v57  ;;  %v3725_v1 = vmul.f32 %v6882_v43, %v6882_v43  ;;  %v3720_v59 = vadd.f32 %v3711_v58, %v3662_v21  ;;  %v3657_v4 = vadd.f32 %v3656_v47, %v3527_v35 }
 0xdbf   :  { %v3739_v51 = vmul.f32 0.044715, %v3731_v38  ;;  %v3748_v63 = vadd.f32 %v3740_v50, %v6863_v7  ;;  %v3753_v42 = vmul.f32 0.7978846, %v3745_v56 }
 0xdc0   :  { %v3742_v18 = vmul.f32 0.044715, %v3734_v16  ;;  %v3733_v2 = vmul.f32 %v3725_v1, %v6882_v43  ;;  %v3728_v40 = vmul.f32 %v3720_v59, %v3720_v59  ;;  %v3719_v8 = vadd.f32 %v3706_v29, %v3657_v4 }
 0xdc1   :  { %v3747_v19 = vadd.f32 %v3739_v51, %v6869_v48  ;;  %v3756_v14 = vmul.f32 0.7978846, %v3748_v63 }
 0xdc2   :  { %v3750_v36 = vadd.f32 %v3742_v18, %v6875_v57  ;;  %v3741_v22 = vmul.f32 0.044715, %v3733_v2  ;;  %v3736_v23 = vmul.f32 %v3728_v40, %v3720_v59  ;;  %v3727_v15 = vmul.f32 %v3719_v8, %v3719_v8 }
 0xdc3   :  { %v3755_v28 = vmul.f32 0.7978846, %v3747_v19 }
 0xdc4   :  { %v3758_v27 = vmul.f32 0.7978846, %v3750_v36  ;;  %v3749_v58 = vadd.f32 %v3741_v22, %v6882_v43  ;;  %v3744_v46 = vmul.f32 0.044715, %v3736_v23  ;;  %v3735_v5 = vmul.f32 %v3727_v15, %v3719_v8 }
 0xdc6   :  { %v3757_v29 = vmul.f32 0.7978846, %v3749_v58  ;;  %v3752_v60 = vadd.f32 %v3744_v46, %v3720_v59  ;;  %v3743_v45 = vmul.f32 0.044715, %v3735_v5  ;;  %4455 = vtanh.f32 %v3758_v27 }
 0xdc8   :  { %v3760_v62 = vmul.f32 0.7978846, %v3752_v60  ;;  %v3751_v49 = vadd.f32 %v3743_v45, %v3719_v8  ;;  %4457 = vtanh.f32 %v3757_v29 }
 0xdca   :  { %4459 = vtanh.f32 %v3760_v62  ;;  %v3759_v9 = vmul.f32 0.7978846, %v3751_v49 }
 0xdcb   :  { %4461 = vtanh.f32 %v3756_v14 }
 0xdcc   :  { %4463 = vtanh.f32 %v3759_v9 }
 0xdcd   :  { %4465 = vtanh.f32 %v3755_v28 }
 0xdce   :  { %4467 = vtanh.f32 %v3754_v37 }
 0xdcf   :  { %4469 = vtanh.f32 %v3753_v42 }
 0xdd3   :  { %v4456_v31 = vpop.eup %4455 }
 0xdd4   :  { %v3774_v33 = vadd.f32 1.0, %v4456_v31 }
 0xdd5   :  { %v4458_v54 = vpop.eup %4457 }
 0xdd6   :  { %v3773_v12 = vadd.f32 1.0, %v4458_v54  ;;  %v3782_v32 = vmul.f32 0.5, %v3774_v33 }
 0xdd7   :  { %v4460_v13 = vpop.eup %4459 }
 0xdd8   :  { %v4462_v11 = vpop.eup %4461  ;;  %v3776_v25 = vadd.f32 1.0, %v4460_v13  ;;  %v3781_v35 = vmul.f32 0.5, %v3773_v12  ;;  %v3790_v47 = vmul.f32 %v3782_v32, %v6875_v57 }
 0xdd9   :  { %v4464_v10 = vpop.eup %4463  ;;  %v3772_v0 = vadd.f32 1.0, %v4462_v11 }
 0xdda   :  { %v3784_v30 = vmul.f32 0.5, %v3776_v25  ;;  %v3775_v26 = vadd.f32 1.0, %v4464_v10  ;;  %v4466_v34 = vpop.eup %4465 }
 0xddb   :  { %v4468_v52 = vpop.eup %4467  ;;  %v3771_v39 = vadd.f32 1.0, %v4466_v34  ;;  %v3780_v16 = vmul.f32 0.5, %v3772_v0 }
 0xddc   :  { %v3792_v41 = vmul.f32 %v3784_v30, %v3720_v59  ;;  %v3783_v17 = vmul.f32 0.5, %v3775_v26  ;;  %v4470_v38 = vpop.eup %4469  ;;  %v3770_v1 = vadd.f32 1.0, %v4468_v52  ;;  %v3789_v59 = vmul.f32 %v3781_v35, %v6882_v43 }
 0xddd   :  { %v3779_v4 = vmul.f32 0.5, %v3771_v39  ;;  %v3769_v53 = vadd.f32 1.0, %v4470_v38  ;;  %v3788_v50 = vmul.f32 %v3780_v16, %v6863_v7  ;;  %v3793_v7 = vld [vmem:[%s6942_s23] sm:$0x7] }
 0xdde   :  { %4343 = vmatpush3.msra.mxu1 %v3792_v41  ;;  %v3791_v21 = vmul.f32 %v3783_v17, %v3719_v8  ;;  %v3778_v18 = vmul.f32 0.5, %v3770_v1 }
 0xddf   :  { %4344 = vmatprep.subr.mxu1 %v7237_v6  ;;  %v3787_v57 = vmul.f32 %v3779_v4, %v6869_v48  ;;  %v3777_v2 = vmul.f32 0.5, %v3769_v53  ;;  %v3798_v48 = vpop.permute.xlu0 %3797 }
 0xde0   :  { %4345 = vmatpush3.msra.mxu1 %v3791_v21  ;;  %v3786_v40 = vmul.f32 %v3778_v18, %v6865_v3 }
 0xde1   :  { %4346 = vmatprep.subr.mxu1 %v7237_v6  ;;  %v3785_v43 = vmul.f32 %v3777_v2, %v6871_v24 }
 0xde2   :  { %4347 = vmatpush3.msra.mxu1 %v3790_v47 }
 0xde3   :  { %4348 = vmatprep.subr.mxu1 %v7237_v6 }
 0xde4   :  { %4349 = vmatpush3.msra.mxu1 %v3789_v59 }
 0xde5   :  { %4350 = vmatprep.subr.mxu1 %v7237_v6 }
 0xde6   :  { %4351 = vmatpush3.msra.mxu1 %v3788_v50 }
 0xde7   :  { %4352 = vmatprep.subr.mxu1 %v7237_v6 }
 0xde8   :  { %4353 = vmatpush3.msra.mxu1 %v3787_v57 }
 0xde9   :  { %4354 = vmatprep.subr.mxu1 %v7237_v6 }
 0xdea   :  { %4355 = vmatpush3.msra.mxu1 %v3786_v40 }
 0xdeb   :  { %4356 = vmatprep.subr.mxu1 %v7237_v6 }
 0xdec   :  { %4357 = vmatpush3.msra.mxu1 %v3785_v43 }
 0xded   :  { %4359 = vmatmul.mubr.msk.f32.vlgmr.msra.gmra.mxu1 %vm3800_vm6, %v3793_v7 }
 0xead   :  { %v3870_v8 = vpop.f32.mrf.mxu1 }
 0xeae   :  { %v3871_v20 = vadd.f32 %v3870_v8, %v3798_v48 }
 0xeaf   :  { %v4360_v51 = vpop.f32.mrf.mxu1 }
 0xeb0   :  { %3875 = vst.msk [vmem:[%s6943_s25] sm:$0x7] %vm3874_vm7, %v3871_v20 }

</bundles_post_ra>
